<compile_context>
chip_gen: v7x
topology: tpu7x:2x2x1
jax: 0.10.0
libtpu: 0.0.40
codegen_flags: <defaults>
</compile_context>

<pallas_src>
import functools

import jax
import jax.numpy as jnp
from jax.experimental import pallas as pl
from jax.experimental.pallas import tpu as pltpu


_VMEM_LIMIT_BYTES = 32 * 1024 * 1024   # <= physical VMEM on every generation


# ----------------------------- Pallas kernels --------------------------------

def _mm_bias_relu_kernel(a_ref, w_ref, b_ref, o_ref):
    # a: [bm, K] bf16, w: [K, N] bf16 (resident), b: [1, N] f32 -> o: [bm, N] bf16
    acc = jnp.dot(a_ref[...], w_ref[...], preferred_element_type=jnp.float32)
    acc = jnp.maximum(acc + b_ref[...], 0.0)
    o_ref[...] = acc.astype(o_ref.dtype)


def _head_kernel(a_ref, w1_ref, b1_ref, w2_ref, b2_ref, o_ref):
    # Fused: logits = relu(a @ w1 + b1) @ w2 + b2; weights resident across grid.
    h = jnp.dot(a_ref[...], w1_ref[...], preferred_element_type=jnp.float32)
    h = jnp.maximum(h + b1_ref[...], 0.0)
    logits = jnp.dot(h.astype(w2_ref.dtype), w2_ref[...],
                     preferred_element_type=jnp.float32)
    o_ref[...] = logits + b2_ref[...]


# ------------------------------ wrappers --------------------------------------

def conv_matmul(a, w_mat, b_row, *, block_m=2048, out_dtype=jnp.bfloat16):
    """relu(a @ w_mat + b_row). a: [M,K] bf16, w_mat: [K,N] bf16, b_row: [1,N] f32."""
    M, K = a.shape
    K2, N = w_mat.shape
    assert K == K2
    # Fixed-size cdiv tiling; bm is a multiple of 8 (or the full M when small),
    # so the (8,128) block constraint is always satisfied and the ragged last
    # block is masked by Pallas.
    bm = M if M <= block_m else block_m
    gm = pl.cdiv(M, bm)
    cost = pl.CostEstimate(
        flops=2 * M * K * N,
        transcendentals=0,
        bytes_accessed=(M * K + K * N + M * N) * 2 + N * 4,
    )
    return pl.pallas_call(
        _mm_bias_relu_kernel,
        out_shape=jax.ShapeDtypeStruct((M, N), out_dtype),
        grid=(gm,),
        in_specs=[
            pl.BlockSpec((bm, K), lambda i: (i, 0)),
            pl.BlockSpec((K, N), lambda i: (0, 0)),   # resident across M grid
            pl.BlockSpec((1, N), lambda i: (0, 0)),
        ],
        out_specs=pl.BlockSpec((bm, N), lambda i: (i, 0)),
        compiler_params=pltpu.CompilerParams(
            dimension_semantics=("parallel",),
            vmem_limit_bytes=_VMEM_LIMIT_BYTES),
        cost_estimate=cost,
    )(a, w_mat, b_row)


def fused_head(a, w1, b1, w2, b2, *, block_m=256):
    """logits = relu(a @ w1 + b1) @ w2 + b2, M-tiled, weights resident in VMEM."""
    M, K = a.shape
    N1 = w1.shape[1]
    N2 = w2.shape[1]
    bm = M if M <= block_m else block_m
    gm = pl.cdiv(M, bm)
    cost = pl.CostEstimate(
        flops=2 * M * (K * N1 + N1 * N2),
        transcendentals=0,
        bytes_accessed=(M * K + K * N1 + N1 * N2) * 2 + M * N2 * 4,
    )
    return pl.pallas_call(
        _head_kernel,
        out_shape=jax.ShapeDtypeStruct((M, N2), jnp.float32),
        grid=(gm,),
        in_specs=[
            pl.BlockSpec((bm, K), lambda i: (i, 0)),
            pl.BlockSpec((K, N1), lambda i: (0, 0)),    # fc_w resident
            pl.BlockSpec((1, N1), lambda i: (0, 0)),
            pl.BlockSpec((N1, N2), lambda i: (0, 0)),   # actor_w resident
            pl.BlockSpec((1, N2), lambda i: (0, 0)),
        ],
        out_specs=pl.BlockSpec((bm, N2), lambda i: (i, 0)),
        compiler_params=pltpu.CompilerParams(
            dimension_semantics=("parallel",),
            vmem_limit_bytes=_VMEM_LIMIT_BYTES),
        cost_estimate=cost,
    )(a, w1, b1, w2, b2)


# ------------------------------ JAX glue --------------------------------------

def _im2col_nhwc(x, kh, kw, stride):
    """x: [N,H,W,C] -> patches [N*Ho*Wo, kh*kw*C] with feature order (i, j, c)."""
    N, H, W, C = x.shape
    Ho = (H - kh) // stride + 1
    Wo = (W - kw) // stride + 1
    cols = [x[:, i:i + stride * Ho:stride, j:j + stride * Wo:stride, :]
            for i in range(kh) for j in range(kw)]
    patches = jnp.concatenate(cols, axis=-1)           # [N, Ho, Wo, kh*kw*C]
    return patches.reshape(N * Ho * Wo, kh * kw * C), Ho, Wo


def conv2d_nhwc(x, w_mat, b_row, *, kh, kw, stride):
    """PyTorch-semantics VALID conv via im2col + Pallas matmul; NHWC in/out."""
    N = x.shape[0]
    patches, Ho, Wo = _im2col_nhwc(x, kh, kw, stride)
    y = conv_matmul(patches, w_mat, b_row)              # [N*Ho*Wo, O] bf16
    return y.reshape(N, Ho, Wo, w_mat.shape[1])


def actor_forward(prep, x, *, n_actions):
    """x: [N, 4, 84, 84] f32 (PyTorch NCHW, values in [0,255]) -> logits f32."""
    h = jnp.transpose(x, (0, 2, 3, 1)).astype(jnp.bfloat16)   # NHWC once, bf16
    h = conv2d_nhwc(h, prep["c1_w"], prep["c1_b"], kh=8, kw=8, stride=4)
    h = conv2d_nhwc(h, prep["c2_w"], prep["c2_b"], kh=4, kw=4, stride=2)
    h = conv2d_nhwc(h, prep["c3_w"], prep["c3_b"], kh=3, kw=3, stride=1)
    h = h.reshape(h.shape[0], -1)      # NHWC flatten; fc weights pre-permuted
    k_pad = prep["fc_w"].shape[0] - h.shape[1]
    if k_pad:                          # align K (3136 -> 3200) to 128 multiple
        h = jnp.pad(h, ((0, 0), (0, k_pad)))
    logits = fused_head(h, prep["fc_w"], prep["fc_b"],
                        prep["act_w"], prep["act_b"])   # [N, 128] lane-dense
    return logits[:, :n_actions]


# --------------------------- one-time param prep ------------------------------

def prepare_params(params):
    """Fold /255 into conv1, build bf16 matmul weights, permute fc for NHWC,
    zero-pad fc K to a 128 multiple and actor N to 128 (lane-dense head)."""
    def conv_mat(w, scale=1.0):
        O, C, kh, kw = w.shape
        m = (w.astype(jnp.float32) * scale).transpose(2, 3, 1, 0)   # [i, j, c, o]
        return m.reshape(kh * kw * C, O).astype(jnp.bfloat16)

    def row(b, pad_to=None):
        r = b.astype(jnp.float32).reshape(1, -1)
        if pad_to is not None and r.shape[1] < pad_to:
            r = jnp.pad(r, ((0, 0), (0, pad_to - r.shape[1])))
        return r

    # fc_w columns are in PyTorch (c, h, w) flatten order; permute to (h, w, c)
    # to match the NHWC flatten of the conv3 output (64 channels, 7x7 spatial).
    fc_w = params["fc_w"].astype(jnp.float32).reshape(512, 64, 7, 7)
    fc_w = fc_w.transpose(0, 2, 3, 1).reshape(512, 64 * 7 * 7).T    # [3136, 512]
    k = fc_w.shape[0]
    k_pad = (-k) % 128                                               # 3136 -> 3200
    if k_pad:
        fc_w = jnp.pad(fc_w, ((0, k_pad), (0, 0)))

    act_w = params["actor_w"].astype(jnp.float32).T                  # [512, n_act]
    n_act = act_w.shape[1]
    n_out = max(128, -(-n_act // 128) * 128)                         # pad to 128
    if n_out > n_act:
        act_w = jnp.pad(act_w, ((0, 0), (0, n_out - n_act)))

    return {
        "c1_w": conv_mat(params["conv1_w"], 1.0 / 255.0),  # /255 folded in
        "c1_b": row(params["conv1_b"]),
        "c2_w": conv_mat(params["conv2_w"]), "c2_b": row(params["conv2_b"]),
        "c3_w": conv_mat(params["conv3_w"]), "c3_b": row(params["conv3_b"]),
        "fc_w": fc_w.astype(jnp.bfloat16), "fc_b": row(params["fc_b"]),
        "act_w": act_w.astype(jnp.bfloat16),
        "act_b": row(params["actor_b"], pad_to=n_out),
    }


def init_params(key, n_actions=6):
    """Deterministic synthetic parameters with PyTorch layer shapes."""
    ks = jax.random.split(key, 10)
    def w(k, shape, s=0.05):
        return s * jax.random.normal(k, shape, dtype=jnp.float32)
    return {
        "conv1_w": w(ks[0], (32, 4, 8, 8)),   "conv1_b": w(ks[1], (32,)),
        "conv2_w": w(ks[2], (64, 32, 4, 4)),  "conv2_b": w(ks[3], (64,)),
        "conv3_w": w(ks[4], (64, 64, 3, 3)),  "conv3_b": w(ks[5], (64,)),
        "fc_w":    w(ks[6], (512, 64 * 7 * 7)), "fc_b": w(ks[7], (512,)),
        "actor_w": w(ks[8], (n_actions, 512), s=0.01), "actor_b": w(ks[9], (n_actions,)),
    }


if __name__ == "__main__":
    key = jax.random.PRNGKey(0)
    pkey, xkey = jax.random.split(key)
    n_actions = 6
    params = init_params(pkey, n_actions=n_actions)
    prep = prepare_params(params)   # one-time: fold scale, bf16, layout, padding

    # Atari-style observation batch: [batch=2, C=4 stacked frames, 84, 84] in [0, 255].
    x = jax.random.uniform(xkey, (2, 4, 84, 84), minval=0.0, maxval=255.0,
                           dtype=jnp.float32)

    fwd = jax.jit(functools.partial(actor_forward, n_actions=n_actions))
    logits = fwd(prep, x)
    logits = jax.block_until_ready(logits)
    assert logits.shape == (2, n_actions)
    assert bool(jnp.all(jnp.isfinite(logits)))
    print("KERNEL_OK")
</pallas_src>

<mosaic_0001>
module attributes {stable_mosaic.version = 11 : i64} {
  func.func @_mm_bias_relu_kernel(%arg0: i32, %arg1: memref<800x256xbf16, #tpu.memory_space<vmem>>, %arg2: memref<256x32xbf16, #tpu.memory_space<vmem>>, %arg3: memref<1x32xf32, #tpu.memory_space<vmem>>, %arg4: memref<800x32xbf16, #tpu.memory_space<vmem>>) attributes {dimension_semantics = [#tpu.dimension_semantics<parallel>], iteration_bounds = array<i64: 1>, scalar_prefetch = 0 : i64, scratch_operands = 0 : i64, tpu.core_type = #tpu.core_type<tc>, window_params = [{transform_indices = @transform_0, window_bounds = array<i64: 800, 256>}, {pipeline_mode = #tpu.pipeline_mode<synchronous>, transform_indices = @transform_1, window_bounds = array<i64: 256, 32>}, {pipeline_mode = #tpu.pipeline_mode<synchronous>, transform_indices = @transform_2, window_bounds = array<i64: 1, 32>}, {transform_indices = @transform_3, window_bounds = array<i64: 800, 32>}]} {
    %c0 = arith.constant 0 : index
    %c0_0 = arith.constant 0 : index
    %0 = vector.load %arg1[%c0, %c0_0] : memref<800x256xbf16, #tpu.memory_space<vmem>>, vector<800x256xbf16>
    %c0_1 = arith.constant 0 : index
    %c0_2 = arith.constant 0 : index
    %1 = vector.load %arg2[%c0_1, %c0_2] : memref<256x32xbf16, #tpu.memory_space<vmem>>, vector<256x32xbf16>
    %cst = arith.constant dense<0.000000e+00> : vector<800x32xf32>
    %2 = tpu.matmul %0, %1, %cst {dimension_numbers = #tpu.dot_dimension_numbers<[1], [0], [0], [1], [0, 0, 1, 1], [], []>} : vector<800x256xbf16>, vector<256x32xbf16>, vector<800x32xf32> -> vector<800x32xf32>
    %c0_3 = arith.constant 0 : index
    %c0_4 = arith.constant 0 : index
    %3 = vector.load %arg3[%c0_3, %c0_4] : memref<1x32xf32, #tpu.memory_space<vmem>>, vector<1x32xf32>
    %4 = vector.broadcast %3 : vector<1x32xf32> to vector<800x32xf32>
    %5 = arith.addf %2, %4 : vector<800x32xf32>
    %cst_5 = arith.constant 0.000000e+00 : f32
    %6 = vector.broadcast %cst_5 : f32 to vector<800x32xf32>
    %7 = arith.maximumf %5, %6 : vector<800x32xf32>
    %8 = arith.truncf %7 : vector<800x32xf32> to vector<800x32xbf16>
    %c0_6 = arith.constant 0 : index
    %c0_7 = arith.constant 0 : index
    %9 = vector.load %arg4[%c0_6, %c0_7] : memref<800x32xbf16, #tpu.memory_space<vmem>>, vector<800x32xbf16>
    tpu.vector_store %arg4[%c0_6, %c0_7], %8 {strides = array<i32>} : memref<800x32xbf16, #tpu.memory_space<vmem>>, vector<800x32xbf16>,
    return
  }
  func.func @transform_0(%arg0: i32) -> (i32, i32) {
    %c0_i32 = arith.constant 0 : i32
    %c0_i32_0 = arith.constant 0 : i32
    return %arg0, %c0_i32 : i32, i32
  }
  func.func @transform_1(%arg0: i32) -> (i32, i32) {
    %c0_i32 = arith.constant 0 : i32
    %c0_i32_0 = arith.constant 0 : i32
    %c0_i32_1 = arith.constant 0 : i32
    return %c0_i32, %c0_i32_0 : i32, i32
  }
  func.func @transform_2(%arg0: i32) -> (i32, i32) {
    %c0_i32 = arith.constant 0 : i32
    %c0_i32_0 = arith.constant 0 : i32
    %c0_i32_1 = arith.constant 0 : i32
    return %c0_i32, %c0_i32_0 : i32, i32
  }
  func.func @transform_3(%arg0: i32) -> (i32, i32) {
    %c0_i32 = arith.constant 0 : i32
    %c0_i32_0 = arith.constant 0 : i32
    return %arg0, %c0_i32 : i32, i32
  }
}

module attributes {stable_mosaic.version = 11 : i64} {
  func.func @_mm_bias_relu_kernel(%arg0: i32, %arg1: memref<162x512xbf16, #tpu.memory_space<vmem>>, %arg2: memref<512x64xbf16, #tpu.memory_space<vmem>>, %arg3: memref<1x64xf32, #tpu.memory_space<vmem>>, %arg4: memref<162x64xbf16, #tpu.memory_space<vmem>>) attributes {dimension_semantics = [#tpu.dimension_semantics<parallel>], iteration_bounds = array<i64: 1>, scalar_prefetch = 0 : i64, scratch_operands = 0 : i64, tpu.core_type = #tpu.core_type<tc>, window_params = [{transform_indices = @transform_0, window_bounds = array<i64: 162, 512>}, {pipeline_mode = #tpu.pipeline_mode<synchronous>, transform_indices = @transform_1, window_bounds = array<i64: 512, 64>}, {pipeline_mode = #tpu.pipeline_mode<synchronous>, transform_indices = @transform_2, window_bounds = array<i64: 1, 64>}, {transform_indices = @transform_3, window_bounds = array<i64: 162, 64>}]} {
    %c0 = arith.constant 0 : index
    %c0_0 = arith.constant 0 : index
    %0 = vector.load %arg1[%c0, %c0_0] : memref<162x512xbf16, #tpu.memory_space<vmem>>, vector<162x512xbf16>
    %c0_1 = arith.constant 0 : index
    %c0_2 = arith.constant 0 : index
    %1 = vector.load %arg2[%c0_1, %c0_2] : memref<512x64xbf16, #tpu.memory_space<vmem>>, vector<512x64xbf16>
    %cst = arith.constant dense<0.000000e+00> : vector<162x64xf32>
    %2 = tpu.matmul %0, %1, %cst {dimension_numbers = #tpu.dot_dimension_numbers<[1], [0], [0], [1], [0, 0, 1, 1], [], []>} : vector<162x512xbf16>, vector<512x64xbf16>, vector<162x64xf32> -> vector<162x64xf32>
    %c0_3 = arith.constant 0 : index
    %c0_4 = arith.constant 0 : index
    %3 = vector.load %arg3[%c0_3, %c0_4] : memref<1x64xf32, #tpu.memory_space<vmem>>, vector<1x64xf32>
    %4 = vector.broadcast %3 : vector<1x64xf32> to vector<162x64xf32>
    %5 = arith.addf %2, %4 : vector<162x64xf32>
    %cst_5 = arith.constant 0.000000e+00 : f32
    %6 = vector.broadcast %cst_5 : f32 to vector<162x64xf32>
    %7 = arith.maximumf %5, %6 : vector<162x64xf32>
    %8 = arith.truncf %7 : vector<162x64xf32> to vector<162x64xbf16>
    %c0_6 = arith.constant 0 : index
    %c0_7 = arith.constant 0 : index
    %9 = vector.load %arg4[%c0_6, %c0_7] : memref<162x64xbf16, #tpu.memory_space<vmem>>, vector<162x64xbf16>
    tpu.vector_store %arg4[%c0_6, %c0_7], %8 {strides = array<i32>} : memref<162x64xbf16, #tpu.memory_space<vmem>>, vector<162x64xbf16>,
    return
  }
  func.func @transform_0(%arg0: i32) -> (i32, i32) {
    %c0_i32 = arith.constant 0 : i32
    %c0_i32_0 = arith.constant 0 : i32
    return %arg0, %c0_i32 : i32, i32
  }
  func.func @transform_1(%arg0: i32) -> (i32, i32) {
    %c0_i32 = arith.constant 0 : i32
    %c0_i32_0 = arith.constant 0 : i32
    %c0_i32_1 = arith.constant 0 : i32
    return %c0_i32, %c0_i32_0 : i32, i32
  }
  func.func @transform_2(%arg0: i32) -> (i32, i32) {
    %c0_i32 = arith.constant 0 : i32
    %c0_i32_0 = arith.constant 0 : i32
    %c0_i32_1 = arith.constant 0 : i32
    return %c0_i32, %c0_i32_0 : i32, i32
  }
  func.func @transform_3(%arg0: i32) -> (i32, i32) {
    %c0_i32 = arith.constant 0 : i32
    %c0_i32_0 = arith.constant 0 : i32
    return %arg0, %c0_i32 : i32, i32
  }
}

module attributes {stable_mosaic.version = 11 : i64} {
  func.func @_mm_bias_relu_kernel(%arg0: i32, %arg1: memref<98x576xbf16, #tpu.memory_space<vmem>>, %arg2: memref<576x64xbf16, #tpu.memory_space<vmem>>, %arg3: memref<1x64xf32, #tpu.memory_space<vmem>>, %arg4: memref<98x64xbf16, #tpu.memory_space<vmem>>) attributes {dimension_semantics = [#tpu.dimension_semantics<parallel>], iteration_bounds = array<i64: 1>, scalar_prefetch = 0 : i64, scratch_operands = 0 : i64, tpu.core_type = #tpu.core_type<tc>, window_params = [{transform_indices = @transform_0, window_bounds = array<i64: 98, 576>}, {pipeline_mode = #tpu.pipeline_mode<synchronous>, transform_indices = @transform_1, window_bounds = array<i64: 576, 64>}, {pipeline_mode = #tpu.pipeline_mode<synchronous>, transform_indices = @transform_2, window_bounds = array<i64: 1, 64>}, {transform_indices = @transform_3, window_bounds = array<i64: 98, 64>}]} {
    %c0 = arith.constant 0 : index
    %c0_0 = arith.constant 0 : index
    %0 = vector.load %arg1[%c0, %c0_0] : memref<98x576xbf16, #tpu.memory_space<vmem>>, vector<98x576xbf16>
    %c0_1 = arith.constant 0 : index
    %c0_2 = arith.constant 0 : index
    %1 = vector.load %arg2[%c0_1, %c0_2] : memref<576x64xbf16, #tpu.memory_space<vmem>>, vector<576x64xbf16>
    %cst = arith.constant dense<0.000000e+00> : vector<98x64xf32>
    %2 = tpu.matmul %0, %1, %cst {dimension_numbers = #tpu.dot_dimension_numbers<[1], [0], [0], [1], [0, 0, 1, 1], [], []>} : vector<98x576xbf16>, vector<576x64xbf16>, vector<98x64xf32> -> vector<98x64xf32>
    %c0_3 = arith.constant 0 : index
    %c0_4 = arith.constant 0 : index
    %3 = vector.load %arg3[%c0_3, %c0_4] : memref<1x64xf32, #tpu.memory_space<vmem>>, vector<1x64xf32>
    %4 = vector.broadcast %3 : vector<1x64xf32> to vector<98x64xf32>
    %5 = arith.addf %2, %4 : vector<98x64xf32>
    %cst_5 = arith.constant 0.000000e+00 : f32
    %6 = vector.broadcast %cst_5 : f32 to vector<98x64xf32>
    %7 = arith.maximumf %5, %6 : vector<98x64xf32>
    %8 = arith.truncf %7 : vector<98x64xf32> to vector<98x64xbf16>
    %c0_6 = arith.constant 0 : index
    %c0_7 = arith.constant 0 : index
    %9 = vector.load %arg4[%c0_6, %c0_7] : memref<98x64xbf16, #tpu.memory_space<vmem>>, vector<98x64xbf16>
    tpu.vector_store %arg4[%c0_6, %c0_7], %8 {strides = array<i32>} : memref<98x64xbf16, #tpu.memory_space<vmem>>, vector<98x64xbf16>,
    return
  }
  func.func @transform_0(%arg0: i32) -> (i32, i32) {
    %c0_i32 = arith.constant 0 : i32
    %c0_i32_0 = arith.constant 0 : i32
    return %arg0, %c0_i32 : i32, i32
  }
  func.func @transform_1(%arg0: i32) -> (i32, i32) {
    %c0_i32 = arith.constant 0 : i32
    %c0_i32_0 = arith.constant 0 : i32
    %c0_i32_1 = arith.constant 0 : i32
    return %c0_i32, %c0_i32_0 : i32, i32
  }
  func.func @transform_2(%arg0: i32) -> (i32, i32) {
    %c0_i32 = arith.constant 0 : i32
    %c0_i32_0 = arith.constant 0 : i32
    %c0_i32_1 = arith.constant 0 : i32
    return %c0_i32, %c0_i32_0 : i32, i32
  }
  func.func @transform_3(%arg0: i32) -> (i32, i32) {
    %c0_i32 = arith.constant 0 : i32
    %c0_i32_0 = arith.constant 0 : i32
    return %arg0, %c0_i32 : i32, i32
  }
}

module attributes {stable_mosaic.version = 11 : i64} {
  func.func @_head_kernel(%arg0: i32, %arg1: memref<2x3200xbf16, #tpu.memory_space<vmem>>, %arg2: memref<3200x512xbf16, #tpu.memory_space<vmem>>, %arg3: memref<1x512xf32, #tpu.memory_space<vmem>>, %arg4: memref<512x128xbf16, #tpu.memory_space<vmem>>, %arg5: memref<1x128xf32, #tpu.memory_space<vmem>>, %arg6: memref<2x128xf32, #tpu.memory_space<vmem>>) attributes {dimension_semantics = [#tpu.dimension_semantics<parallel>], iteration_bounds = array<i64: 1>, scalar_prefetch = 0 : i64, scratch_operands = 0 : i64, tpu.core_type = #tpu.core_type<tc>, window_params = [{transform_indices = @transform_0, window_bounds = array<i64: 2, 3200>}, {pipeline_mode = #tpu.pipeline_mode<synchronous>, transform_indices = @transform_1, window_bounds = array<i64: 3200, 512>}, {pipeline_mode = #tpu.pipeline_mode<synchronous>, transform_indices = @transform_2, window_bounds = array<i64: 1, 512>}, {pipeline_mode = #tpu.pipeline_mode<synchronous>, transform_indices = @transform_3, window_bounds = array<i64: 512, 128>}, {pipeline_mode = #tpu.pipeline_mode<synchronous>, transform_indices = @transform_4, window_bounds = array<i64: 1, 128>}, {transform_indices = @transform_5, window_bounds = array<i64: 2, 128>}]} {
    %c0 = arith.constant 0 : index
    %c0_0 = arith.constant 0 : index
    %0 = vector.load %arg1[%c0, %c0_0] : memref<2x3200xbf16, #tpu.memory_space<vmem>>, vector<2x3200xbf16>
    %c0_1 = arith.constant 0 : index
    %c0_2 = arith.constant 0 : index
    %1 = vector.load %arg2[%c0_1, %c0_2] : memref<3200x512xbf16, #tpu.memory_space<vmem>>, vector<3200x512xbf16>
    %cst = arith.constant dense<0.000000e+00> : vector<2x512xf32>
    %2 = tpu.matmul %0, %1, %cst {dimension_numbers = #tpu.dot_dimension_numbers<[1], [0], [0], [1], [0, 0, 1, 1], [], []>} : vector<2x3200xbf16>, vector<3200x512xbf16>, vector<2x512xf32> -> vector<2x512xf32>
    %c0_3 = arith.constant 0 : index
    %c0_4 = arith.constant 0 : index
    %3 = vector.load %arg3[%c0_3, %c0_4] : memref<1x512xf32, #tpu.memory_space<vmem>>, vector<1x512xf32>
    %4 = vector.broadcast %3 : vector<1x512xf32> to vector<2x512xf32>
    %5 = arith.addf %2, %4 : vector<2x512xf32>
    %cst_5 = arith.constant 0.000000e+00 : f32
    %6 = vector.broadcast %cst_5 : f32 to vector<2x512xf32>
    %7 = arith.maximumf %5, %6 : vector<2x512xf32>
    %8 = arith.truncf %7 : vector<2x512xf32> to vector<2x512xbf16>
    %c0_6 = arith.constant 0 : index
    %c0_7 = arith.constant 0 : index
    %9 = vector.load %arg4[%c0_6, %c0_7] : memref<512x128xbf16, #tpu.memory_space<vmem>>, vector<512x128xbf16>
    %cst_8 = arith.constant dense<0.000000e+00> : vector<2x128xf32>
    %10 = tpu.matmul %8, %9, %cst_8 {dimension_numbers = #tpu.dot_dimension_numbers<[1], [0], [0], [1], [0, 0, 1, 1], [], []>} : vector<2x512xbf16>, vector<512x128xbf16>, vector<2x128xf32> -> vector<2x128xf32>
    %c0_9 = arith.constant 0 : index
    %c0_10 = arith.constant 0 : index
    %11 = vector.load %arg5[%c0_9, %c0_10] : memref<1x128xf32, #tpu.memory_space<vmem>>, vector<1x128xf32>
    %12 = vector.broadcast %11 : vector<1x128xf32> to vector<2x128xf32>
    %13 = arith.addf %10, %12 : vector<2x128xf32>
    %c0_11 = arith.constant 0 : index
    %c0_12 = arith.constant 0 : index
    %14 = vector.load %arg6[%c0_11, %c0_12] : memref<2x128xf32, #tpu.memory_space<vmem>>, vector<2x128xf32>
    tpu.vector_store %arg6[%c0_11, %c0_12], %13 {strides = array<i32>} : memref<2x128xf32, #tpu.memory_space<vmem>>, vector<2x128xf32>,
    return
  }
  func.func @transform_0(%arg0: i32) -> (i32, i32) {
    %c0_i32 = arith.constant 0 : i32
    %c0_i32_0 = arith.constant 0 : i32
    return %arg0, %c0_i32 : i32, i32
  }
  func.func @transform_1(%arg0: i32) -> (i32, i32) {
    %c0_i32 = arith.constant 0 : i32
    %c0_i32_0 = arith.constant 0 : i32
    %c0_i32_1 = arith.constant 0 : i32
    return %c0_i32, %c0_i32_0 : i32, i32
  }
  func.func @transform_2(%arg0: i32) -> (i32, i32) {
    %c0_i32 = arith.constant 0 : i32
    %c0_i32_0 = arith.constant 0 : i32
    %c0_i32_1 = arith.constant 0 : i32
    return %c0_i32, %c0_i32_0 : i32, i32
  }
  func.func @transform_3(%arg0: i32) -> (i32, i32) {
    %c0_i32 = arith.constant 0 : i32
    %c0_i32_0 = arith.constant 0 : i32
    %c0_i32_1 = arith.constant 0 : i32
    return %c0_i32, %c0_i32_0 : i32, i32
  }
  func.func @transform_4(%arg0: i32) -> (i32, i32) {
    %c0_i32 = arith.constant 0 : i32
    %c0_i32_0 = arith.constant 0 : i32
    %c0_i32_1 = arith.constant 0 : i32
    return %c0_i32, %c0_i32_0 : i32, i32
  }
  func.func @transform_5(%arg0: i32) -> (i32, i32) {
    %c0_i32 = arith.constant 0 : i32
    %c0_i32_0 = arith.constant 0 : i32
    return %arg0, %c0_i32 : i32, i32
  }
}

</mosaic_0001>

<bundles_post_ra>
// kernel: actor_forward.4
= control target key start
LH: loop header
LB: loop body
LE: loop exit
PB: predicated region body
PF: predicated region fallthrough
CT: control target
= control target key end

     0   :  { %v2305_v0 = vmov 0   ;;  %vm1683_vm0 = vcmask 257024   ;;  %s3216_s1 = inlined_call_operand.vmem [shape: bf16[256,32], index: 1, kind: input, shape index: {}]   ;;  %s3217_s0 = inlined_call_operand.vmem [shape: bf16[800,256], index: 0, kind: input, shape index: {}]   ;;  %s3218_s2 = inlined_call_operand.vmem [shape: f32[1,32], index: 2, kind: input, shape index: {}]   ;;  %s3219_s3 = inlined_call_operand.vmem [shape: bf16[800,32], index: 3, kind: output, shape index: {}]  }
   0x1   :  { %750 = vmatprep.subr.bf16.mxu0 %v2305_v0  ;;  %2105 = vmatprep.subr.bf16.mxu1 %v2305_v0  ;;  %v2138_v1 = vld [vmem:[%s3216_s1] sm:$0xff]   ;;  %v2139_v2 = vld [vmem:[%s3216_s1 + $0x8] sm:$0xff]   ;;  %v2140_v3 = vld [vmem:[%s3216_s1 + $0x10] sm:$0xff]  }
   0x2   :  { %751 = vmatpush1.bf16.msra.mxu0 %v2138_v1  ;;  %2121 = vmatpush1.bf16.msra.mxu1 %v2138_v1  ;;  %v2141_v4 = vld [vmem:[%s3216_s1 + $0x18] sm:$0xff]   ;;  %v2142_v5 = vld [vmem:[%s3216_s1 + $0x20] sm:$0xff]   ;;  %v2143_v7 = vld [vmem:[%s3216_s1 + $0x28] sm:$0xff]  }
   0x3   :  { %752 = vmatprep.subr.bf16.mxu0 %v2305_v0  ;;  %2106 = vmatprep.subr.bf16.mxu1 %v2305_v0  ;;  %v2156_v6 = vld [vmem:[%s3217_s0 + $0x4] ss:$8 sps:$4 sm:$0xff]   ;;  %v2159_v8 = vld [vmem:[%s3217_s0 + $0x194] ss:$8 sps:$4 sm:$0xff]   ;;  %v2154_v19 = vld [vmem:[%s3217_s0] ss:$8 sps:$4 sm:$0xff]  }
   0x4   :  { %782 = vmatprep.mubr.bf16.mxu0 %v2156_v6  ;;  %982 = vmatprep.mubr.bf16.mxu1 %v2159_v8  ;;  %v2144_v9 = vld [vmem:[%s3216_s1 + $0x30] sm:$0xff]   ;;  %v2145_v10 = vld [vmem:[%s3216_s1 + $0x38] sm:$0xff]   ;;  %v2146_v11 = vld [vmem:[%s3216_s1 + $0x40] sm:$0xff]  }
   0x5   :  { %v2147_v12 = vld [vmem:[%s3216_s1 + $0x48] sm:$0xff]   ;;  %v2148_v13 = vld [vmem:[%s3216_s1 + $0x50] sm:$0xff]   ;;  %v2149_v14 = vld [vmem:[%s3216_s1 + $0x58] sm:$0xff]  }
   0x6   :  { %753 = vmatpush1.bf16.msra.mxu0 %v2139_v2  ;;  %2122 = vmatpush1.bf16.msra.mxu1 %v2139_v2  ;;  %v2150_v15 = vld [vmem:[%s3216_s1 + $0x60] sm:$0xff]   ;;  %v2151_v16 = vld [vmem:[%s3216_s1 + $0x68] sm:$0xff]   ;;  %v2152_v17 = vld [vmem:[%s3216_s1 + $0x70] sm:$0xff]  }
   0x7   :  { %754 = vmatprep.subr.bf16.mxu0 %v2305_v0  ;;  %2107 = vmatprep.subr.bf16.mxu1 %v2305_v0  ;;  %v2153_v18 = vld [vmem:[%s3216_s1 + $0x78] sm:$0xff]   ;;  %v2162_v22 = vld [vmem:[%s3217_s0 + $0x1a4] ss:$8 sps:$4 sm:$0xff]   ;;  %v2165_v24 = vld [vmem:[%s3217_s0 + $0x1a0] ss:$8 sps:$4 sm:$0xff]  }
   0x8   :  { %v2157_v20 = vld [vmem:[%s3217_s0 + $0x190] ss:$8 sps:$4 sm:$0xff]   ;;  %v2160_v21 = vld [vmem:[%s3217_s0 + $0x14] ss:$8 sps:$4 sm:$0xff]   ;;  %v2166_v25 = vld [vmem:[%s3217_s0 + $0x24] ss:$8 sps:$4 sm:$0xff]  }
   0x9   :  { %v2164_v23 = vld [vmem:[%s3217_s0 + $0x10] ss:$8 sps:$4 sm:$0xff]   ;;  %v2168_v26 = vld [vmem:[%s3217_s0 + $0x1b4] ss:$8 sps:$4 sm:$0xff]   ;;  %v2170_v27 = vld [vmem:[%s3217_s0 + $0x20] ss:$8 sps:$4 sm:$0xff]  }
   0xa   :  { %755 = vmatpush1.bf16.msra.mxu0 %v2140_v3  ;;  %2123 = vmatpush1.bf16.msra.mxu1 %v2140_v3  ;;  %v2171_v28 = vld [vmem:[%s3217_s0 + $0x1b0] ss:$8 sps:$4 sm:$0xff]   ;;  %v2172_v29 = vld [vmem:[%s3217_s0 + $0x34] ss:$8 sps:$4 sm:$0xff]   ;;  %v2174_v30 = vld [vmem:[%s3217_s0 + $0x1c4] ss:$8 sps:$4 sm:$0xff]  }
   0xb   :  { %756 = vmatprep.subr.bf16.mxu0 %v2305_v0  ;;  %2108 = vmatprep.subr.bf16.mxu1 %v2305_v0  ;;  %v2176_v31 = vld [vmem:[%s3217_s0 + $0x30] ss:$8 sps:$4 sm:$0xff]   ;;  %v2177_v32 = vld [vmem:[%s3217_s0 + $0x1c0] ss:$8 sps:$4 sm:$0xff]   ;;  %v2178_v33 = vld [vmem:[%s3217_s0 + $0x44] ss:$8 sps:$4 sm:$0xff]  }
   0xc   :  { %v2180_v34 = vld [vmem:[%s3217_s0 + $0x1d4] ss:$8 sps:$4 sm:$0xff]   ;;  %v2182_v35 = vld [vmem:[%s3217_s0 + $0x40] ss:$8 sps:$4 sm:$0xff]   ;;  %v2183_v36 = vld [vmem:[%s3217_s0 + $0x1d0] ss:$8 sps:$4 sm:$0xff]  }
   0xd   :  { %v2184_v37 = vld [vmem:[%s3217_s0 + $0x54] ss:$8 sps:$4 sm:$0xff]   ;;  %v2186_v38 = vld [vmem:[%s3217_s0 + $0x1e4] ss:$8 sps:$4 sm:$0xff]   ;;  %v2188_v39 = vld [vmem:[%s3217_s0 + $0x50] ss:$8 sps:$4 sm:$0xff]  }
   0xe   :  { %757 = vmatpush1.bf16.msra.mxu0 %v2141_v4  ;;  %2124 = vmatpush1.bf16.msra.mxu1 %v2141_v4  ;;  %v2189_v40 = vld [vmem:[%s3217_s0 + $0x1e0] ss:$8 sps:$4 sm:$0xff]   ;;  %v2190_v41 = vld [vmem:[%s3217_s0 + $0x64] ss:$8 sps:$4 sm:$0xff]   ;;  %v2192_v42 = vld [vmem:[%s3217_s0 + $0x1f4] ss:$8 sps:$4 sm:$0xff]  }
   0xf   :  { %758 = vmatprep.subr.bf16.mxu0 %v2305_v0  ;;  %2109 = vmatprep.subr.bf16.mxu1 %v2305_v0  ;;  %v2194_v43 = vld [vmem:[%s3217_s0 + $0x60] ss:$8 sps:$4 sm:$0xff]   ;;  %v2195_v44 = vld [vmem:[%s3217_s0 + $0x1f0] ss:$8 sps:$4 sm:$0xff]   ;;  %v2196_v45 = vld [vmem:[%s3217_s0 + $0x74] ss:$8 sps:$4 sm:$0xff]  }
  0x10   :  { %v2198_v46 = vld [vmem:[%s3217_s0 + $0x204] ss:$8 sps:$4 sm:$0xff]   ;;  %v2200_v47 = vld [vmem:[%s3217_s0 + $0x70] ss:$8 sps:$4 sm:$0xff]   ;;  %v2201_v48 = vld [vmem:[%s3217_s0 + $0x200] ss:$8 sps:$4 sm:$0xff]  }
  0x11   :  { %v2202_v49 = vld [vmem:[%s3217_s0 + $0x84] ss:$8 sps:$4 sm:$0xff]   ;;  %v2204_v50 = vld [vmem:[%s3217_s0 + $0x214] ss:$8 sps:$4 sm:$0xff]   ;;  %v2206_v51 = vld [vmem:[%s3217_s0 + $0x80] ss:$8 sps:$4 sm:$0xff]  }
  0x12   :  { %759 = vmatpush1.bf16.msra.mxu0 %v2142_v5  ;;  %2125 = vmatpush1.bf16.msra.mxu1 %v2142_v5  ;;  %v2207_v52 = vld [vmem:[%s3217_s0 + $0x210] ss:$8 sps:$4 sm:$0xff]   ;;  %v2208_v53 = vld [vmem:[%s3217_s0 + $0x94] ss:$8 sps:$4 sm:$0xff]   ;;  %v2210_v54 = vld [vmem:[%s3217_s0 + $0x224] ss:$8 sps:$4 sm:$0xff]  }
  0x13   :  { %760 = vmatprep.subr.bf16.mxu0 %v2305_v0  ;;  %2110 = vmatprep.subr.bf16.mxu1 %v2305_v0  ;;  %v2212_v55 = vld [vmem:[%s3217_s0 + $0x90] ss:$8 sps:$4 sm:$0xff]   ;;  %v2213_v56 = vld [vmem:[%s3217_s0 + $0x220] ss:$8 sps:$4 sm:$0xff]   ;;  %v2214_v57 = vld [vmem:[%s3217_s0 + $0xa4] ss:$8 sps:$4 sm:$0xff]  }
  0x14   :  { %v2216_v58 = vld [vmem:[%s3217_s0 + $0x234] ss:$8 sps:$4 sm:$0xff]   ;;  %v2218_v59 = vld [vmem:[%s3217_s0 + $0xa0] ss:$8 sps:$4 sm:$0xff]   ;;  %v2219_v60 = vld [vmem:[%s3217_s0 + $0x230] ss:$8 sps:$4 sm:$0xff]  }
  0x15   :  { %v2220_v61 = vld [vmem:[%s3217_s0 + $0xb4] ss:$8 sps:$4 sm:$0xff]   ;;  %v2222_v62 = vld [vmem:[%s3217_s0 + $0x244] ss:$8 sps:$4 sm:$0xff]   ;;  %v2224_v63 = vld [vmem:[%s3217_s0 + $0xb0] ss:$8 sps:$4 sm:$0xff]  }
  0x16   :  { %761 = vmatpush1.bf16.msra.mxu0 %v2143_v7  ;;  %2126 = vmatpush1.bf16.msra.mxu1 %v2143_v7  ;;  %v2226_v1 = vld [vmem:[%s3217_s0 + $0xc4] ss:$8 sps:$4 sm:$0xff]   ;;  %v2228_v2 = vld [vmem:[%s3217_s0 + $0x254] ss:$8 sps:$4 sm:$0xff]   ;;  %v2230_v3 = vld [vmem:[%s3217_s0 + $0xc0] ss:$8 sps:$4 sm:$0xff]  }
  0x17   :  { %762 = vmatprep.subr.bf16.mxu0 %v2305_v0  ;;  %2111 = vmatprep.subr.bf16.mxu1 %v2305_v0  ;;  %v2231_v4 = vld [vmem:[%s3217_s0 + $0x250] ss:$8 sps:$4 sm:$0xff]   ;;  %v2232_v5 = vld [vmem:[%s3217_s0 + $0xd4] ss:$8 sps:$4 sm:$0xff]   ;;  %v2234_v6 = vld [vmem:[%s3217_s0 + $0x264] ss:$8 sps:$4 sm:$0xff]  }
  0x18   :  { %v2236_v7 = vld [vmem:[%s3217_s0 + $0xd0] ss:$8 sps:$4 sm:$0xff]   ;;  %v2237_v8 = vld [vmem:[%s3217_s0 + $0x260] ss:$8 sps:$4 sm:$0xff]  }
  0x1a   :  { %763 = vmatpush1.bf16.msra.mxu0 %v2144_v9  ;;  %2127 = vmatpush1.bf16.msra.mxu1 %v2144_v9  ;;  %v2238_v9 = vld [vmem:[%s3217_s0 + $0xe4] ss:$8 sps:$4 sm:$0xff]  }
  0x1b   :  { %764 = vmatprep.subr.bf16.mxu0 %v2305_v0  ;;  %2112 = vmatprep.subr.bf16.mxu1 %v2305_v0 }
  0x1e   :  { %765 = vmatpush1.bf16.msra.mxu0 %v2145_v10  ;;  %2128 = vmatpush1.bf16.msra.mxu1 %v2145_v10  ;;  %v2240_v10 = vld [vmem:[%s3217_s0 + $0x274] ss:$8 sps:$4 sm:$0xff]  }
  0x1f   :  { %766 = vmatprep.subr.bf16.mxu0 %v2305_v0  ;;  %2113 = vmatprep.subr.bf16.mxu1 %v2305_v0 }
  0x22   :  { %767 = vmatpush1.bf16.msra.mxu0 %v2146_v11  ;;  %2129 = vmatpush1.bf16.msra.mxu1 %v2146_v11  ;;  %v2242_v11 = vld [vmem:[%s3217_s0 + $0xe0] ss:$8 sps:$4 sm:$0xff]  }
  0x23   :  { %768 = vmatprep.subr.bf16.mxu0 %v2305_v0  ;;  %2114 = vmatprep.subr.bf16.mxu1 %v2305_v0 }
  0x26   :  { %769 = vmatpush1.bf16.msra.mxu0 %v2147_v12  ;;  %2130 = vmatpush1.bf16.msra.mxu1 %v2147_v12  ;;  %v2243_v12 = vld [vmem:[%s3217_s0 + $0x270] ss:$8 sps:$4 sm:$0xff]  }
  0x27   :  { %770 = vmatprep.subr.bf16.mxu0 %v2305_v0  ;;  %2115 = vmatprep.subr.bf16.mxu1 %v2305_v0 }
  0x2a   :  { %771 = vmatpush1.bf16.msra.mxu0 %v2148_v13  ;;  %2131 = vmatpush1.bf16.msra.mxu1 %v2148_v13  ;;  %v2244_v13 = vld [vmem:[%s3217_s0 + $0xf4] ss:$8 sps:$4 sm:$0xff]  }
  0x2b   :  { %772 = vmatprep.subr.bf16.mxu0 %v2305_v0  ;;  %2116 = vmatprep.subr.bf16.mxu1 %v2305_v0 }
  0x2e   :  { %773 = vmatpush1.bf16.msra.mxu0 %v2149_v14  ;;  %2132 = vmatpush1.bf16.msra.mxu1 %v2149_v14  ;;  %v2246_v14 = vld [vmem:[%s3217_s0 + $0x284] ss:$8 sps:$4 sm:$0xff]  }
  0x2f   :  { %774 = vmatprep.subr.bf16.mxu0 %v2305_v0  ;;  %2117 = vmatprep.subr.bf16.mxu1 %v2305_v0 }
  0x32   :  { %775 = vmatpush1.bf16.msra.mxu0 %v2150_v15  ;;  %2133 = vmatpush1.bf16.msra.mxu1 %v2150_v15  ;;  %v2248_v15 = vld [vmem:[%s3217_s0 + $0xf0] ss:$8 sps:$4 sm:$0xff]  }
  0x33   :  { %776 = vmatprep.subr.bf16.mxu0 %v2305_v0  ;;  %2118 = vmatprep.subr.bf16.mxu1 %v2305_v0 }
  0x36   :  { %777 = vmatpush1.bf16.msra.mxu0 %v2151_v16  ;;  %2134 = vmatpush1.bf16.msra.mxu1 %v2151_v16  ;;  %v2249_v16 = vld [vmem:[%s3217_s0 + $0x280] ss:$8 sps:$4 sm:$0xff]  }
  0x37   :  { %778 = vmatprep.subr.bf16.mxu0 %v2305_v0  ;;  %2119 = vmatprep.subr.bf16.mxu1 %v2305_v0 }
  0x3a   :  { %779 = vmatpush1.bf16.msra.mxu0 %v2152_v17  ;;  %2135 = vmatpush1.bf16.msra.mxu1 %v2152_v17  ;;  %v2250_v17 = vld [vmem:[%s3217_s0 + $0x104] ss:$8 sps:$4 sm:$0xff]  }
  0x3b   :  { %780 = vmatprep.subr.bf16.mxu0 %v2305_v0  ;;  %2120 = vmatprep.subr.bf16.mxu1 %v2305_v0  ;;  %v2225_v0 = vld [vmem:[%s3217_s0 + $0x240] ss:$8 sps:$4 sm:$0xff]  }
  0x3e   :  { %781 = vmatpush1.bf16.msra.mxu0 %v2153_v18  ;;  %2136 = vmatpush1.bf16.msra.mxu1 %v2153_v18  ;;  %v2252_v18 = vld [vmem:[%s3217_s0 + $0x294] ss:$8 sps:$4 sm:$0xff]  }
  0x41   :  { %783 = vmatmul.mubr.bf16.vlgmr.msra.gmra.mrb[0].mxu0 %v2154_v19  ;;  %983 = vmatmul.mubr.bf16.vlgmr.msra.gmra.mrb[0].mxu1 %v2157_v20  ;;  %v2254_v19 = vld [vmem:[%s3217_s0 + $0x100] ss:$8 sps:$4 sm:$0xff]   ;;  %v2255_v20 = vld [vmem:[%s3217_s0 + $0x290] ss:$8 sps:$4 sm:$0xff]  }
  0x42   :  { %790 = vmatprep.mubr.bf16.mxu0 %v2160_v21  ;;  %990 = vmatprep.mubr.bf16.mxu1 %v2162_v22  ;;  %v2256_v21 = vld [vmem:[%s3217_s0 + $0x114] ss:$8 sps:$4 sm:$0xff]   ;;  %v2258_v22 = vld [vmem:[%s3217_s0 + $0x2a4] ss:$8 sps:$4 sm:$0xff]  }
  0x49   :  { %791 = vmatmul.mubr.bf16.gmra.mrb[4].mxu0 %v2164_v23  ;;  %991 = vmatmul.mubr.bf16.gmra.mrb[4].mxu1 %v2165_v24  ;;  %v2260_v23 = vld [vmem:[%s3217_s0 + $0x110] ss:$8 sps:$4 sm:$0xff]   ;;  %v2261_v24 = vld [vmem:[%s3217_s0 + $0x2a0] ss:$8 sps:$4 sm:$0xff]  }
  0x4a   :  { %798 = vmatprep.mubr.bf16.mxu0 %v2166_v25  ;;  %998 = vmatprep.mubr.bf16.mxu1 %v2168_v26  ;;  %v2262_v25 = vld [vmem:[%s3217_s0 + $0x124] ss:$8 sps:$4 sm:$0xff]   ;;  %v2264_v26 = vld [vmem:[%s3217_s0 + $0x2b4] ss:$8 sps:$4 sm:$0xff]  }
  0x51   :  { %799 = vmatmul.mubr.bf16.gmra.mrb[8].mxu0 %v2170_v27  ;;  %999 = vmatmul.mubr.bf16.gmra.mrb[8].mxu1 %v2171_v28  ;;  %v2266_v27 = vld [vmem:[%s3217_s0 + $0x120] ss:$8 sps:$4 sm:$0xff]   ;;  %v2267_v28 = vld [vmem:[%s3217_s0 + $0x2b0] ss:$8 sps:$4 sm:$0xff]  }
  0x52   :  { %806 = vmatprep.mubr.bf16.mxu0 %v2172_v29  ;;  %1006 = vmatprep.mubr.bf16.mxu1 %v2174_v30  ;;  %v2268_v29 = vld [vmem:[%s3217_s0 + $0x134] ss:$8 sps:$4 sm:$0xff]   ;;  %v2270_v30 = vld [vmem:[%s3217_s0 + $0x2c4] ss:$8 sps:$4 sm:$0xff]  }
  0x59   :  { %807 = vmatmul.mubr.bf16.gmra.mrb[12].mxu0 %v2176_v31  ;;  %1007 = vmatmul.mubr.bf16.gmra.mrb[12].mxu1 %v2177_v32  ;;  %v2272_v31 = vld [vmem:[%s3217_s0 + $0x130] ss:$8 sps:$4 sm:$0xff]   ;;  %v2273_v32 = vld [vmem:[%s3217_s0 + $0x2c0] ss:$8 sps:$4 sm:$0xff]  }
  0x5a   :  { %814 = vmatprep.mubr.bf16.mxu0 %v2178_v33  ;;  %1014 = vmatprep.mubr.bf16.mxu1 %v2180_v34  ;;  %v2274_v33 = vld [vmem:[%s3217_s0 + $0x144] ss:$8 sps:$4 sm:$0xff]   ;;  %v2276_v34 = vld [vmem:[%s3217_s0 + $0x2d4] ss:$8 sps:$4 sm:$0xff]  }
  0x61   :  { %815 = vmatmul.mubr.bf16.gmra.mrb[16].mxu0 %v2182_v35  ;;  %1015 = vmatmul.mubr.bf16.gmra.mrb[16].mxu1 %v2183_v36  ;;  %v2278_v35 = vld [vmem:[%s3217_s0 + $0x140] ss:$8 sps:$4 sm:$0xff]   ;;  %v2279_v36 = vld [vmem:[%s3217_s0 + $0x2d0] ss:$8 sps:$4 sm:$0xff]  }
  0x62   :  { %822 = vmatprep.mubr.bf16.mxu0 %v2184_v37  ;;  %1022 = vmatprep.mubr.bf16.mxu1 %v2186_v38  ;;  %v2280_v37 = vld [vmem:[%s3217_s0 + $0x154] ss:$8 sps:$4 sm:$0xff]   ;;  %v2282_v38 = vld [vmem:[%s3217_s0 + $0x2e4] ss:$8 sps:$4 sm:$0xff]  }
  0x69   :  { %823 = vmatmul.mubr.bf16.gmra.mrb[20].mxu0 %v2188_v39  ;;  %1023 = vmatmul.mubr.bf16.gmra.mrb[20].mxu1 %v2189_v40  ;;  %v2284_v39 = vld [vmem:[%s3217_s0 + $0x150] ss:$8 sps:$4 sm:$0xff]   ;;  %v2285_v40 = vld [vmem:[%s3217_s0 + $0x2e0] ss:$8 sps:$4 sm:$0xff]  }
  0x6a   :  { %830 = vmatprep.mubr.bf16.mxu0 %v2190_v41  ;;  %1030 = vmatprep.mubr.bf16.mxu1 %v2192_v42  ;;  %v2286_v41 = vld [vmem:[%s3217_s0 + $0x164] ss:$8 sps:$4 sm:$0xff]   ;;  %v2288_v42 = vld [vmem:[%s3217_s0 + $0x2f4] ss:$8 sps:$4 sm:$0xff]  }
  0x71   :  { %831 = vmatmul.mubr.bf16.gmra.mrb[24].mxu0 %v2194_v43  ;;  %1031 = vmatmul.mubr.bf16.gmra.mrb[24].mxu1 %v2195_v44  ;;  %v2290_v43 = vld [vmem:[%s3217_s0 + $0x160] ss:$8 sps:$4 sm:$0xff]   ;;  %v2291_v44 = vld [vmem:[%s3217_s0 + $0x2f0] ss:$8 sps:$4 sm:$0xff]  }
  0x72   :  { %838 = vmatprep.mubr.bf16.mxu0 %v2196_v45  ;;  %1038 = vmatprep.mubr.bf16.mxu1 %v2198_v46  ;;  %v2292_v45 = vld [vmem:[%s3217_s0 + $0x174] ss:$8 sps:$4 sm:$0xff]   ;;  %v2294_v46 = vld [vmem:[%s3217_s0 + $0x304] ss:$8 sps:$4 sm:$0xff]  }
  0x79   :  { %839 = vmatmul.mubr.bf16.gmra.mrb[28].mxu0 %v2200_v47  ;;  %1039 = vmatmul.mubr.bf16.gmra.mrb[28].mxu1 %v2201_v48  ;;  %v2296_v47 = vld [vmem:[%s3217_s0 + $0x170] ss:$8 sps:$4 sm:$0xff]   ;;  %v2297_v48 = vld [vmem:[%s3217_s0 + $0x300] ss:$8 sps:$4 sm:$0xff]  }
  0x7a   :  { %846 = vmatprep.mubr.bf16.mxu0 %v2202_v49  ;;  %1046 = vmatprep.mubr.bf16.mxu1 %v2204_v50  ;;  %v2298_v49 = vld [vmem:[%s3217_s0 + $0x184] ss:$8 sps:$4 sm:$0xff]   ;;  %v2300_v50 = vld [vmem:[%s3217_s0 + $0x314] ss:$8 sps:$4 sm:$0xff]  }
  0x81   :  { %847 = vmatmul.mubr.bf16.gmra.mrb[32].mxu0 %v2206_v51  ;;  %1047 = vmatmul.mubr.bf16.gmra.mrb[32].mxu1 %v2207_v52  ;;  %v2302_v51 = vld [vmem:[%s3217_s0 + $0x180] ss:$8 sps:$4 sm:$0xff]   ;;  %v2303_v52 = vld [vmem:[%s3217_s0 + $0x310] ss:$8 sps:$4 sm:$0xff]  }
  0x82   :  { %854 = vmatprep.mubr.bf16.mxu0 %v2208_v53  ;;  %1054 = vmatprep.mubr.bf16.mxu1 %v2210_v54  ;;  %v2709_v53 = vld [vmem:[%s3218_s2] ss:$0 sm:$0xff] }
  0x89   :  { %855 = vmatmul.mubr.bf16.gmra.mrb[36].mxu0 %v2212_v55  ;;  %1055 = vmatmul.mubr.bf16.gmra.mrb[36].mxu1 %v2213_v56 }
  0x8a   :  { %862 = vmatprep.mubr.bf16.mxu0 %v2214_v57  ;;  %1062 = vmatprep.mubr.bf16.mxu1 %v2216_v58 }
  0x91   :  { %863 = vmatmul.mubr.bf16.gmra.mrb[40].mxu0 %v2218_v59  ;;  %1063 = vmatmul.mubr.bf16.gmra.mrb[40].mxu1 %v2219_v60 }
  0x92   :  { %870 = vmatprep.mubr.bf16.mxu0 %v2220_v61  ;;  %1070 = vmatprep.mubr.bf16.mxu1 %v2222_v62 }
  0x99   :  { %871 = vmatmul.mubr.bf16.gmra.mrb[44].mxu0 %v2224_v63  ;;  %1071 = vmatmul.mubr.bf16.gmra.mrb[44].mxu1 %v2225_v0 }
  0x9a   :  { %878 = vmatprep.mubr.bf16.mxu0 %v2226_v1  ;;  %1078 = vmatprep.mubr.bf16.mxu1 %v2228_v2 }
  0xa1   :  { %879 = vmatmul.mubr.bf16.gmra.mrb[48].mxu0 %v2230_v3  ;;  %1079 = vmatmul.mubr.bf16.gmra.mrb[48].mxu1 %v2231_v4 }
  0xa2   :  { %886 = vmatprep.mubr.bf16.mxu0 %v2232_v5  ;;  %1086 = vmatprep.mubr.bf16.mxu1 %v2234_v6 }
  0xa9   :  { %887 = vmatmul.mubr.bf16.gmra.mrb[52].mxu0 %v2236_v7  ;;  %1087 = vmatmul.mubr.bf16.gmra.mrb[52].mxu1 %v2237_v8 }
  0xaa   :  { %894 = vmatprep.mubr.bf16.mxu0 %v2238_v9  ;;  %1094 = vmatprep.mubr.bf16.mxu1 %v2240_v10 }
  0xb1   :  { %895 = vmatmul.mubr.bf16.gmra.mrb[56].mxu0 %v2242_v11  ;;  %1095 = vmatmul.mubr.bf16.gmra.mrb[56].mxu1 %v2243_v12 }
  0xb2   :  { %902 = vmatprep.mubr.bf16.mxu0 %v2244_v13  ;;  %1102 = vmatprep.mubr.bf16.mxu1 %v2246_v14 }
  0xb9   :  { %903 = vmatmul.mubr.bf16.gmra.mrb[60].mxu0 %v2248_v15  ;;  %1103 = vmatmul.mubr.bf16.gmra.mrb[60].mxu1 %v2249_v16 }
  0xba   :  { %910 = vmatprep.mubr.bf16.mxu0 %v2250_v17  ;;  %1110 = vmatprep.mubr.bf16.mxu1 %v2252_v18 }
  0xc1   :  { %911 = vmatmul.mubr.bf16.gmra.mrb[64].mxu0 %v2254_v19  ;;  %1111 = vmatmul.mubr.bf16.gmra.mrb[64].mxu1 %v2255_v20 }
  0xc2   :  { %918 = vmatprep.mubr.bf16.mxu0 %v2256_v21  ;;  %1118 = vmatprep.mubr.bf16.mxu1 %v2258_v22 }
  0xc9   :  { %919 = vmatmul.mubr.bf16.gmra.mrb[68].mxu0 %v2260_v23  ;;  %1119 = vmatmul.mubr.bf16.gmra.mrb[68].mxu1 %v2261_v24 }
  0xca   :  { %926 = vmatprep.mubr.bf16.mxu0 %v2262_v25  ;;  %1126 = vmatprep.mubr.bf16.mxu1 %v2264_v26 }
  0xd1   :  { %927 = vmatmul.mubr.bf16.gmra.mrb[72].mxu0 %v2266_v27  ;;  %1127 = vmatmul.mubr.bf16.gmra.mrb[72].mxu1 %v2267_v28 }
  0xd2   :  { %934 = vmatprep.mubr.bf16.mxu0 %v2268_v29  ;;  %1134 = vmatprep.mubr.bf16.mxu1 %v2270_v30 }
  0xd9   :  { %935 = vmatmul.mubr.bf16.gmra.mrb[76].mxu0 %v2272_v31  ;;  %1135 = vmatmul.mubr.bf16.gmra.mrb[76].mxu1 %v2273_v32 }
  0xda   :  { %942 = vmatprep.mubr.bf16.mxu0 %v2274_v33  ;;  %1142 = vmatprep.mubr.bf16.mxu1 %v2276_v34 }
  0xe1   :  { %943 = vmatmul.mubr.bf16.gmra.mrb[80].mxu0 %v2278_v35  ;;  %1143 = vmatmul.mubr.bf16.gmra.mrb[80].mxu1 %v2279_v36 }
  0xe2   :  { %950 = vmatprep.mubr.bf16.mxu0 %v2280_v37  ;;  %1150 = vmatprep.mubr.bf16.mxu1 %v2282_v38 }
  0xe9   :  { %951 = vmatmul.mubr.bf16.gmra.mrb[84].mxu0 %v2284_v39  ;;  %1151 = vmatmul.mubr.bf16.gmra.mrb[84].mxu1 %v2285_v40 }
  0xea   :  { %958 = vmatprep.mubr.bf16.mxu0 %v2286_v41  ;;  %1158 = vmatprep.mubr.bf16.mxu1 %v2288_v42 }
  0xf1   :  { %959 = vmatmul.mubr.bf16.gmra.mrb[88].mxu0 %v2290_v43  ;;  %1159 = vmatmul.mubr.bf16.gmra.mrb[88].mxu1 %v2291_v44 }
  0xf2   :  { %966 = vmatprep.mubr.bf16.mxu0 %v2292_v45  ;;  %1166 = vmatprep.mubr.bf16.mxu1 %v2294_v46 }
  0xf9   :  { %967 = vmatmul.mubr.bf16.gmra.mrb[92].mxu0 %v2296_v47  ;;  %1167 = vmatmul.mubr.bf16.gmra.mrb[92].mxu1 %v2297_v48 }
  0xfa   :  { %974 = vmatprep.mubr.bf16.mxu0 %v2298_v49  ;;  %1174 = vmatprep.mubr.bf16.mxu1 %v2300_v50 }
 0x101   :  { %975 = vmatmul.mubr.bf16.gmra.mrb[96].mxu0 %v2302_v51  ;;  %1175 = vmatmul.mubr.bf16.gmra.mrb[96].mxu1 %v2303_v52 }
 0x114   :  { %v784_v54 = vpop.f32.mrb[0].mxu0  ;;  %v984_v55 = vpop.f32.mrb[0].mxu1 }
 0x115   :  { %v785_v56 = vadd.f32 %v2709_v53, %v784_v54  ;;  %v985_v57 = vadd.f32 %v2709_v53, %v984_v55  ;;  %v786_v58 = vpop.f32.mrb[1].mxu0  ;;  %v986_v59 = vpop.f32.mrb[1].mxu1 }
 0x116   :  { %v787_v60 = vpop.f32.mrb[2].mxu0  ;;  %v987_v61 = vpop.f32.mrb[2].mxu1 }
 0x117   :  { %v1183_v62 = vmax.f32 %v785_v56, 0.0  ;;  %v1233_v63 = vmax.f32 %v985_v57, 0.0  ;;  %v788_v0 = vadd.f32 %v2709_v53, %v787_v60  ;;  %v988_v1 = vadd.f32 %v2709_v53, %v987_v61  ;;  %v789_v2 = vpop.f32.mrb[3].mxu0  ;;  %v989_v3 = vpop.f32.mrb[3].mxu1 }
 0x119   :  { %v2005_v4 = vpack.c.bf16 %v1183_v62, %v1183_v62  ;;  %v2055_v5 = vpack.c.bf16 %v1233_v63, %v1233_v63  ;;  %v1184_v6 = vmax.f32 %v788_v0, 0.0  ;;  %v1234_v7 = vmax.f32 %v988_v1, 0.0 }
 0x11b   :  { %1684 = vst.msk [vmem:[%s3219_s3] sm:$0xf] %vm1683_vm0, %v2005_v4  ;;  %1734 = vst.msk [vmem:[%s3219_s3 + $0xc8] sm:$0xf] %vm1683_vm0, %v2055_v5  ;;  %v2006_v8 = vpack.c.bf16 %v1184_v6, %v1184_v6  ;;  %v2056_v9 = vpack.c.bf16 %v1234_v7, %v1234_v7 }
 0x11c   :  { %v792_v10 = vpop.f32.mrb[4].mxu0  ;;  %v992_v11 = vpop.f32.mrb[4].mxu1 }
 0x11d   :  { %1685 = vst.msk [vmem:[%s3219_s3 + $0x4] sm:$0xf] %vm1683_vm0, %v2006_v8  ;;  %1735 = vst.msk [vmem:[%s3219_s3 + $0xcc] sm:$0xf] %vm1683_vm0, %v2056_v9  ;;  %v793_v12 = vadd.f32 %v2709_v53, %v792_v10  ;;  %v993_v13 = vadd.f32 %v2709_v53, %v992_v11  ;;  %v794_v14 = vpop.f32.mrb[5].mxu0  ;;  %v994_v15 = vpop.f32.mrb[5].mxu1 }
 0x11e   :  { %v795_v16 = vpop.f32.mrb[6].mxu0  ;;  %v995_v17 = vpop.f32.mrb[6].mxu1 }
 0x11f   :  { %v1185_v18 = vmax.f32 %v793_v12, 0.0  ;;  %v1235_v19 = vmax.f32 %v993_v13, 0.0  ;;  %v796_v20 = vadd.f32 %v2709_v53, %v795_v16  ;;  %v996_v21 = vadd.f32 %v2709_v53, %v995_v17  ;;  %v797_v22 = vpop.f32.mrb[7].mxu0  ;;  %v997_v23 = vpop.f32.mrb[7].mxu1 }
 0x121   :  { %v2007_v24 = vpack.c.bf16 %v1185_v18, %v1185_v18  ;;  %v2057_v25 = vpack.c.bf16 %v1235_v19, %v1235_v19  ;;  %v1186_v26 = vmax.f32 %v796_v20, 0.0  ;;  %v1236_v27 = vmax.f32 %v996_v21, 0.0 }
 0x123   :  { %1686 = vst.msk [vmem:[%s3219_s3 + $0x8] sm:$0xf] %vm1683_vm0, %v2007_v24  ;;  %1736 = vst.msk [vmem:[%s3219_s3 + $0xd0] sm:$0xf] %vm1683_vm0, %v2057_v25  ;;  %v2008_v28 = vpack.c.bf16 %v1186_v26, %v1186_v26  ;;  %v2058_v29 = vpack.c.bf16 %v1236_v27, %v1236_v27 }
 0x124   :  { %v800_v30 = vpop.f32.mrb[8].mxu0  ;;  %v1000_v31 = vpop.f32.mrb[8].mxu1 }
 0x125   :  { %1687 = vst.msk [vmem:[%s3219_s3 + $0xc] sm:$0xf] %vm1683_vm0, %v2008_v28  ;;  %1737 = vst.msk [vmem:[%s3219_s3 + $0xd4] sm:$0xf] %vm1683_vm0, %v2058_v29  ;;  %v801_v32 = vadd.f32 %v2709_v53, %v800_v30  ;;  %v1001_v33 = vadd.f32 %v2709_v53, %v1000_v31  ;;  %v802_v34 = vpop.f32.mrb[9].mxu0  ;;  %v1002_v35 = vpop.f32.mrb[9].mxu1 }
 0x126   :  { %v803_v36 = vpop.f32.mrb[10].mxu0  ;;  %v1003_v37 = vpop.f32.mrb[10].mxu1 }
 0x127   :  { %v1187_v38 = vmax.f32 %v801_v32, 0.0  ;;  %v1237_v39 = vmax.f32 %v1001_v33, 0.0  ;;  %v804_v40 = vadd.f32 %v2709_v53, %v803_v36  ;;  %v1004_v41 = vadd.f32 %v2709_v53, %v1003_v37  ;;  %v805_v42 = vpop.f32.mrb[11].mxu0  ;;  %v1005_v43 = vpop.f32.mrb[11].mxu1 }
 0x129   :  { %v2009_v44 = vpack.c.bf16 %v1187_v38, %v1187_v38  ;;  %v2059_v45 = vpack.c.bf16 %v1237_v39, %v1237_v39  ;;  %v1188_v46 = vmax.f32 %v804_v40, 0.0  ;;  %v1238_v47 = vmax.f32 %v1004_v41, 0.0 }
 0x12b   :  { %1688 = vst.msk [vmem:[%s3219_s3 + $0x10] sm:$0xf] %vm1683_vm0, %v2009_v44  ;;  %1738 = vst.msk [vmem:[%s3219_s3 + $0xd8] sm:$0xf] %vm1683_vm0, %v2059_v45  ;;  %v2010_v48 = vpack.c.bf16 %v1188_v46, %v1188_v46  ;;  %v2060_v49 = vpack.c.bf16 %v1238_v47, %v1238_v47 }
 0x12c   :  { %v808_v50 = vpop.f32.mrb[12].mxu0  ;;  %v1008_v51 = vpop.f32.mrb[12].mxu1 }
 0x12d   :  { %1689 = vst.msk [vmem:[%s3219_s3 + $0x14] sm:$0xf] %vm1683_vm0, %v2010_v48  ;;  %1739 = vst.msk [vmem:[%s3219_s3 + $0xdc] sm:$0xf] %vm1683_vm0, %v2060_v49  ;;  %v809_v52 = vadd.f32 %v2709_v53, %v808_v50  ;;  %v1009_v54 = vadd.f32 %v2709_v53, %v1008_v51  ;;  %v810_v55 = vpop.f32.mrb[13].mxu0  ;;  %v1010_v56 = vpop.f32.mrb[13].mxu1 }
 0x12e   :  { %v811_v57 = vpop.f32.mrb[14].mxu0  ;;  %v1011_v58 = vpop.f32.mrb[14].mxu1 }
 0x12f   :  { %v1189_v59 = vmax.f32 %v809_v52, 0.0  ;;  %v1239_v60 = vmax.f32 %v1009_v54, 0.0  ;;  %v812_v61 = vadd.f32 %v2709_v53, %v811_v57  ;;  %v1012_v62 = vadd.f32 %v2709_v53, %v1011_v58  ;;  %v813_v63 = vpop.f32.mrb[15].mxu0  ;;  %v1013_v0 = vpop.f32.mrb[15].mxu1 }
 0x131   :  { %v2011_v1 = vpack.c.bf16 %v1189_v59, %v1189_v59  ;;  %v2061_v2 = vpack.c.bf16 %v1239_v60, %v1239_v60  ;;  %v1190_v3 = vmax.f32 %v812_v61, 0.0  ;;  %v1240_v4 = vmax.f32 %v1012_v62, 0.0 }
 0x133   :  { %1690 = vst.msk [vmem:[%s3219_s3 + $0x18] sm:$0xf] %vm1683_vm0, %v2011_v1  ;;  %1740 = vst.msk [vmem:[%s3219_s3 + $0xe0] sm:$0xf] %vm1683_vm0, %v2061_v2  ;;  %v2012_v5 = vpack.c.bf16 %v1190_v3, %v1190_v3  ;;  %v2062_v6 = vpack.c.bf16 %v1240_v4, %v1240_v4 }
 0x134   :  { %v816_v7 = vpop.f32.mrb[16].mxu0  ;;  %v1016_v8 = vpop.f32.mrb[16].mxu1 }
 0x135   :  { %1691 = vst.msk [vmem:[%s3219_s3 + $0x1c] sm:$0xf] %vm1683_vm0, %v2012_v5  ;;  %1741 = vst.msk [vmem:[%s3219_s3 + $0xe4] sm:$0xf] %vm1683_vm0, %v2062_v6  ;;  %v817_v9 = vadd.f32 %v2709_v53, %v816_v7  ;;  %v1017_v10 = vadd.f32 %v2709_v53, %v1016_v8  ;;  %v818_v11 = vpop.f32.mrb[17].mxu0  ;;  %v1018_v12 = vpop.f32.mrb[17].mxu1 }
 0x136   :  { %v819_v13 = vpop.f32.mrb[18].mxu0  ;;  %v1019_v14 = vpop.f32.mrb[18].mxu1 }
 0x137   :  { %v1191_v15 = vmax.f32 %v817_v9, 0.0  ;;  %v1241_v16 = vmax.f32 %v1017_v10, 0.0  ;;  %v820_v17 = vadd.f32 %v2709_v53, %v819_v13  ;;  %v1020_v18 = vadd.f32 %v2709_v53, %v1019_v14  ;;  %v821_v19 = vpop.f32.mrb[19].mxu0  ;;  %v1021_v20 = vpop.f32.mrb[19].mxu1 }
 0x139   :  { %v2013_v21 = vpack.c.bf16 %v1191_v15, %v1191_v15  ;;  %v2063_v22 = vpack.c.bf16 %v1241_v16, %v1241_v16  ;;  %v1192_v23 = vmax.f32 %v820_v17, 0.0  ;;  %v1242_v24 = vmax.f32 %v1020_v18, 0.0 }
 0x13b   :  { %1692 = vst.msk [vmem:[%s3219_s3 + $0x20] sm:$0xf] %vm1683_vm0, %v2013_v21  ;;  %1742 = vst.msk [vmem:[%s3219_s3 + $0xe8] sm:$0xf] %vm1683_vm0, %v2063_v22  ;;  %v2014_v25 = vpack.c.bf16 %v1192_v23, %v1192_v23  ;;  %v2064_v26 = vpack.c.bf16 %v1242_v24, %v1242_v24 }
 0x13c   :  { %v824_v27 = vpop.f32.mrb[20].mxu0  ;;  %v1024_v28 = vpop.f32.mrb[20].mxu1 }
 0x13d   :  { %1693 = vst.msk [vmem:[%s3219_s3 + $0x24] sm:$0xf] %vm1683_vm0, %v2014_v25  ;;  %1743 = vst.msk [vmem:[%s3219_s3 + $0xec] sm:$0xf] %vm1683_vm0, %v2064_v26  ;;  %v825_v29 = vadd.f32 %v2709_v53, %v824_v27  ;;  %v1025_v30 = vadd.f32 %v2709_v53, %v1024_v28  ;;  %v826_v31 = vpop.f32.mrb[21].mxu0  ;;  %v1026_v32 = vpop.f32.mrb[21].mxu1 }
 0x13e   :  { %v827_v33 = vpop.f32.mrb[22].mxu0  ;;  %v1027_v34 = vpop.f32.mrb[22].mxu1 }
 0x13f   :  { %v1193_v35 = vmax.f32 %v825_v29, 0.0  ;;  %v1243_v36 = vmax.f32 %v1025_v30, 0.0  ;;  %v828_v37 = vadd.f32 %v2709_v53, %v827_v33  ;;  %v1028_v38 = vadd.f32 %v2709_v53, %v1027_v34  ;;  %v829_v39 = vpop.f32.mrb[23].mxu0  ;;  %v1029_v40 = vpop.f32.mrb[23].mxu1 }
 0x141   :  { %v2015_v41 = vpack.c.bf16 %v1193_v35, %v1193_v35  ;;  %v2065_v42 = vpack.c.bf16 %v1243_v36, %v1243_v36  ;;  %v1194_v43 = vmax.f32 %v828_v37, 0.0  ;;  %v1244_v44 = vmax.f32 %v1028_v38, 0.0 }
 0x143   :  { %1694 = vst.msk [vmem:[%s3219_s3 + $0x28] sm:$0xf] %vm1683_vm0, %v2015_v41  ;;  %1744 = vst.msk [vmem:[%s3219_s3 + $0xf0] sm:$0xf] %vm1683_vm0, %v2065_v42  ;;  %v2016_v45 = vpack.c.bf16 %v1194_v43, %v1194_v43  ;;  %v2066_v46 = vpack.c.bf16 %v1244_v44, %v1244_v44 }
 0x144   :  { %v832_v47 = vpop.f32.mrb[24].mxu0  ;;  %v1032_v48 = vpop.f32.mrb[24].mxu1 }
 0x145   :  { %1695 = vst.msk [vmem:[%s3219_s3 + $0x2c] sm:$0xf] %vm1683_vm0, %v2016_v45  ;;  %1745 = vst.msk [vmem:[%s3219_s3 + $0xf4] sm:$0xf] %vm1683_vm0, %v2066_v46  ;;  %v833_v49 = vadd.f32 %v2709_v53, %v832_v47  ;;  %v1033_v50 = vadd.f32 %v2709_v53, %v1032_v48  ;;  %v834_v51 = vpop.f32.mrb[25].mxu0  ;;  %v1034_v52 = vpop.f32.mrb[25].mxu1 }
 0x146   :  { %v835_v54 = vpop.f32.mrb[26].mxu0  ;;  %v1035_v55 = vpop.f32.mrb[26].mxu1 }
 0x147   :  { %v1195_v56 = vmax.f32 %v833_v49, 0.0  ;;  %v1245_v57 = vmax.f32 %v1033_v50, 0.0  ;;  %v836_v58 = vadd.f32 %v2709_v53, %v835_v54  ;;  %v1036_v59 = vadd.f32 %v2709_v53, %v1035_v55  ;;  %v837_v60 = vpop.f32.mrb[27].mxu0  ;;  %v1037_v61 = vpop.f32.mrb[27].mxu1 }
 0x149   :  { %v2017_v62 = vpack.c.bf16 %v1195_v56, %v1195_v56  ;;  %v2067_v63 = vpack.c.bf16 %v1245_v57, %v1245_v57  ;;  %v1196_v0 = vmax.f32 %v836_v58, 0.0  ;;  %v1246_v1 = vmax.f32 %v1036_v59, 0.0 }
 0x14b   :  { %1696 = vst.msk [vmem:[%s3219_s3 + $0x30] sm:$0xf] %vm1683_vm0, %v2017_v62  ;;  %1746 = vst.msk [vmem:[%s3219_s3 + $0xf8] sm:$0xf] %vm1683_vm0, %v2067_v63  ;;  %v2018_v2 = vpack.c.bf16 %v1196_v0, %v1196_v0  ;;  %v2068_v3 = vpack.c.bf16 %v1246_v1, %v1246_v1 }
 0x14c   :  { %v840_v4 = vpop.f32.mrb[28].mxu0  ;;  %v1040_v5 = vpop.f32.mrb[28].mxu1 }
 0x14d   :  { %1697 = vst.msk [vmem:[%s3219_s3 + $0x34] sm:$0xf] %vm1683_vm0, %v2018_v2  ;;  %1747 = vst.msk [vmem:[%s3219_s3 + $0xfc] sm:$0xf] %vm1683_vm0, %v2068_v3  ;;  %v841_v6 = vadd.f32 %v2709_v53, %v840_v4  ;;  %v1041_v7 = vadd.f32 %v2709_v53, %v1040_v5  ;;  %v842_v8 = vpop.f32.mrb[29].mxu0  ;;  %v1042_v9 = vpop.f32.mrb[29].mxu1 }
 0x14e   :  { %v843_v10 = vpop.f32.mrb[30].mxu0  ;;  %v1043_v11 = vpop.f32.mrb[30].mxu1 }
 0x14f   :  { %v1197_v12 = vmax.f32 %v841_v6, 0.0  ;;  %v1247_v13 = vmax.f32 %v1041_v7, 0.0  ;;  %v844_v14 = vadd.f32 %v2709_v53, %v843_v10  ;;  %v1044_v15 = vadd.f32 %v2709_v53, %v1043_v11  ;;  %v845_v16 = vpop.f32.mrb[31].mxu0  ;;  %v1045_v17 = vpop.f32.mrb[31].mxu1 }
 0x151   :  { %v2019_v18 = vpack.c.bf16 %v1197_v12, %v1197_v12  ;;  %v2069_v19 = vpack.c.bf16 %v1247_v13, %v1247_v13  ;;  %v1198_v20 = vmax.f32 %v844_v14, 0.0  ;;  %v1248_v21 = vmax.f32 %v1044_v15, 0.0 }
 0x153   :  { %1698 = vst.msk [vmem:[%s3219_s3 + $0x38] sm:$0xf] %vm1683_vm0, %v2019_v18  ;;  %1748 = vst.msk [vmem:[%s3219_s3 + $0x100] sm:$0xf] %vm1683_vm0, %v2069_v19  ;;  %v2020_v22 = vpack.c.bf16 %v1198_v20, %v1198_v20  ;;  %v2070_v23 = vpack.c.bf16 %v1248_v21, %v1248_v21 }
 0x154   :  { %v848_v24 = vpop.f32.mrb[32].mxu0  ;;  %v1048_v25 = vpop.f32.mrb[32].mxu1 }
 0x155   :  { %1699 = vst.msk [vmem:[%s3219_s3 + $0x3c] sm:$0xf] %vm1683_vm0, %v2020_v22  ;;  %1749 = vst.msk [vmem:[%s3219_s3 + $0x104] sm:$0xf] %vm1683_vm0, %v2070_v23  ;;  %v849_v26 = vadd.f32 %v2709_v53, %v848_v24  ;;  %v1049_v27 = vadd.f32 %v2709_v53, %v1048_v25  ;;  %v850_v28 = vpop.f32.mrb[33].mxu0  ;;  %v1050_v29 = vpop.f32.mrb[33].mxu1 }
 0x156   :  { %v851_v30 = vpop.f32.mrb[34].mxu0  ;;  %v1051_v31 = vpop.f32.mrb[34].mxu1 }
 0x157   :  { %v1199_v32 = vmax.f32 %v849_v26, 0.0  ;;  %v1249_v33 = vmax.f32 %v1049_v27, 0.0  ;;  %v852_v34 = vadd.f32 %v2709_v53, %v851_v30  ;;  %v1052_v35 = vadd.f32 %v2709_v53, %v1051_v31  ;;  %v853_v36 = vpop.f32.mrb[35].mxu0  ;;  %v1053_v37 = vpop.f32.mrb[35].mxu1 }
 0x159   :  { %v2021_v38 = vpack.c.bf16 %v1199_v32, %v1199_v32  ;;  %v2071_v39 = vpack.c.bf16 %v1249_v33, %v1249_v33  ;;  %v1200_v40 = vmax.f32 %v852_v34, 0.0  ;;  %v1250_v41 = vmax.f32 %v1052_v35, 0.0 }
 0x15b   :  { %1700 = vst.msk [vmem:[%s3219_s3 + $0x40] sm:$0xf] %vm1683_vm0, %v2021_v38  ;;  %1750 = vst.msk [vmem:[%s3219_s3 + $0x108] sm:$0xf] %vm1683_vm0, %v2071_v39  ;;  %v2022_v42 = vpack.c.bf16 %v1200_v40, %v1200_v40  ;;  %v2072_v43 = vpack.c.bf16 %v1250_v41, %v1250_v41 }
 0x15c   :  { %v856_v44 = vpop.f32.mrb[36].mxu0  ;;  %v1056_v45 = vpop.f32.mrb[36].mxu1 }
 0x15d   :  { %1701 = vst.msk [vmem:[%s3219_s3 + $0x44] sm:$0xf] %vm1683_vm0, %v2022_v42  ;;  %1751 = vst.msk [vmem:[%s3219_s3 + $0x10c] sm:$0xf] %vm1683_vm0, %v2072_v43  ;;  %v857_v46 = vadd.f32 %v2709_v53, %v856_v44  ;;  %v1057_v47 = vadd.f32 %v2709_v53, %v1056_v45  ;;  %v858_v48 = vpop.f32.mrb[37].mxu0  ;;  %v1058_v49 = vpop.f32.mrb[37].mxu1 }
 0x15e   :  { %v859_v50 = vpop.f32.mrb[38].mxu0  ;;  %v1059_v51 = vpop.f32.mrb[38].mxu1 }
 0x15f   :  { %v1201_v52 = vmax.f32 %v857_v46, 0.0  ;;  %v1251_v54 = vmax.f32 %v1057_v47, 0.0  ;;  %v860_v55 = vadd.f32 %v2709_v53, %v859_v50  ;;  %v1060_v56 = vadd.f32 %v2709_v53, %v1059_v51  ;;  %v861_v57 = vpop.f32.mrb[39].mxu0  ;;  %v1061_v58 = vpop.f32.mrb[39].mxu1 }
 0x161   :  { %v2023_v59 = vpack.c.bf16 %v1201_v52, %v1201_v52  ;;  %v2073_v60 = vpack.c.bf16 %v1251_v54, %v1251_v54  ;;  %v1202_v61 = vmax.f32 %v860_v55, 0.0  ;;  %v1252_v62 = vmax.f32 %v1060_v56, 0.0 }
 0x163   :  { %1702 = vst.msk [vmem:[%s3219_s3 + $0x48] sm:$0xf] %vm1683_vm0, %v2023_v59  ;;  %1752 = vst.msk [vmem:[%s3219_s3 + $0x110] sm:$0xf] %vm1683_vm0, %v2073_v60  ;;  %v2024_v63 = vpack.c.bf16 %v1202_v61, %v1202_v61  ;;  %v2074_v0 = vpack.c.bf16 %v1252_v62, %v1252_v62 }
 0x164   :  { %v864_v1 = vpop.f32.mrb[40].mxu0  ;;  %v1064_v2 = vpop.f32.mrb[40].mxu1 }
 0x165   :  { %1703 = vst.msk [vmem:[%s3219_s3 + $0x4c] sm:$0xf] %vm1683_vm0, %v2024_v63  ;;  %1753 = vst.msk [vmem:[%s3219_s3 + $0x114] sm:$0xf] %vm1683_vm0, %v2074_v0  ;;  %v865_v3 = vadd.f32 %v2709_v53, %v864_v1  ;;  %v1065_v4 = vadd.f32 %v2709_v53, %v1064_v2  ;;  %v866_v5 = vpop.f32.mrb[41].mxu0  ;;  %v1066_v6 = vpop.f32.mrb[41].mxu1 }
 0x166   :  { %v867_v7 = vpop.f32.mrb[42].mxu0  ;;  %v1067_v8 = vpop.f32.mrb[42].mxu1 }
 0x167   :  { %v1203_v9 = vmax.f32 %v865_v3, 0.0  ;;  %v1253_v10 = vmax.f32 %v1065_v4, 0.0  ;;  %v868_v11 = vadd.f32 %v2709_v53, %v867_v7  ;;  %v1068_v12 = vadd.f32 %v2709_v53, %v1067_v8  ;;  %v869_v13 = vpop.f32.mrb[43].mxu0  ;;  %v1069_v14 = vpop.f32.mrb[43].mxu1 }
 0x169   :  { %v2025_v15 = vpack.c.bf16 %v1203_v9, %v1203_v9  ;;  %v2075_v16 = vpack.c.bf16 %v1253_v10, %v1253_v10  ;;  %v1204_v17 = vmax.f32 %v868_v11, 0.0  ;;  %v1254_v18 = vmax.f32 %v1068_v12, 0.0 }
 0x16b   :  { %1704 = vst.msk [vmem:[%s3219_s3 + $0x50] sm:$0xf] %vm1683_vm0, %v2025_v15  ;;  %1754 = vst.msk [vmem:[%s3219_s3 + $0x118] sm:$0xf] %vm1683_vm0, %v2075_v16  ;;  %v2026_v19 = vpack.c.bf16 %v1204_v17, %v1204_v17  ;;  %v2076_v20 = vpack.c.bf16 %v1254_v18, %v1254_v18 }
 0x16c   :  { %v872_v21 = vpop.f32.mrb[44].mxu0  ;;  %v1072_v22 = vpop.f32.mrb[44].mxu1 }
 0x16d   :  { %1705 = vst.msk [vmem:[%s3219_s3 + $0x54] sm:$0xf] %vm1683_vm0, %v2026_v19  ;;  %1755 = vst.msk [vmem:[%s3219_s3 + $0x11c] sm:$0xf] %vm1683_vm0, %v2076_v20  ;;  %v873_v23 = vadd.f32 %v2709_v53, %v872_v21  ;;  %v1073_v24 = vadd.f32 %v2709_v53, %v1072_v22  ;;  %v874_v25 = vpop.f32.mrb[45].mxu0  ;;  %v1074_v26 = vpop.f32.mrb[45].mxu1 }
 0x16e   :  { %v875_v27 = vpop.f32.mrb[46].mxu0  ;;  %v1075_v28 = vpop.f32.mrb[46].mxu1 }
 0x16f   :  { %v1205_v29 = vmax.f32 %v873_v23, 0.0  ;;  %v1255_v30 = vmax.f32 %v1073_v24, 0.0  ;;  %v876_v31 = vadd.f32 %v2709_v53, %v875_v27  ;;  %v1076_v32 = vadd.f32 %v2709_v53, %v1075_v28  ;;  %v877_v33 = vpop.f32.mrb[47].mxu0  ;;  %v1077_v34 = vpop.f32.mrb[47].mxu1 }
 0x171   :  { %v2027_v35 = vpack.c.bf16 %v1205_v29, %v1205_v29  ;;  %v2077_v36 = vpack.c.bf16 %v1255_v30, %v1255_v30  ;;  %v1206_v37 = vmax.f32 %v876_v31, 0.0  ;;  %v1256_v38 = vmax.f32 %v1076_v32, 0.0 }
 0x173   :  { %1706 = vst.msk [vmem:[%s3219_s3 + $0x58] sm:$0xf] %vm1683_vm0, %v2027_v35  ;;  %1756 = vst.msk [vmem:[%s3219_s3 + $0x120] sm:$0xf] %vm1683_vm0, %v2077_v36  ;;  %v2028_v39 = vpack.c.bf16 %v1206_v37, %v1206_v37  ;;  %v2078_v40 = vpack.c.bf16 %v1256_v38, %v1256_v38 }
 0x174   :  { %v880_v41 = vpop.f32.mrb[48].mxu0  ;;  %v1080_v42 = vpop.f32.mrb[48].mxu1 }
 0x175   :  { %1707 = vst.msk [vmem:[%s3219_s3 + $0x5c] sm:$0xf] %vm1683_vm0, %v2028_v39  ;;  %1757 = vst.msk [vmem:[%s3219_s3 + $0x124] sm:$0xf] %vm1683_vm0, %v2078_v40  ;;  %v881_v43 = vadd.f32 %v2709_v53, %v880_v41  ;;  %v1081_v44 = vadd.f32 %v2709_v53, %v1080_v42  ;;  %v882_v45 = vpop.f32.mrb[49].mxu0  ;;  %v1082_v46 = vpop.f32.mrb[49].mxu1 }
 0x176   :  { %v883_v47 = vpop.f32.mrb[50].mxu0  ;;  %v1083_v48 = vpop.f32.mrb[50].mxu1 }
 0x177   :  { %v1207_v49 = vmax.f32 %v881_v43, 0.0  ;;  %v1257_v50 = vmax.f32 %v1081_v44, 0.0  ;;  %v884_v51 = vadd.f32 %v2709_v53, %v883_v47  ;;  %v1084_v52 = vadd.f32 %v2709_v53, %v1083_v48  ;;  %v885_v54 = vpop.f32.mrb[51].mxu0  ;;  %v1085_v55 = vpop.f32.mrb[51].mxu1 }
 0x179   :  { %v2029_v56 = vpack.c.bf16 %v1207_v49, %v1207_v49  ;;  %v2079_v57 = vpack.c.bf16 %v1257_v50, %v1257_v50  ;;  %v1208_v58 = vmax.f32 %v884_v51, 0.0  ;;  %v1258_v59 = vmax.f32 %v1084_v52, 0.0 }
 0x17b   :  { %1708 = vst.msk [vmem:[%s3219_s3 + $0x60] sm:$0xf] %vm1683_vm0, %v2029_v56  ;;  %1758 = vst.msk [vmem:[%s3219_s3 + $0x128] sm:$0xf] %vm1683_vm0, %v2079_v57  ;;  %v2030_v60 = vpack.c.bf16 %v1208_v58, %v1208_v58  ;;  %v2080_v61 = vpack.c.bf16 %v1258_v59, %v1258_v59 }
 0x17c   :  { %v888_v62 = vpop.f32.mrb[52].mxu0  ;;  %v1088_v63 = vpop.f32.mrb[52].mxu1 }
 0x17d   :  { %1709 = vst.msk [vmem:[%s3219_s3 + $0x64] sm:$0xf] %vm1683_vm0, %v2030_v60  ;;  %1759 = vst.msk [vmem:[%s3219_s3 + $0x12c] sm:$0xf] %vm1683_vm0, %v2080_v61  ;;  %v889_v0 = vadd.f32 %v2709_v53, %v888_v62  ;;  %v1089_v1 = vadd.f32 %v2709_v53, %v1088_v63  ;;  %v890_v2 = vpop.f32.mrb[53].mxu0  ;;  %v1090_v3 = vpop.f32.mrb[53].mxu1 }
 0x17e   :  { %v891_v4 = vpop.f32.mrb[54].mxu0  ;;  %v1091_v5 = vpop.f32.mrb[54].mxu1 }
 0x17f   :  { %v1209_v6 = vmax.f32 %v889_v0, 0.0  ;;  %v1259_v7 = vmax.f32 %v1089_v1, 0.0  ;;  %v892_v8 = vadd.f32 %v2709_v53, %v891_v4  ;;  %v1092_v9 = vadd.f32 %v2709_v53, %v1091_v5  ;;  %v893_v10 = vpop.f32.mrb[55].mxu0  ;;  %v1093_v11 = vpop.f32.mrb[55].mxu1 }
 0x181   :  { %v2031_v12 = vpack.c.bf16 %v1209_v6, %v1209_v6  ;;  %v2081_v13 = vpack.c.bf16 %v1259_v7, %v1259_v7  ;;  %v1210_v14 = vmax.f32 %v892_v8, 0.0  ;;  %v1260_v15 = vmax.f32 %v1092_v9, 0.0 }
 0x183   :  { %1710 = vst.msk [vmem:[%s3219_s3 + $0x68] sm:$0xf] %vm1683_vm0, %v2031_v12  ;;  %1760 = vst.msk [vmem:[%s3219_s3 + $0x130] sm:$0xf] %vm1683_vm0, %v2081_v13  ;;  %v2032_v16 = vpack.c.bf16 %v1210_v14, %v1210_v14  ;;  %v2082_v17 = vpack.c.bf16 %v1260_v15, %v1260_v15 }
 0x184   :  { %v896_v18 = vpop.f32.mrb[56].mxu0  ;;  %v1096_v19 = vpop.f32.mrb[56].mxu1 }
 0x185   :  { %1711 = vst.msk [vmem:[%s3219_s3 + $0x6c] sm:$0xf] %vm1683_vm0, %v2032_v16  ;;  %1761 = vst.msk [vmem:[%s3219_s3 + $0x134] sm:$0xf] %vm1683_vm0, %v2082_v17  ;;  %v897_v20 = vadd.f32 %v2709_v53, %v896_v18  ;;  %v1097_v21 = vadd.f32 %v2709_v53, %v1096_v19  ;;  %v898_v22 = vpop.f32.mrb[57].mxu0  ;;  %v1098_v23 = vpop.f32.mrb[57].mxu1 }
 0x186   :  { %v899_v24 = vpop.f32.mrb[58].mxu0  ;;  %v1099_v25 = vpop.f32.mrb[58].mxu1 }
 0x187   :  { %v1211_v26 = vmax.f32 %v897_v20, 0.0  ;;  %v1261_v27 = vmax.f32 %v1097_v21, 0.0  ;;  %v900_v28 = vadd.f32 %v2709_v53, %v899_v24  ;;  %v1100_v29 = vadd.f32 %v2709_v53, %v1099_v25  ;;  %v901_v30 = vpop.f32.mrb[59].mxu0  ;;  %v1101_v31 = vpop.f32.mrb[59].mxu1 }
 0x189   :  { %v2033_v32 = vpack.c.bf16 %v1211_v26, %v1211_v26  ;;  %v2083_v33 = vpack.c.bf16 %v1261_v27, %v1261_v27  ;;  %v1212_v34 = vmax.f32 %v900_v28, 0.0  ;;  %v1262_v35 = vmax.f32 %v1100_v29, 0.0 }
 0x18b   :  { %1712 = vst.msk [vmem:[%s3219_s3 + $0x70] sm:$0xf] %vm1683_vm0, %v2033_v32  ;;  %1762 = vst.msk [vmem:[%s3219_s3 + $0x138] sm:$0xf] %vm1683_vm0, %v2083_v33  ;;  %v2034_v36 = vpack.c.bf16 %v1212_v34, %v1212_v34  ;;  %v2084_v37 = vpack.c.bf16 %v1262_v35, %v1262_v35 }
 0x18c   :  { %v904_v38 = vpop.f32.mrb[60].mxu0  ;;  %v1104_v39 = vpop.f32.mrb[60].mxu1 }
 0x18d   :  { %1713 = vst.msk [vmem:[%s3219_s3 + $0x74] sm:$0xf] %vm1683_vm0, %v2034_v36  ;;  %1763 = vst.msk [vmem:[%s3219_s3 + $0x13c] sm:$0xf] %vm1683_vm0, %v2084_v37  ;;  %v905_v40 = vadd.f32 %v2709_v53, %v904_v38  ;;  %v1105_v41 = vadd.f32 %v2709_v53, %v1104_v39  ;;  %v906_v42 = vpop.f32.mrb[61].mxu0  ;;  %v1106_v43 = vpop.f32.mrb[61].mxu1 }
 0x18e   :  { %v907_v44 = vpop.f32.mrb[62].mxu0  ;;  %v1107_v45 = vpop.f32.mrb[62].mxu1 }
 0x18f   :  { %v1213_v46 = vmax.f32 %v905_v40, 0.0  ;;  %v1263_v47 = vmax.f32 %v1105_v41, 0.0  ;;  %v908_v48 = vadd.f32 %v2709_v53, %v907_v44  ;;  %v1108_v49 = vadd.f32 %v2709_v53, %v1107_v45  ;;  %v909_v50 = vpop.f32.mrb[63].mxu0  ;;  %v1109_v51 = vpop.f32.mrb[63].mxu1 }
 0x191   :  { %v2035_v52 = vpack.c.bf16 %v1213_v46, %v1213_v46  ;;  %v2085_v54 = vpack.c.bf16 %v1263_v47, %v1263_v47  ;;  %v1214_v55 = vmax.f32 %v908_v48, 0.0  ;;  %v1264_v56 = vmax.f32 %v1108_v49, 0.0 }
 0x193   :  { %1714 = vst.msk [vmem:[%s3219_s3 + $0x78] sm:$0xf] %vm1683_vm0, %v2035_v52  ;;  %1764 = vst.msk [vmem:[%s3219_s3 + $0x140] sm:$0xf] %vm1683_vm0, %v2085_v54  ;;  %v2036_v57 = vpack.c.bf16 %v1214_v55, %v1214_v55  ;;  %v2086_v58 = vpack.c.bf16 %v1264_v56, %v1264_v56 }
 0x194   :  { %v912_v59 = vpop.f32.mrb[64].mxu0  ;;  %v1112_v60 = vpop.f32.mrb[64].mxu1 }
 0x195   :  { %1715 = vst.msk [vmem:[%s3219_s3 + $0x7c] sm:$0xf] %vm1683_vm0, %v2036_v57  ;;  %1765 = vst.msk [vmem:[%s3219_s3 + $0x144] sm:$0xf] %vm1683_vm0, %v2086_v58  ;;  %v913_v61 = vadd.f32 %v2709_v53, %v912_v59  ;;  %v1113_v62 = vadd.f32 %v2709_v53, %v1112_v60  ;;  %v914_v63 = vpop.f32.mrb[65].mxu0  ;;  %v1114_v0 = vpop.f32.mrb[65].mxu1 }
 0x196   :  { %v915_v1 = vpop.f32.mrb[66].mxu0  ;;  %v1115_v2 = vpop.f32.mrb[66].mxu1 }
 0x197   :  { %v1215_v3 = vmax.f32 %v913_v61, 0.0  ;;  %v1265_v4 = vmax.f32 %v1113_v62, 0.0  ;;  %v916_v5 = vadd.f32 %v2709_v53, %v915_v1  ;;  %v1116_v6 = vadd.f32 %v2709_v53, %v1115_v2  ;;  %v917_v7 = vpop.f32.mrb[67].mxu0  ;;  %v1117_v8 = vpop.f32.mrb[67].mxu1 }
 0x199   :  { %v2037_v9 = vpack.c.bf16 %v1215_v3, %v1215_v3  ;;  %v2087_v10 = vpack.c.bf16 %v1265_v4, %v1265_v4  ;;  %v1216_v11 = vmax.f32 %v916_v5, 0.0  ;;  %v1266_v12 = vmax.f32 %v1116_v6, 0.0 }
 0x19b   :  { %1716 = vst.msk [vmem:[%s3219_s3 + $0x80] sm:$0xf] %vm1683_vm0, %v2037_v9  ;;  %1766 = vst.msk [vmem:[%s3219_s3 + $0x148] sm:$0xf] %vm1683_vm0, %v2087_v10  ;;  %v2038_v13 = vpack.c.bf16 %v1216_v11, %v1216_v11  ;;  %v2088_v14 = vpack.c.bf16 %v1266_v12, %v1266_v12 }
 0x19c   :  { %v920_v15 = vpop.f32.mrb[68].mxu0  ;;  %v1120_v16 = vpop.f32.mrb[68].mxu1 }
 0x19d   :  { %1717 = vst.msk [vmem:[%s3219_s3 + $0x84] sm:$0xf] %vm1683_vm0, %v2038_v13  ;;  %1767 = vst.msk [vmem:[%s3219_s3 + $0x14c] sm:$0xf] %vm1683_vm0, %v2088_v14  ;;  %v921_v17 = vadd.f32 %v2709_v53, %v920_v15  ;;  %v1121_v18 = vadd.f32 %v2709_v53, %v1120_v16  ;;  %v922_v19 = vpop.f32.mrb[69].mxu0  ;;  %v1122_v20 = vpop.f32.mrb[69].mxu1 }
 0x19e   :  { %v923_v21 = vpop.f32.mrb[70].mxu0  ;;  %v1123_v22 = vpop.f32.mrb[70].mxu1 }
 0x19f   :  { %v1217_v23 = vmax.f32 %v921_v17, 0.0  ;;  %v1267_v24 = vmax.f32 %v1121_v18, 0.0  ;;  %v924_v25 = vadd.f32 %v2709_v53, %v923_v21  ;;  %v1124_v26 = vadd.f32 %v2709_v53, %v1123_v22  ;;  %v925_v27 = vpop.f32.mrb[71].mxu0  ;;  %v1125_v28 = vpop.f32.mrb[71].mxu1 }
 0x1a1   :  { %v2039_v29 = vpack.c.bf16 %v1217_v23, %v1217_v23  ;;  %v2089_v30 = vpack.c.bf16 %v1267_v24, %v1267_v24  ;;  %v1218_v31 = vmax.f32 %v924_v25, 0.0  ;;  %v1268_v32 = vmax.f32 %v1124_v26, 0.0 }
 0x1a3   :  { %1718 = vst.msk [vmem:[%s3219_s3 + $0x88] sm:$0xf] %vm1683_vm0, %v2039_v29  ;;  %1768 = vst.msk [vmem:[%s3219_s3 + $0x150] sm:$0xf] %vm1683_vm0, %v2089_v30  ;;  %v2040_v33 = vpack.c.bf16 %v1218_v31, %v1218_v31  ;;  %v2090_v34 = vpack.c.bf16 %v1268_v32, %v1268_v32 }
 0x1a4   :  { %v928_v35 = vpop.f32.mrb[72].mxu0  ;;  %v1128_v36 = vpop.f32.mrb[72].mxu1 }
 0x1a5   :  { %1719 = vst.msk [vmem:[%s3219_s3 + $0x8c] sm:$0xf] %vm1683_vm0, %v2040_v33  ;;  %1769 = vst.msk [vmem:[%s3219_s3 + $0x154] sm:$0xf] %vm1683_vm0, %v2090_v34  ;;  %v929_v37 = vadd.f32 %v2709_v53, %v928_v35  ;;  %v1129_v38 = vadd.f32 %v2709_v53, %v1128_v36  ;;  %v930_v39 = vpop.f32.mrb[73].mxu0  ;;  %v1130_v40 = vpop.f32.mrb[73].mxu1 }
 0x1a6   :  { %v931_v41 = vpop.f32.mrb[74].mxu0  ;;  %v1131_v42 = vpop.f32.mrb[74].mxu1 }
 0x1a7   :  { %v1219_v43 = vmax.f32 %v929_v37, 0.0  ;;  %v1269_v44 = vmax.f32 %v1129_v38, 0.0  ;;  %v932_v45 = vadd.f32 %v2709_v53, %v931_v41  ;;  %v1132_v46 = vadd.f32 %v2709_v53, %v1131_v42  ;;  %v933_v47 = vpop.f32.mrb[75].mxu0  ;;  %v1133_v48 = vpop.f32.mrb[75].mxu1  ;;  %v3136_v42 = vld [vmem:[%s3218_s2] ss:$0 sm:$0xff] }
 0x1a9   :  { %v2041_v49 = vpack.c.bf16 %v1219_v43, %v1219_v43  ;;  %v2091_v50 = vpack.c.bf16 %v1269_v44, %v1269_v44  ;;  %v1220_v51 = vmax.f32 %v932_v45, 0.0  ;;  %v1270_v52 = vmax.f32 %v1132_v46, 0.0 }
 0x1ab   :  { %1720 = vst.msk [vmem:[%s3219_s3 + $0x90] sm:$0xf] %vm1683_vm0, %v2041_v49  ;;  %1770 = vst.msk [vmem:[%s3219_s3 + $0x158] sm:$0xf] %vm1683_vm0, %v2091_v50  ;;  %v2042_v54 = vpack.c.bf16 %v1220_v51, %v1220_v51  ;;  %v2092_v55 = vpack.c.bf16 %v1270_v52, %v1270_v52 }
 0x1ac   :  { %v936_v56 = vpop.f32.mrb[76].mxu0  ;;  %v1136_v57 = vpop.f32.mrb[76].mxu1 }
 0x1ad   :  { %1721 = vst.msk [vmem:[%s3219_s3 + $0x94] sm:$0xf] %vm1683_vm0, %v2042_v54  ;;  %1771 = vst.msk [vmem:[%s3219_s3 + $0x15c] sm:$0xf] %vm1683_vm0, %v2092_v55  ;;  %v937_v58 = vadd.f32 %v2709_v53, %v936_v56  ;;  %v1137_v59 = vadd.f32 %v2709_v53, %v1136_v57  ;;  %v938_v60 = vpop.f32.mrb[77].mxu0  ;;  %v1138_v61 = vpop.f32.mrb[77].mxu1 }
 0x1ae   :  { %v939_v62 = vpop.f32.mrb[78].mxu0  ;;  %v1139_v63 = vpop.f32.mrb[78].mxu1 }
 0x1af   :  { %v1221_v0 = vmax.f32 %v937_v58, 0.0  ;;  %v1271_v1 = vmax.f32 %v1137_v59, 0.0  ;;  %v940_v2 = vadd.f32 %v2709_v53, %v939_v62  ;;  %v1140_v3 = vadd.f32 %v2709_v53, %v1139_v63  ;;  %v941_v4 = vpop.f32.mrb[79].mxu0  ;;  %v1141_v5 = vpop.f32.mrb[79].mxu1 }
 0x1b1   :  { %v2043_v6 = vpack.c.bf16 %v1221_v0, %v1221_v0  ;;  %v2093_v7 = vpack.c.bf16 %v1271_v1, %v1271_v1  ;;  %v1222_v8 = vmax.f32 %v940_v2, 0.0  ;;  %v1272_v9 = vmax.f32 %v1140_v3, 0.0 }
 0x1b3   :  { %1722 = vst.msk [vmem:[%s3219_s3 + $0x98] sm:$0xf] %vm1683_vm0, %v2043_v6  ;;  %1772 = vst.msk [vmem:[%s3219_s3 + $0x160] sm:$0xf] %vm1683_vm0, %v2093_v7  ;;  %v2044_v10 = vpack.c.bf16 %v1222_v8, %v1222_v8  ;;  %v2094_v11 = vpack.c.bf16 %v1272_v9, %v1272_v9 }
 0x1b4   :  { %v944_v12 = vpop.f32.mrb[80].mxu0  ;;  %v1144_v13 = vpop.f32.mrb[80].mxu1 }
 0x1b5   :  { %1723 = vst.msk [vmem:[%s3219_s3 + $0x9c] sm:$0xf] %vm1683_vm0, %v2044_v10  ;;  %1773 = vst.msk [vmem:[%s3219_s3 + $0x164] sm:$0xf] %vm1683_vm0, %v2094_v11  ;;  %v945_v14 = vadd.f32 %v2709_v53, %v944_v12  ;;  %v1145_v15 = vadd.f32 %v2709_v53, %v1144_v13  ;;  %v946_v16 = vpop.f32.mrb[81].mxu0  ;;  %v1146_v17 = vpop.f32.mrb[81].mxu1 }
 0x1b6   :  { %v947_v18 = vpop.f32.mrb[82].mxu0  ;;  %v1147_v19 = vpop.f32.mrb[82].mxu1 }
 0x1b7   :  { %v1223_v20 = vmax.f32 %v945_v14, 0.0  ;;  %v1273_v21 = vmax.f32 %v1145_v15, 0.0  ;;  %v948_v22 = vadd.f32 %v2709_v53, %v947_v18  ;;  %v1148_v23 = vadd.f32 %v2709_v53, %v1147_v19  ;;  %v949_v24 = vpop.f32.mrb[83].mxu0  ;;  %v1149_v25 = vpop.f32.mrb[83].mxu1 }
 0x1b9   :  { %v2045_v26 = vpack.c.bf16 %v1223_v20, %v1223_v20  ;;  %v2095_v27 = vpack.c.bf16 %v1273_v21, %v1273_v21  ;;  %v1224_v28 = vmax.f32 %v948_v22, 0.0  ;;  %v1274_v29 = vmax.f32 %v1148_v23, 0.0 }
 0x1bb   :  { %1724 = vst.msk [vmem:[%s3219_s3 + $0xa0] sm:$0xf] %vm1683_vm0, %v2045_v26  ;;  %1774 = vst.msk [vmem:[%s3219_s3 + $0x168] sm:$0xf] %vm1683_vm0, %v2095_v27  ;;  %v2046_v30 = vpack.c.bf16 %v1224_v28, %v1224_v28  ;;  %v2096_v31 = vpack.c.bf16 %v1274_v29, %v1274_v29 }
 0x1bc   :  { %v952_v32 = vpop.f32.mrb[84].mxu0  ;;  %v1152_v33 = vpop.f32.mrb[84].mxu1 }
 0x1bd   :  { %1725 = vst.msk [vmem:[%s3219_s3 + $0xa4] sm:$0xf] %vm1683_vm0, %v2046_v30  ;;  %1775 = vst.msk [vmem:[%s3219_s3 + $0x16c] sm:$0xf] %vm1683_vm0, %v2096_v31  ;;  %v953_v34 = vadd.f32 %v2709_v53, %v952_v32  ;;  %v1153_v35 = vadd.f32 %v2709_v53, %v1152_v33  ;;  %v954_v36 = vpop.f32.mrb[85].mxu0  ;;  %v1154_v37 = vpop.f32.mrb[85].mxu1 }
 0x1be   :  { %v955_v38 = vpop.f32.mrb[86].mxu0  ;;  %v1155_v39 = vpop.f32.mrb[86].mxu1 }
 0x1bf   :  { %v1225_v40 = vmax.f32 %v953_v34, 0.0  ;;  %v1275_v41 = vmax.f32 %v1153_v35, 0.0  ;;  %v956_v43 = vadd.f32 %v3136_v42, %v955_v38  ;;  %v1156_v44 = vadd.f32 %v3136_v42, %v1155_v39  ;;  %v957_v45 = vpop.f32.mrb[87].mxu0  ;;  %v1157_v46 = vpop.f32.mrb[87].mxu1 }
 0x1c1   :  { %v2047_v47 = vpack.c.bf16 %v1225_v40, %v1225_v40  ;;  %v2097_v48 = vpack.c.bf16 %v1275_v41, %v1275_v41  ;;  %v1226_v53 = vmax.f32 %v956_v43, 0.0  ;;  %v1276_v49 = vmax.f32 %v1156_v44, 0.0 }
 0x1c3   :  { %1726 = vst.msk [vmem:[%s3219_s3 + $0xa8] sm:$0xf] %vm1683_vm0, %v2047_v47  ;;  %1776 = vst.msk [vmem:[%s3219_s3 + $0x170] sm:$0xf] %vm1683_vm0, %v2097_v48  ;;  %v2048_v50 = vpack.c.bf16 %v1226_v53, %v1226_v53  ;;  %v2098_v51 = vpack.c.bf16 %v1276_v49, %v1276_v49 }
 0x1c4   :  { %v960_v52 = vpop.f32.mrb[88].mxu0  ;;  %v1160_v54 = vpop.f32.mrb[88].mxu1 }
 0x1c5   :  { %1727 = vst.msk [vmem:[%s3219_s3 + $0xac] sm:$0xf] %vm1683_vm0, %v2048_v50  ;;  %1777 = vst.msk [vmem:[%s3219_s3 + $0x174] sm:$0xf] %vm1683_vm0, %v2098_v51  ;;  %v961_v55 = vadd.f32 %v3136_v42, %v960_v52  ;;  %v1161_v56 = vadd.f32 %v3136_v42, %v1160_v54  ;;  %v962_v57 = vpop.f32.mrb[89].mxu0  ;;  %v1162_v58 = vpop.f32.mrb[89].mxu1 }
 0x1c6   :  { %v963_v59 = vpop.f32.mrb[90].mxu0  ;;  %v1163_v60 = vpop.f32.mrb[90].mxu1 }
 0x1c7   :  { %v1227_v61 = vmax.f32 %v961_v55, 0.0  ;;  %v1277_v62 = vmax.f32 %v1161_v56, 0.0  ;;  %v964_v63 = vadd.f32 %v3136_v42, %v963_v59  ;;  %v1164_v0 = vadd.f32 %v3136_v42, %v1163_v60  ;;  %v965_v1 = vpop.f32.mrb[91].mxu0  ;;  %v1165_v2 = vpop.f32.mrb[91].mxu1 }
 0x1c9   :  { %v2049_v3 = vpack.c.bf16 %v1227_v61, %v1227_v61  ;;  %v2099_v4 = vpack.c.bf16 %v1277_v62, %v1277_v62  ;;  %v1228_v5 = vmax.f32 %v964_v63, 0.0  ;;  %v1278_v6 = vmax.f32 %v1164_v0, 0.0 }
 0x1cb   :  { %1728 = vst.msk [vmem:[%s3219_s3 + $0xb0] sm:$0xf] %vm1683_vm0, %v2049_v3  ;;  %1778 = vst.msk [vmem:[%s3219_s3 + $0x178] sm:$0xf] %vm1683_vm0, %v2099_v4  ;;  %v2050_v7 = vpack.c.bf16 %v1228_v5, %v1228_v5  ;;  %v2100_v8 = vpack.c.bf16 %v1278_v6, %v1278_v6 }
 0x1cc   :  { %v968_v9 = vpop.f32.mrb[92].mxu0  ;;  %v1168_v10 = vpop.f32.mrb[92].mxu1 }
 0x1cd   :  { %1729 = vst.msk [vmem:[%s3219_s3 + $0xb4] sm:$0xf] %vm1683_vm0, %v2050_v7  ;;  %1779 = vst.msk [vmem:[%s3219_s3 + $0x17c] sm:$0xf] %vm1683_vm0, %v2100_v8  ;;  %v969_v11 = vadd.f32 %v3136_v42, %v968_v9  ;;  %v1169_v12 = vadd.f32 %v3136_v42, %v1168_v10  ;;  %v970_v13 = vpop.f32.mrb[93].mxu0  ;;  %v1170_v14 = vpop.f32.mrb[93].mxu1 }
 0x1ce   :  { %v971_v15 = vpop.f32.mrb[94].mxu0  ;;  %v1171_v16 = vpop.f32.mrb[94].mxu1 }
 0x1cf   :  { %v1229_v17 = vmax.f32 %v969_v11, 0.0  ;;  %v1279_v18 = vmax.f32 %v1169_v12, 0.0  ;;  %v972_v19 = vadd.f32 %v3136_v42, %v971_v15  ;;  %v1172_v20 = vadd.f32 %v3136_v42, %v1171_v16  ;;  %v973_v21 = vpop.f32.mrb[95].mxu0  ;;  %v1173_v22 = vpop.f32.mrb[95].mxu1 }
 0x1d1   :  { %v2051_v23 = vpack.c.bf16 %v1229_v17, %v1229_v17  ;;  %v2101_v24 = vpack.c.bf16 %v1279_v18, %v1279_v18  ;;  %v1230_v25 = vmax.f32 %v972_v19, 0.0  ;;  %v1280_v26 = vmax.f32 %v1172_v20, 0.0 }
 0x1d3   :  { %1730 = vst.msk [vmem:[%s3219_s3 + $0xb8] sm:$0xf] %vm1683_vm0, %v2051_v23  ;;  %1780 = vst.msk [vmem:[%s3219_s3 + $0x180] sm:$0xf] %vm1683_vm0, %v2101_v24  ;;  %v2052_v27 = vpack.c.bf16 %v1230_v25, %v1230_v25  ;;  %v2102_v28 = vpack.c.bf16 %v1280_v26, %v1280_v26 }
 0x1d4   :  { %v976_v29 = vpop.f32.mrb[96].mxu0  ;;  %v1176_v30 = vpop.f32.mrb[96].mxu1 }
 0x1d5   :  { %1731 = vst.msk [vmem:[%s3219_s3 + $0xbc] sm:$0xf] %vm1683_vm0, %v2052_v27  ;;  %1781 = vst.msk [vmem:[%s3219_s3 + $0x184] sm:$0xf] %vm1683_vm0, %v2102_v28  ;;  %v977_v31 = vadd.f32 %v3136_v42, %v976_v29  ;;  %v1177_v32 = vadd.f32 %v3136_v42, %v1176_v30  ;;  %v978_v33 = vpop.f32.mrb[97].mxu0  ;;  %v1178_v34 = vpop.f32.mrb[97].mxu1 }
 0x1d6   :  { %v979_v35 = vpop.f32.mrb[98].mxu0  ;;  %v1179_v36 = vpop.f32.mrb[98].mxu1 }
 0x1d7   :  { %v1231_v37 = vmax.f32 %v977_v31, 0.0  ;;  %v1281_v38 = vmax.f32 %v1177_v32, 0.0  ;;  %v980_v39 = vadd.f32 %v3136_v42, %v979_v35  ;;  %v1180_v40 = vadd.f32 %v3136_v42, %v1179_v36  ;;  %v981_v41 = vpop.f32.mrb[99].mxu0  ;;  %v1181_v43 = vpop.f32.mrb[99].mxu1 }
 0x1d9   :  { %v2053_v44 = vpack.c.bf16 %v1231_v37, %v1231_v37  ;;  %v2103_v45 = vpack.c.bf16 %v1281_v38, %v1281_v38  ;;  %v1232_v46 = vmax.f32 %v980_v39, 0.0  ;;  %v1282_v47 = vmax.f32 %v1180_v40, 0.0 }
 0x1db   :  { %1732 = vst.msk [vmem:[%s3219_s3 + $0xc0] sm:$0xf] %vm1683_vm0, %v2053_v44  ;;  %1782 = vst.msk [vmem:[%s3219_s3 + $0x188] sm:$0xf] %vm1683_vm0, %v2103_v45  ;;  %v2054_v48 = vpack.c.bf16 %v1232_v46, %v1232_v46  ;;  %v2104_v53 = vpack.c.bf16 %v1282_v47, %v1282_v47 }
 0x1dd   :  { %1733 = vst.msk [vmem:[%s3219_s3 + $0xc4] sm:$0xf] %vm1683_vm0, %v2054_v48  ;;  %1783 = vst.msk [vmem:[%s3219_s3 + $0x18c] sm:$0xf] %vm1683_vm0, %v2104_v53 }

// kernel: actor_forward.5
= control target key start
LH: loop header
LB: loop body
LE: loop exit
PB: predicated region body
PF: predicated region fallthrough
CT: control target
= control target key end

     0   :  { %vm880_vm0 = vcmask 519168   ;;  %vm901_vm1 = vcmask 516096   ;;  %s1637_s1 = inlined_call_operand.vmem [shape: bf16[512,64], index: 1, kind: input, shape index: {}]   ;;  %s1638_s0 = inlined_call_operand.vmem [shape: bf16[162,512], index: 0, kind: input, shape index: {}]   ;;  %s1639_s2 = inlined_call_operand.vmem [shape: f32[1,64], index: 2, kind: input, shape index: {}]   ;;  %s1640_s3 = inlined_call_operand.vmem [shape: bf16[162,64], index: 3, kind: output, shape index: {}]  }
   0x1   :  { %v1190_v0 = vld [vmem:[%s1637_s1 + $0x40] sm:$0xff]   ;;  %v1194_v4 = vld [vmem:[%s1637_s1 + $0x48] sm:$0xff]   ;;  %v1198_v8 = vld [vmem:[%s1637_s1 + $0x50] sm:$0xff]  }
   0x2   :  { %v1191_v1 = vld [vmem:[%s1637_s1 + $0xc0] sm:$0xff]   ;;  %1026 = vmatprep.subr.bf16.mxu0 %v1190_v0  ;;  %v1195_v5 = vld [vmem:[%s1637_s1 + $0xc8] sm:$0xff]   ;;  %v1199_v9 = vld [vmem:[%s1637_s1 + $0xd0] sm:$0xff]  }
   0x3   :  { %v1192_v2 = vld [vmem:[%s1637_s1] sm:$0xff]   ;;  %1108 = vmatprep.subr.bf16.mxu1 %v1191_v1  ;;  %v1196_v6 = vld [vmem:[%s1637_s1 + $0x8] sm:$0xff]   ;;  %v1200_v10 = vld [vmem:[%s1637_s1 + $0x10] sm:$0xff]  }
   0x4   :  { %v1193_v3 = vld [vmem:[%s1637_s1 + $0x80] sm:$0xff]   ;;  %1027 = vmatpush3.bf16.msra.mxu0 %v1192_v2  ;;  %v1197_v7 = vld [vmem:[%s1637_s1 + $0x88] sm:$0xff]   ;;  %v1201_v11 = vld [vmem:[%s1637_s1 + $0x90] sm:$0xff]  }
   0x5   :  { %1109 = vmatpush3.bf16.msra.mxu1 %v1193_v3  ;;  %1028 = vmatprep.subr.bf16.mxu0 %v1194_v4  ;;  %v1202_v12 = vld [vmem:[%s1637_s1 + $0x58] sm:$0xff]   ;;  %v1206_v16 = vld [vmem:[%s1637_s1 + $0x60] sm:$0xff]   ;;  %v1210_v20 = vld [vmem:[%s1637_s1 + $0x68] sm:$0xff]  }
   0x6   :  { %1110 = vmatprep.subr.bf16.mxu1 %v1195_v5  ;;  %v1203_v13 = vld [vmem:[%s1637_s1 + $0xd8] sm:$0xff]   ;;  %v1207_v17 = vld [vmem:[%s1637_s1 + $0xe0] sm:$0xff]   ;;  %v1211_v21 = vld [vmem:[%s1637_s1 + $0xe8] sm:$0xff]  }
   0x7   :  { %v1204_v14 = vld [vmem:[%s1637_s1 + $0x18] sm:$0xff]   ;;  %v1208_v18 = vld [vmem:[%s1637_s1 + $0x20] sm:$0xff]   ;;  %v1212_v22 = vld [vmem:[%s1637_s1 + $0x28] sm:$0xff]  }
   0x8   :  { %1029 = vmatpush3.bf16.msra.mxu0 %v1196_v6  ;;  %v1205_v15 = vld [vmem:[%s1637_s1 + $0x98] sm:$0xff]   ;;  %v1209_v19 = vld [vmem:[%s1637_s1 + $0xa0] sm:$0xff]   ;;  %v1213_v23 = vld [vmem:[%s1637_s1 + $0xa8] sm:$0xff]  }
   0x9   :  { %1111 = vmatpush3.bf16.msra.mxu1 %v1197_v7  ;;  %1030 = vmatprep.subr.bf16.mxu0 %v1198_v8  ;;  %v1214_v24 = vld [vmem:[%s1637_s1 + $0x70] sm:$0xff]   ;;  %v1218_v28 = vld [vmem:[%s1637_s1 + $0x78] sm:$0xff]   ;;  %v55_v6 = vld [vmem:[%s1638_s0 + $0x140] sm:$0x11] }
   0xa   :  { %1112 = vmatprep.subr.bf16.mxu1 %v1199_v9  ;;  %v1215_v25 = vld [vmem:[%s1637_s1 + $0xf0] sm:$0xff]   ;;  %v1219_v29 = vld [vmem:[%s1637_s1 + $0xf8] sm:$0xff]   ;;  %v56_v7 = vld [vmem:[%s1638_s0 + $0x148] sm:$0x11] }
   0xb   :  { %v1216_v26 = vld [vmem:[%s1637_s1 + $0x30] sm:$0xff]   ;;  %v1220_v30 = vld [vmem:[%s1637_s1 + $0x38] sm:$0xff]  }
   0xc   :  { %1031 = vmatpush3.bf16.msra.mxu0 %v1200_v10  ;;  %v1217_v27 = vld [vmem:[%s1637_s1 + $0xb0] sm:$0xff]   ;;  %v1221_v31 = vld [vmem:[%s1637_s1 + $0xb8] sm:$0xff]   ;;  %v949_v10 = vcombine.high %v55_v6, %v55_v6 }
   0xd   :  { %1113 = vmatpush3.bf16.msra.mxu1 %v1201_v11  ;;  %1032 = vmatprep.subr.bf16.mxu0 %v1202_v12  ;;  %v1222_v32 = vld [vmem:[%s1638_s0] ss:$16 sps:$4 sm:$0xff]   ;;  %v1224_v33 = vld [vmem:[%s1638_s0 + $0x4] ss:$16 sps:$4 sm:$0xff]   ;;  %v1225_v34 = vld [vmem:[%s1638_s0 + $0x8] ss:$16 sps:$4 sm:$0xff]   ;;  %v951_v11 = vcombine.high %v56_v7, %v56_v7  ;;  %v948_v12 = vcombine.low %v55_v6, %v55_v6 }
   0xe   :  { %1114 = vmatprep.subr.bf16.mxu1 %v1203_v13  ;;  %v1227_v35 = vld [vmem:[%s1638_s0 + $0xc] ss:$16 sps:$4 sm:$0xff]   ;;  %566 = vmatprep.mubr.bf16.mxu0 %v1224_v33  ;;  %v1228_v36 = vld [vmem:[%s1638_s0 + $0x24] ss:$16 sps:$4 sm:$0xff]   ;;  %v1232_v38 = vld [vmem:[%s1638_s0 + $0x20] ss:$16 sps:$4 sm:$0xff]   ;;  %v950_v13 = vcombine.low %v56_v7, %v56_v7 }
   0xf   :  { %686 = vmatprep.mubr.bf16.mxu1 %v1227_v35  ;;  %v1230_v37 = vld [vmem:[%s1638_s0 + $0x2c] ss:$16 sps:$4 sm:$0xff]   ;;  %v1233_v39 = vld [vmem:[%s1638_s0 + $0x28] ss:$16 sps:$4 sm:$0xff]   ;;  %v1234_v40 = vld [vmem:[%s1638_s0 + $0x44] ss:$16 sps:$4 sm:$0xff]  }
  0x10   :  { %1033 = vmatpush3.bf16.msra.mxu0 %v1204_v14  ;;  %v1236_v41 = vld [vmem:[%s1638_s0 + $0x4c] ss:$16 sps:$4 sm:$0xff]   ;;  %v1238_v42 = vld [vmem:[%s1638_s0 + $0x40] ss:$16 sps:$4 sm:$0xff]   ;;  %v1239_v43 = vld [vmem:[%s1638_s0 + $0x48] ss:$16 sps:$4 sm:$0xff]  }
  0x11   :  { %1115 = vmatpush3.bf16.msra.mxu1 %v1205_v15  ;;  %1034 = vmatprep.subr.bf16.mxu0 %v1206_v16  ;;  %v1240_v44 = vld [vmem:[%s1638_s0 + $0x64] ss:$16 sps:$4 sm:$0xff]   ;;  %v1242_v45 = vld [vmem:[%s1638_s0 + $0x6c] ss:$16 sps:$4 sm:$0xff]   ;;  %v1244_v46 = vld [vmem:[%s1638_s0 + $0x60] ss:$16 sps:$4 sm:$0xff]  }
  0x12   :  { %1116 = vmatprep.subr.bf16.mxu1 %v1207_v17  ;;  %v1245_v47 = vld [vmem:[%s1638_s0 + $0x68] ss:$16 sps:$4 sm:$0xff]   ;;  %v1246_v48 = vld [vmem:[%s1638_s0 + $0x84] ss:$16 sps:$4 sm:$0xff]   ;;  %v1248_v49 = vld [vmem:[%s1638_s0 + $0x8c] ss:$16 sps:$4 sm:$0xff]  }
  0x13   :  { %v1250_v50 = vld [vmem:[%s1638_s0 + $0x80] ss:$16 sps:$4 sm:$0xff]   ;;  %v1251_v51 = vld [vmem:[%s1638_s0 + $0x88] ss:$16 sps:$4 sm:$0xff]   ;;  %v1252_v52 = vld [vmem:[%s1638_s0 + $0xa4] ss:$16 sps:$4 sm:$0xff]  }
  0x14   :  { %1035 = vmatpush3.bf16.msra.mxu0 %v1208_v18  ;;  %v1254_v53 = vld [vmem:[%s1638_s0 + $0xac] ss:$16 sps:$4 sm:$0xff]   ;;  %v1256_v54 = vld [vmem:[%s1638_s0 + $0xa0] ss:$16 sps:$4 sm:$0xff]   ;;  %v1257_v55 = vld [vmem:[%s1638_s0 + $0xa8] ss:$16 sps:$4 sm:$0xff]  }
  0x15   :  { %1117 = vmatpush3.bf16.msra.mxu1 %v1209_v19  ;;  %1036 = vmatprep.subr.bf16.mxu0 %v1210_v20  ;;  %v1258_v56 = vld [vmem:[%s1638_s0 + $0xc4] ss:$16 sps:$4 sm:$0xff]   ;;  %v1260_v57 = vld [vmem:[%s1638_s0 + $0xcc] ss:$16 sps:$4 sm:$0xff]   ;;  %v1262_v58 = vld [vmem:[%s1638_s0 + $0xc0] ss:$16 sps:$4 sm:$0xff]  }
  0x16   :  { %1118 = vmatprep.subr.bf16.mxu1 %v1211_v21  ;;  %v1263_v59 = vld [vmem:[%s1638_s0 + $0xc8] ss:$16 sps:$4 sm:$0xff]   ;;  %v1264_v60 = vld [vmem:[%s1638_s0 + $0xe4] ss:$16 sps:$4 sm:$0xff]   ;;  %v1266_v61 = vld [vmem:[%s1638_s0 + $0xec] ss:$16 sps:$4 sm:$0xff]  }
  0x17   :  { %v1268_v62 = vld [vmem:[%s1638_s0 + $0xe0] ss:$16 sps:$4 sm:$0xff]   ;;  %v1269_v63 = vld [vmem:[%s1638_s0 + $0xe8] ss:$16 sps:$4 sm:$0xff]   ;;  %v1270_v0 = vld [vmem:[%s1638_s0 + $0x104] ss:$16 sps:$4 sm:$0xff]  }
  0x18   :  { %1037 = vmatpush3.bf16.msra.mxu0 %v1212_v22  ;;  %v1272_v1 = vld [vmem:[%s1638_s0 + $0x10c] ss:$16 sps:$4 sm:$0xff]   ;;  %v1274_v2 = vld [vmem:[%s1638_s0 + $0x100] ss:$16 sps:$4 sm:$0xff]   ;;  %v1275_v3 = vld [vmem:[%s1638_s0 + $0x108] ss:$16 sps:$4 sm:$0xff]  }
  0x19   :  { %1119 = vmatpush3.bf16.msra.mxu1 %v1213_v23  ;;  %1038 = vmatprep.subr.bf16.mxu0 %v1214_v24  ;;  %v1276_v4 = vld [vmem:[%s1638_s0 + $0x124] ss:$16 sps:$4 sm:$0xff]   ;;  %v1278_v5 = vld [vmem:[%s1638_s0 + $0x12c] ss:$16 sps:$4 sm:$0xff]   ;;  %v1280_v8 = vld [vmem:[%s1638_s0 + $0x120] ss:$16 sps:$4 sm:$0xff]  }
  0x1a   :  { %1120 = vmatprep.subr.bf16.mxu1 %v1215_v25  ;;  %v1281_v9 = vld [vmem:[%s1638_s0 + $0x128] ss:$16 sps:$4 sm:$0xff]   ;;  %v1531_v16 = vld [vmem:[%s1639_s2] ss:$0 sm:$0xff] }
  0x1c   :  { %1039 = vmatpush3.bf16.msra.mxu0 %v1216_v26 }
  0x1d   :  { %1121 = vmatpush3.bf16.msra.mxu1 %v1217_v27  ;;  %1040 = vmatprep.subr.bf16.mxu0 %v1218_v28 }
  0x1e   :  { %1122 = vmatprep.subr.bf16.mxu1 %v1219_v29 }
  0x20   :  { %1041 = vmatpush3.bf16.msra.mxu0 %v1220_v30 }
  0x21   :  { %1123 = vmatpush3.bf16.msra.mxu1 %v1221_v31 }
  0x23   :  { %567 = vmatmul.mubr.bf16.vlgmr.msra.gmra.mrb[0].mxu0 %v1222_v32 }
  0x24   :  { %687 = vmatmul.mubr.bf16.vlgmr.msra.gmra.mrb[0].mxu1 %v1225_v34  ;;  %574 = vmatprep.mubr.bf16.mxu0 %v1228_v36 }
  0x25   :  { %694 = vmatprep.mubr.bf16.mxu1 %v1230_v37 }
  0x2b   :  { %575 = vmatmul.mubr.bf16.gmra.mrb[4].mxu0 %v1232_v38 }
  0x2c   :  { %695 = vmatmul.mubr.bf16.gmra.mrb[4].mxu1 %v1233_v39  ;;  %582 = vmatprep.mubr.bf16.mxu0 %v1234_v40 }
  0x2d   :  { %702 = vmatprep.mubr.bf16.mxu1 %v1236_v41 }
  0x33   :  { %583 = vmatmul.mubr.bf16.gmra.mrb[8].mxu0 %v1238_v42 }
  0x34   :  { %703 = vmatmul.mubr.bf16.gmra.mrb[8].mxu1 %v1239_v43  ;;  %590 = vmatprep.mubr.bf16.mxu0 %v1240_v44 }
  0x35   :  { %710 = vmatprep.mubr.bf16.mxu1 %v1242_v45 }
  0x3b   :  { %591 = vmatmul.mubr.bf16.gmra.mrb[12].mxu0 %v1244_v46 }
  0x3c   :  { %711 = vmatmul.mubr.bf16.gmra.mrb[12].mxu1 %v1245_v47  ;;  %598 = vmatprep.mubr.bf16.mxu0 %v1246_v48 }
  0x3d   :  { %718 = vmatprep.mubr.bf16.mxu1 %v1248_v49 }
  0x43   :  { %599 = vmatmul.mubr.bf16.gmra.mrb[16].mxu0 %v1250_v50 }
  0x44   :  { %719 = vmatmul.mubr.bf16.gmra.mrb[16].mxu1 %v1251_v51  ;;  %606 = vmatprep.mubr.bf16.mxu0 %v1252_v52 }
  0x45   :  { %726 = vmatprep.mubr.bf16.mxu1 %v1254_v53 }
  0x4b   :  { %607 = vmatmul.mubr.bf16.gmra.mrb[20].mxu0 %v1256_v54 }
  0x4c   :  { %727 = vmatmul.mubr.bf16.gmra.mrb[20].mxu1 %v1257_v55  ;;  %614 = vmatprep.mubr.bf16.mxu0 %v1258_v56 }
  0x4d   :  { %734 = vmatprep.mubr.bf16.mxu1 %v1260_v57 }
  0x53   :  { %615 = vmatmul.mubr.bf16.gmra.mrb[24].mxu0 %v1262_v58 }
  0x54   :  { %735 = vmatmul.mubr.bf16.gmra.mrb[24].mxu1 %v1263_v59  ;;  %622 = vmatprep.mubr.bf16.mxu0 %v1264_v60 }
  0x55   :  { %742 = vmatprep.mubr.bf16.mxu1 %v1266_v61 }
  0x5b   :  { %623 = vmatmul.mubr.bf16.gmra.mrb[28].mxu0 %v1268_v62 }
  0x5c   :  { %743 = vmatmul.mubr.bf16.gmra.mrb[28].mxu1 %v1269_v63  ;;  %630 = vmatprep.mubr.bf16.mxu0 %v1270_v0 }
  0x5d   :  { %750 = vmatprep.mubr.bf16.mxu1 %v1272_v1 }
  0x63   :  { %631 = vmatmul.mubr.bf16.gmra.mrb[32].mxu0 %v1274_v2 }
  0x64   :  { %751 = vmatmul.mubr.bf16.gmra.mrb[32].mxu1 %v1275_v3  ;;  %638 = vmatprep.mubr.bf16.mxu0 %v1276_v4 }
  0x65   :  { %758 = vmatprep.mubr.bf16.mxu1 %v1278_v5 }
  0x6b   :  { %639 = vmatmul.mubr.bf16.gmra.mrb[36].mxu0 %v1280_v8 }
  0x6c   :  { %759 = vmatmul.mubr.bf16.gmra.mrb[36].mxu1 %v1281_v9  ;;  %646 = vmatprep.mubr.bf16.mxu0 %v949_v10 }
  0x6d   :  { %766 = vmatprep.mubr.bf16.mxu1 %v951_v11 }
  0x73   :  { %647 = vmatmul.mubr.bf16.gmra.mrb[40].mxu0 %v948_v12 }
  0x74   :  { %767 = vmatmul.mubr.bf16.gmra.mrb[40].mxu1 %v950_v13 }
  0xf6   :  { %v1042_v14 = vpop.f32.mrb[0].mxu0 }
  0xf7   :  { %v1124_v15 = vpop.f32.mrb[0].mxu1  ;;  %v1043_v17 = vpop.f32.mrb[1].mxu0 }
  0xf8   :  { %v1044_v18 = vadd.f32 %v1043_v17, %v1042_v14  ;;  %v1125_v19 = vpop.f32.mrb[1].mxu1  ;;  %v1045_v20 = vpop.f32.mrb[2].mxu0 }
  0xf9   :  { %v1126_v21 = vadd.f32 %v1125_v19, %v1124_v15  ;;  %v1127_v22 = vpop.f32.mrb[2].mxu1  ;;  %v1046_v23 = vpop.f32.mrb[3].mxu0 }
  0xfa   :  { %v569_v24 = vadd.f32 %v1044_v18, %v1531_v16  ;;  %v1047_v25 = vadd.f32 %v1046_v23, %v1045_v20  ;;  %v1128_v26 = vpop.f32.mrb[3].mxu1 }
  0xfb   :  { %v1129_v27 = vadd.f32 %v1128_v26, %v1127_v22 }
  0xfc   :  { %v689_v28 = vadd.f32 %v1126_v21, %v569_v24  ;;  %v572_v29 = vadd.f32 %v1047_v25, %v1531_v16 }
  0xfe   :  { %v774_v30 = vmax.f32 %v689_v28, 0.0  ;;  %v692_v31 = vadd.f32 %v1129_v27, %v572_v29  ;;  %v1048_v32 = vpop.f32.mrb[4].mxu0 }
  0xff   :  { %v1130_v33 = vpop.f32.mrb[4].mxu1  ;;  %v1049_v34 = vpop.f32.mrb[5].mxu0 }
 0x100   :  { %v1005_v35 = vpack.c.bf16 %v774_v30, %v774_v30  ;;  %v775_v36 = vmax.f32 %v692_v31, 0.0  ;;  %v1050_v37 = vadd.f32 %v1049_v34, %v1048_v32  ;;  %v1131_v38 = vpop.f32.mrb[5].mxu1  ;;  %v1051_v39 = vpop.f32.mrb[6].mxu0 }
 0x101   :  { %v1132_v40 = vadd.f32 %v1131_v38, %v1130_v33  ;;  %v1133_v41 = vpop.f32.mrb[6].mxu1  ;;  %v1052_v42 = vpop.f32.mrb[7].mxu0 }
 0x102   :  { %881 = vst.msk [vmem:[%s1640_s3] sm:$0xf] %vm880_vm0, %v1005_v35  ;;  %v1006_v43 = vpack.c.bf16 %v775_v36, %v775_v36  ;;  %v577_v44 = vadd.f32 %v1050_v37, %v1531_v16  ;;  %v1053_v45 = vadd.f32 %v1052_v42, %v1051_v39  ;;  %v1134_v46 = vpop.f32.mrb[7].mxu1 }
 0x103   :  { %v1135_v47 = vadd.f32 %v1134_v46, %v1133_v41 }
 0x104   :  { %882 = vst.msk [vmem:[%s1640_s3 + $0x4] sm:$0xf] %vm880_vm0, %v1006_v43  ;;  %v697_v48 = vadd.f32 %v1132_v40, %v577_v44  ;;  %v580_v49 = vadd.f32 %v1053_v45, %v1531_v16 }
 0x106   :  { %v776_v50 = vmax.f32 %v697_v48, 0.0  ;;  %v700_v51 = vadd.f32 %v1135_v47, %v580_v49  ;;  %v1054_v52 = vpop.f32.mrb[8].mxu0 }
 0x107   :  { %v1136_v53 = vpop.f32.mrb[8].mxu1  ;;  %v1055_v54 = vpop.f32.mrb[9].mxu0 }
 0x108   :  { %v1007_v55 = vpack.c.bf16 %v776_v50, %v776_v50  ;;  %v777_v56 = vmax.f32 %v700_v51, 0.0  ;;  %v1056_v57 = vadd.f32 %v1055_v54, %v1054_v52  ;;  %v1137_v58 = vpop.f32.mrb[9].mxu1  ;;  %v1057_v59 = vpop.f32.mrb[10].mxu0 }
 0x109   :  { %v1138_v60 = vadd.f32 %v1137_v58, %v1136_v53  ;;  %v1139_v61 = vpop.f32.mrb[10].mxu1  ;;  %v1058_v62 = vpop.f32.mrb[11].mxu0 }
 0x10a   :  { %883 = vst.msk [vmem:[%s1640_s3 + $0x8] sm:$0xf] %vm880_vm0, %v1007_v55  ;;  %v1008_v63 = vpack.c.bf16 %v777_v56, %v777_v56  ;;  %v585_v0 = vadd.f32 %v1056_v57, %v1531_v16  ;;  %v1059_v1 = vadd.f32 %v1058_v62, %v1057_v59  ;;  %v1140_v2 = vpop.f32.mrb[11].mxu1 }
 0x10b   :  { %v1141_v3 = vadd.f32 %v1140_v2, %v1139_v61 }
 0x10c   :  { %884 = vst.msk [vmem:[%s1640_s3 + $0xc] sm:$0xf] %vm880_vm0, %v1008_v63  ;;  %v705_v4 = vadd.f32 %v1138_v60, %v585_v0  ;;  %v588_v5 = vadd.f32 %v1059_v1, %v1531_v16 }
 0x10e   :  { %v778_v6 = vmax.f32 %v705_v4, 0.0  ;;  %v708_v7 = vadd.f32 %v1141_v3, %v588_v5  ;;  %v1060_v8 = vpop.f32.mrb[12].mxu0 }
 0x10f   :  { %v1142_v9 = vpop.f32.mrb[12].mxu1  ;;  %v1061_v10 = vpop.f32.mrb[13].mxu0 }
 0x110   :  { %v1009_v11 = vpack.c.bf16 %v778_v6, %v778_v6  ;;  %v779_v12 = vmax.f32 %v708_v7, 0.0  ;;  %v1062_v13 = vadd.f32 %v1061_v10, %v1060_v8  ;;  %v1143_v14 = vpop.f32.mrb[13].mxu1  ;;  %v1063_v15 = vpop.f32.mrb[14].mxu0 }
 0x111   :  { %v1144_v17 = vadd.f32 %v1143_v14, %v1142_v9  ;;  %v1145_v18 = vpop.f32.mrb[14].mxu1  ;;  %v1064_v19 = vpop.f32.mrb[15].mxu0 }
 0x112   :  { %885 = vst.msk [vmem:[%s1640_s3 + $0x10] sm:$0xf] %vm880_vm0, %v1009_v11  ;;  %v1010_v20 = vpack.c.bf16 %v779_v12, %v779_v12  ;;  %v593_v21 = vadd.f32 %v1062_v13, %v1531_v16  ;;  %v1065_v22 = vadd.f32 %v1064_v19, %v1063_v15  ;;  %v1146_v23 = vpop.f32.mrb[15].mxu1 }
 0x113   :  { %v1147_v24 = vadd.f32 %v1146_v23, %v1145_v18 }
 0x114   :  { %886 = vst.msk [vmem:[%s1640_s3 + $0x14] sm:$0xf] %vm880_vm0, %v1010_v20  ;;  %v713_v25 = vadd.f32 %v1144_v17, %v593_v21  ;;  %v596_v26 = vadd.f32 %v1065_v22, %v1531_v16 }
 0x116   :  { %v780_v27 = vmax.f32 %v713_v25, 0.0  ;;  %v716_v28 = vadd.f32 %v1147_v24, %v596_v26  ;;  %v1066_v29 = vpop.f32.mrb[16].mxu0 }
 0x117   :  { %v1148_v30 = vpop.f32.mrb[16].mxu1  ;;  %v1067_v31 = vpop.f32.mrb[17].mxu0 }
 0x118   :  { %v1011_v32 = vpack.c.bf16 %v780_v27, %v780_v27  ;;  %v781_v33 = vmax.f32 %v716_v28, 0.0  ;;  %v1068_v34 = vadd.f32 %v1067_v31, %v1066_v29  ;;  %v1149_v35 = vpop.f32.mrb[17].mxu1  ;;  %v1069_v36 = vpop.f32.mrb[18].mxu0 }
 0x119   :  { %v1150_v37 = vadd.f32 %v1149_v35, %v1148_v30  ;;  %v1151_v38 = vpop.f32.mrb[18].mxu1  ;;  %v1070_v39 = vpop.f32.mrb[19].mxu0 }
 0x11a   :  { %887 = vst.msk [vmem:[%s1640_s3 + $0x18] sm:$0xf] %vm880_vm0, %v1011_v32  ;;  %v1012_v40 = vpack.c.bf16 %v781_v33, %v781_v33  ;;  %v601_v41 = vadd.f32 %v1068_v34, %v1531_v16  ;;  %v1071_v42 = vadd.f32 %v1070_v39, %v1069_v36  ;;  %v1152_v43 = vpop.f32.mrb[19].mxu1 }
 0x11b   :  { %v1153_v44 = vadd.f32 %v1152_v43, %v1151_v38 }
 0x11c   :  { %888 = vst.msk [vmem:[%s1640_s3 + $0x1c] sm:$0xf] %vm880_vm0, %v1012_v40  ;;  %v721_v45 = vadd.f32 %v1150_v37, %v601_v41  ;;  %v604_v46 = vadd.f32 %v1071_v42, %v1531_v16 }
 0x11e   :  { %v782_v47 = vmax.f32 %v721_v45, 0.0  ;;  %v724_v48 = vadd.f32 %v1153_v44, %v604_v46  ;;  %v1072_v49 = vpop.f32.mrb[20].mxu0 }
 0x11f   :  { %v1154_v50 = vpop.f32.mrb[20].mxu1  ;;  %v1073_v51 = vpop.f32.mrb[21].mxu0 }
 0x120   :  { %v1013_v52 = vpack.c.bf16 %v782_v47, %v782_v47  ;;  %v783_v53 = vmax.f32 %v724_v48, 0.0  ;;  %v1074_v54 = vadd.f32 %v1073_v51, %v1072_v49  ;;  %v1155_v55 = vpop.f32.mrb[21].mxu1  ;;  %v1075_v56 = vpop.f32.mrb[22].mxu0 }
 0x121   :  { %v1156_v57 = vadd.f32 %v1155_v55, %v1154_v50  ;;  %v1157_v58 = vpop.f32.mrb[22].mxu1  ;;  %v1076_v59 = vpop.f32.mrb[23].mxu0 }
 0x122   :  { %889 = vst.msk [vmem:[%s1640_s3 + $0x20] sm:$0xf] %vm880_vm0, %v1013_v52  ;;  %v1014_v60 = vpack.c.bf16 %v783_v53, %v783_v53  ;;  %v609_v61 = vadd.f32 %v1074_v54, %v1531_v16  ;;  %v1077_v62 = vadd.f32 %v1076_v59, %v1075_v56  ;;  %v1158_v63 = vpop.f32.mrb[23].mxu1 }
 0x123   :  { %v1159_v0 = vadd.f32 %v1158_v63, %v1157_v58 }
 0x124   :  { %890 = vst.msk [vmem:[%s1640_s3 + $0x24] sm:$0xf] %vm880_vm0, %v1014_v60  ;;  %v729_v1 = vadd.f32 %v1156_v57, %v609_v61  ;;  %v612_v2 = vadd.f32 %v1077_v62, %v1531_v16 }
 0x126   :  { %v784_v3 = vmax.f32 %v729_v1, 0.0  ;;  %v732_v4 = vadd.f32 %v1159_v0, %v612_v2  ;;  %v1078_v5 = vpop.f32.mrb[24].mxu0 }
 0x127   :  { %v1160_v6 = vpop.f32.mrb[24].mxu1  ;;  %v1079_v7 = vpop.f32.mrb[25].mxu0 }
 0x128   :  { %v1015_v8 = vpack.c.bf16 %v784_v3, %v784_v3  ;;  %v785_v9 = vmax.f32 %v732_v4, 0.0  ;;  %v1080_v10 = vadd.f32 %v1079_v7, %v1078_v5  ;;  %v1161_v11 = vpop.f32.mrb[25].mxu1  ;;  %v1081_v12 = vpop.f32.mrb[26].mxu0 }
 0x129   :  { %v1162_v13 = vadd.f32 %v1161_v11, %v1160_v6  ;;  %v1163_v14 = vpop.f32.mrb[26].mxu1  ;;  %v1082_v15 = vpop.f32.mrb[27].mxu0 }
 0x12a   :  { %891 = vst.msk [vmem:[%s1640_s3 + $0x28] sm:$0xf] %vm880_vm0, %v1015_v8  ;;  %v1016_v17 = vpack.c.bf16 %v785_v9, %v785_v9  ;;  %v617_v18 = vadd.f32 %v1080_v10, %v1531_v16  ;;  %v1083_v19 = vadd.f32 %v1082_v15, %v1081_v12  ;;  %v1164_v20 = vpop.f32.mrb[27].mxu1 }
 0x12b   :  { %v1165_v21 = vadd.f32 %v1164_v20, %v1163_v14 }
 0x12c   :  { %892 = vst.msk [vmem:[%s1640_s3 + $0x2c] sm:$0xf] %vm880_vm0, %v1016_v17  ;;  %v737_v22 = vadd.f32 %v1162_v13, %v617_v18  ;;  %v620_v23 = vadd.f32 %v1083_v19, %v1531_v16 }
 0x12e   :  { %v786_v24 = vmax.f32 %v737_v22, 0.0  ;;  %v740_v25 = vadd.f32 %v1165_v21, %v620_v23  ;;  %v1084_v26 = vpop.f32.mrb[28].mxu0 }
 0x12f   :  { %v1166_v27 = vpop.f32.mrb[28].mxu1  ;;  %v1085_v28 = vpop.f32.mrb[29].mxu0 }
 0x130   :  { %v1017_v29 = vpack.c.bf16 %v786_v24, %v786_v24  ;;  %v787_v30 = vmax.f32 %v740_v25, 0.0  ;;  %v1086_v31 = vadd.f32 %v1085_v28, %v1084_v26  ;;  %v1167_v32 = vpop.f32.mrb[29].mxu1  ;;  %v1087_v33 = vpop.f32.mrb[30].mxu0 }
 0x131   :  { %v1168_v34 = vadd.f32 %v1167_v32, %v1166_v27  ;;  %v1169_v35 = vpop.f32.mrb[30].mxu1  ;;  %v1088_v36 = vpop.f32.mrb[31].mxu0 }
 0x132   :  { %893 = vst.msk [vmem:[%s1640_s3 + $0x30] sm:$0xf] %vm880_vm0, %v1017_v29  ;;  %v1018_v37 = vpack.c.bf16 %v787_v30, %v787_v30  ;;  %v625_v38 = vadd.f32 %v1086_v31, %v1531_v16  ;;  %v1089_v39 = vadd.f32 %v1088_v36, %v1087_v33  ;;  %v1170_v40 = vpop.f32.mrb[31].mxu1 }
 0x133   :  { %v1171_v41 = vadd.f32 %v1170_v40, %v1169_v35 }
 0x134   :  { %894 = vst.msk [vmem:[%s1640_s3 + $0x34] sm:$0xf] %vm880_vm0, %v1018_v37  ;;  %v745_v42 = vadd.f32 %v1168_v34, %v625_v38  ;;  %v628_v43 = vadd.f32 %v1089_v39, %v1531_v16 }
 0x136   :  { %v788_v44 = vmax.f32 %v745_v42, 0.0  ;;  %v748_v45 = vadd.f32 %v1171_v41, %v628_v43  ;;  %v1090_v46 = vpop.f32.mrb[32].mxu0 }
 0x137   :  { %v1172_v47 = vpop.f32.mrb[32].mxu1  ;;  %v1091_v48 = vpop.f32.mrb[33].mxu0 }
 0x138   :  { %v1019_v49 = vpack.c.bf16 %v788_v44, %v788_v44  ;;  %v789_v50 = vmax.f32 %v748_v45, 0.0  ;;  %v1092_v51 = vadd.f32 %v1091_v48, %v1090_v46  ;;  %v1173_v52 = vpop.f32.mrb[33].mxu1  ;;  %v1093_v53 = vpop.f32.mrb[34].mxu0 }
 0x139   :  { %v1174_v54 = vadd.f32 %v1173_v52, %v1172_v47  ;;  %v1175_v55 = vpop.f32.mrb[34].mxu1  ;;  %v1094_v56 = vpop.f32.mrb[35].mxu0 }
 0x13a   :  { %895 = vst.msk [vmem:[%s1640_s3 + $0x38] sm:$0xf] %vm880_vm0, %v1019_v49  ;;  %v1020_v57 = vpack.c.bf16 %v789_v50, %v789_v50  ;;  %v633_v58 = vadd.f32 %v1092_v51, %v1531_v16  ;;  %v1095_v59 = vadd.f32 %v1094_v56, %v1093_v53  ;;  %v1176_v60 = vpop.f32.mrb[35].mxu1 }
 0x13b   :  { %v1177_v61 = vadd.f32 %v1176_v60, %v1175_v55 }
 0x13c   :  { %896 = vst.msk [vmem:[%s1640_s3 + $0x3c] sm:$0xf] %vm880_vm0, %v1020_v57  ;;  %v753_v62 = vadd.f32 %v1174_v54, %v633_v58  ;;  %v636_v63 = vadd.f32 %v1095_v59, %v1531_v16 }
 0x13e   :  { %v790_v0 = vmax.f32 %v753_v62, 0.0  ;;  %v756_v1 = vadd.f32 %v1177_v61, %v636_v63  ;;  %v1096_v2 = vpop.f32.mrb[36].mxu0 }
 0x13f   :  { %v1178_v3 = vpop.f32.mrb[36].mxu1  ;;  %v1097_v4 = vpop.f32.mrb[37].mxu0 }
 0x140   :  { %v1021_v5 = vpack.c.bf16 %v790_v0, %v790_v0  ;;  %v791_v6 = vmax.f32 %v756_v1, 0.0  ;;  %v1098_v7 = vadd.f32 %v1097_v4, %v1096_v2  ;;  %v1179_v8 = vpop.f32.mrb[37].mxu1  ;;  %v1099_v9 = vpop.f32.mrb[38].mxu0 }
 0x141   :  { %v1180_v10 = vadd.f32 %v1179_v8, %v1178_v3  ;;  %v1181_v11 = vpop.f32.mrb[38].mxu1  ;;  %v1100_v12 = vpop.f32.mrb[39].mxu0 }
 0x142   :  { %897 = vst.msk [vmem:[%s1640_s3 + $0x40] sm:$0xf] %vm880_vm0, %v1021_v5  ;;  %v1022_v13 = vpack.c.bf16 %v791_v6, %v791_v6  ;;  %v641_v14 = vadd.f32 %v1098_v7, %v1531_v16  ;;  %v1101_v15 = vadd.f32 %v1100_v12, %v1099_v9  ;;  %v1182_v17 = vpop.f32.mrb[39].mxu1 }
 0x143   :  { %v1183_v18 = vadd.f32 %v1182_v17, %v1181_v11 }
 0x144   :  { %898 = vst.msk [vmem:[%s1640_s3 + $0x44] sm:$0xf] %vm880_vm0, %v1022_v13  ;;  %v761_v19 = vadd.f32 %v1180_v10, %v641_v14  ;;  %v644_v20 = vadd.f32 %v1101_v15, %v1531_v16 }
 0x146   :  { %v792_v21 = vmax.f32 %v761_v19, 0.0  ;;  %v764_v22 = vadd.f32 %v1183_v18, %v644_v20  ;;  %v1102_v23 = vpop.f32.mrb[40].mxu0 }
 0x147   :  { %v1184_v24 = vpop.f32.mrb[40].mxu1  ;;  %v1103_v25 = vpop.f32.mrb[41].mxu0 }
 0x148   :  { %v1023_v26 = vpack.c.bf16 %v792_v21, %v792_v21  ;;  %v793_v27 = vmax.f32 %v764_v22, 0.0  ;;  %v1104_v28 = vadd.f32 %v1103_v25, %v1102_v23  ;;  %v1185_v29 = vpop.f32.mrb[41].mxu1  ;;  %v1105_v30 = vpop.f32.mrb[42].mxu0 }
 0x149   :  { %v1186_v31 = vadd.f32 %v1185_v29, %v1184_v24  ;;  %v1187_v32 = vpop.f32.mrb[42].mxu1  ;;  %v1106_v33 = vpop.f32.mrb[43].mxu0 }
 0x14a   :  { %899 = vst.msk [vmem:[%s1640_s3 + $0x48] sm:$0xf] %vm880_vm0, %v1023_v26  ;;  %v1024_v34 = vpack.c.bf16 %v793_v27, %v793_v27  ;;  %v649_v35 = vadd.f32 %v1104_v28, %v1531_v16  ;;  %v1188_v36 = vpop.f32.mrb[43].mxu1 }
 0x14c   :  { %900 = vst.msk [vmem:[%s1640_s3 + $0x4c] sm:$0xf] %vm880_vm0, %v1024_v34  ;;  %v769_v37 = vadd.f32 %v1186_v31, %v649_v35 }
 0x14e   :  { %v794_v38 = vmax.f32 %v769_v37, 0.0 }
 0x150   :  { %v1025_v39 = vpack.c.bf16 %v794_v38, %v794_v38 }
 0x152   :  { %902 = vst.msk [vmem:[%s1640_s3 + $0x50] sm:$0x1] %vm901_vm1, %v1025_v39 }

// kernel: actor_forward.6
= control target key start
LH: loop header
LB: loop body
LE: loop exit
PB: predicated region body
PF: predicated region fallthrough
CT: control target
= control target key end

     0   :  { %v1248_v34 = vmov 0.0   ;;  %vm1249_vm0 = vmmov 0   ;;  %vm516_vm1 = vcmask 523264   ;;  %vm868_vm2 = vcmask 519168   ;;  %s1599_s1 = inlined_call_operand.vmem [shape: bf16[576,64], index: 1, kind: input, shape index: {}]   ;;  %s1600_s0 = inlined_call_operand.vmem [shape: bf16[98,576], index: 0, kind: input, shape index: {}]   ;;  %s1601_s2 = inlined_call_operand.vmem [shape: f32[1,64], index: 2, kind: input, shape index: {}]   ;;  %s1602_s3 = inlined_call_operand.vmem [shape: bf16[98,64], index: 3, kind: output, shape index: {}]  }
   0x1   :  { %v1165_v0 = vld [vmem:[%s1599_s1 + $0x40] sm:$0xff]   ;;  %v1169_v4 = vld [vmem:[%s1599_s1 + $0x48] sm:$0xff]   ;;  %v1173_v8 = vld [vmem:[%s1599_s1 + $0x50] sm:$0xff]   ;;  %vm881_vm3 = vcmask 516096  }
   0x2   :  { %v1166_v1 = vld [vmem:[%s1599_s1 + $0xc0] sm:$0xff]   ;;  %992 = vmatprep.subr.bf16.mxu0 %v1165_v0  ;;  %v1170_v5 = vld [vmem:[%s1599_s1 + $0xc8] sm:$0xff]   ;;  %v1174_v9 = vld [vmem:[%s1599_s1 + $0xd0] sm:$0xff]  }
   0x3   :  { %v1167_v2 = vld [vmem:[%s1599_s1] sm:$0xff]   ;;  %1050 = vmatprep.subr.bf16.mxu1 %v1166_v1  ;;  %v1171_v6 = vld [vmem:[%s1599_s1 + $0x8] sm:$0xff]   ;;  %v1175_v10 = vld [vmem:[%s1599_s1 + $0x10] sm:$0xff]  }
   0x4   :  { %v1168_v3 = vld [vmem:[%s1599_s1 + $0x80] sm:$0xff]   ;;  %993 = vmatpush3.bf16.msra.mxu0 %v1167_v2  ;;  %v1172_v7 = vld [vmem:[%s1599_s1 + $0x88] sm:$0xff]   ;;  %v1176_v11 = vld [vmem:[%s1599_s1 + $0x90] sm:$0xff]  }
   0x5   :  { %1051 = vmatpush3.bf16.msra.mxu1 %v1168_v3  ;;  %994 = vmatprep.subr.bf16.mxu0 %v1169_v4  ;;  %v1177_v12 = vld [vmem:[%s1599_s1 + $0x58] sm:$0xff]   ;;  %v1181_v16 = vld [vmem:[%s1599_s1 + $0x60] sm:$0xff]   ;;  %v1185_v20 = vld [vmem:[%s1599_s1 + $0x68] sm:$0xff]  }
   0x6   :  { %1052 = vmatprep.subr.bf16.mxu1 %v1170_v5  ;;  %v1178_v13 = vld [vmem:[%s1599_s1 + $0xd8] sm:$0xff]   ;;  %v1182_v17 = vld [vmem:[%s1599_s1 + $0xe0] sm:$0xff]   ;;  %v1186_v21 = vld [vmem:[%s1599_s1 + $0xe8] sm:$0xff]  }
   0x7   :  { %v1179_v14 = vld [vmem:[%s1599_s1 + $0x18] sm:$0xff]   ;;  %v1183_v18 = vld [vmem:[%s1599_s1 + $0x20] sm:$0xff]   ;;  %v1187_v22 = vld [vmem:[%s1599_s1 + $0x28] sm:$0xff]  }
   0x8   :  { %995 = vmatpush3.bf16.msra.mxu0 %v1171_v6  ;;  %v1180_v15 = vld [vmem:[%s1599_s1 + $0x98] sm:$0xff]   ;;  %v1184_v19 = vld [vmem:[%s1599_s1 + $0xa0] sm:$0xff]   ;;  %v1188_v23 = vld [vmem:[%s1599_s1 + $0xa8] sm:$0xff]  }
   0x9   :  { %1053 = vmatpush3.bf16.msra.mxu1 %v1172_v7  ;;  %996 = vmatprep.subr.bf16.mxu0 %v1173_v8  ;;  %v1189_v24 = vld [vmem:[%s1599_s1 + $0x70] sm:$0xff]   ;;  %v1193_v28 = vld [vmem:[%s1599_s1 + $0x78] sm:$0xff]   ;;  %v1202_v36 = vld [vmem:[%s1600_s0 + $0xc] ss:$20 sps:$4 sm:$0xff]  }
   0xa   :  { %1054 = vmatprep.subr.bf16.mxu1 %v1174_v9  ;;  %v1190_v25 = vld [vmem:[%s1599_s1 + $0xf0] sm:$0xff]   ;;  %v1194_v29 = vld [vmem:[%s1599_s1 + $0xf8] sm:$0xff]   ;;  %v1203_v37 = vld [vmem:[%s1599_s1 + $0x100] sm:$0xff]   ;;  %658 = vmatprep.mubr.bf16.mxu1 %v1202_v36 }
   0xb   :  { %v1191_v26 = vld [vmem:[%s1599_s1 + $0x30] sm:$0xff]   ;;  %v1195_v30 = vld [vmem:[%s1599_s1 + $0x38] sm:$0xff]   ;;  %v1204_v38 = vld [vmem:[%s1600_s0 + $0x2c] ss:$20 sps:$4 sm:$0xff]  }
   0xc   :  { %997 = vmatpush3.bf16.msra.mxu0 %v1175_v10  ;;  %v1192_v27 = vld [vmem:[%s1599_s1 + $0xb0] sm:$0xff]   ;;  %v1196_v31 = vld [vmem:[%s1599_s1 + $0xb8] sm:$0xff]   ;;  %v1214_v43 = vld [vmem:[%s1599_s1 + $0x108] sm:$0xff]  }
   0xd   :  { %1055 = vmatpush3.bf16.msra.mxu1 %v1176_v11  ;;  %998 = vmatprep.subr.bf16.mxu0 %v1177_v12  ;;  %v1197_v32 = vld [vmem:[%s1600_s0] ss:$20 sps:$4 sm:$0xff]   ;;  %v1199_v33 = vld [vmem:[%s1600_s0 + $0x4] ss:$20 sps:$4 sm:$0xff]   ;;  %v1200_v35 = vld [vmem:[%s1600_s0 + $0x8] ss:$20 sps:$4 sm:$0xff]  }
   0xe   :  { %1056 = vmatprep.subr.bf16.mxu1 %v1178_v13  ;;  %570 = vmatprep.mubr.bf16.mxu0 %v1199_v33  ;;  %v1206_v39 = vld [vmem:[%s1600_s0 + $0x34] ss:$20 sps:$4 sm:$0xff]   ;;  %v1209_v41 = vld [vmem:[%s1600_s0 + $0x30] ss:$20 sps:$4 sm:$0xff]   ;;  %v1216_v47 = vld [vmem:[%s1600_s0 + $0x58] ss:$20 sps:$4 sm:$0xff]  }
   0xf   :  { %v1208_v40 = vld [vmem:[%s1600_s0 + $0x28] ss:$20 sps:$4 sm:$0xff]   ;;  %v1223_v45 = vld [vmem:[%s1599_s1 + $0x110] sm:$0xff]   ;;  %v1219_v49 = vld [vmem:[%s1600_s0 + $0x84] ss:$20 sps:$4 sm:$0xff]  }
  0x10   :  { %999 = vmatpush3.bf16.msra.mxu0 %v1179_v14  ;;  %v1210_v42 = vld [vmem:[%s1600_s0 + $0x54] ss:$20 sps:$4 sm:$0xff]   ;;  %v1212_v44 = vld [vmem:[%s1600_s0 + $0x5c] ss:$20 sps:$4 sm:$0xff]   ;;  %v1221_v51 = vld [vmem:[%s1600_s0 + $0x78] ss:$20 sps:$4 sm:$0xff]  }
  0x11   :  { %1057 = vmatpush3.bf16.msra.mxu1 %v1180_v15  ;;  %1000 = vmatprep.subr.bf16.mxu0 %v1181_v16  ;;  %v1215_v46 = vld [vmem:[%s1600_s0 + $0x50] ss:$20 sps:$4 sm:$0xff]   ;;  %v1236_v50 = vld [vmem:[%s1599_s1 + $0x118] sm:$0xff]   ;;  %v1222_v52 = vld [vmem:[%s1600_s0 + $0x80] ss:$20 sps:$4 sm:$0xff]  }
  0x12   :  { %1058 = vmatprep.subr.bf16.mxu1 %v1182_v17  ;;  %v1217_v48 = vld [vmem:[%s1600_s0 + $0x7c] ss:$20 sps:$4 sm:$0xff]   ;;  %v1224_v53 = vld [vmem:[%s1600_s0 + $0xa4] ss:$20 sps:$4 sm:$0xff]   ;;  %v1226_v54 = vld [vmem:[%s1600_s0 + $0xac] ss:$20 sps:$4 sm:$0xff]  }
  0x13   :  { %v1228_v55 = vld [vmem:[%s1600_s0 + $0xa0] ss:$20 sps:$4 sm:$0xff]   ;;  %v1229_v56 = vld [vmem:[%s1600_s0 + $0xa8] ss:$20 sps:$4 sm:$0xff]   ;;  %v1235_v62 = vld [vmem:[%s1600_s0 + $0xd0] ss:$20 sps:$4 sm:$0xff]  }
  0x14   :  { %1001 = vmatpush3.bf16.msra.mxu0 %v1183_v18  ;;  %v1230_v57 = vld [vmem:[%s1600_s0 + $0xcc] ss:$20 sps:$4 sm:$0xff]   ;;  %v1232_v58 = vld [vmem:[%s1600_s0 + $0xd4] ss:$20 sps:$4 sm:$0xff]   ;;  %v52_v60 = vld [vmem:[%s1600_s0 + $0xf8] sm:$0x11] }
  0x15   :  { %1059 = vmatpush3.bf16.msra.mxu1 %v1184_v19  ;;  %1002 = vmatprep.subr.bf16.mxu0 %v1185_v20  ;;  %v51_v59 = vld [vmem:[%s1600_s0 + $0xf0] sm:$0x11]  ;;  %v1234_v61 = vld [vmem:[%s1600_s0 + $0xc8] ss:$20 sps:$4 sm:$0xff]   ;;  %v921_v0 = vcombine.high %v52_v60, %v52_v60  ;;  %v920_v2 = vcombine.low %v52_v60, %v52_v60  ;;  %v1243_v5 = vld [vmem:[%s1600_s0 + $0x38] ss:$20 sps:$4 sm:$0xff]  }
  0x16   :  { %1060 = vmatprep.subr.bf16.mxu1 %v1186_v21  ;;  %v919_v63 = vcombine.high %v51_v59, %v51_v59  ;;  %v918_v1 = vcombine.low %v51_v59, %v51_v59  ;;  %v1241_v3 = vld [vmem:[%s1600_s0 + $0x10] ss:$20 sps:$4 sm:$0xff]   ;;  %v1244_v6 = vld [vmem:[%s1600_s0 + $0xd8] ss:$20 sps:$4 sm:$0xff]   ;;  %v1245_v7 = vld [vmem:[%s1600_s0 + $0x60] ss:$20 sps:$4 sm:$0xff]  }
  0x17   :  { %v1242_v4 = vld [vmem:[%s1600_s0 + $0xb0] ss:$20 sps:$4 sm:$0xff]   ;;  %v1246_v8 = vld [vmem:[%s1600_s0 + $0x100] ss:$0 sps:$4 sm:$0x11]  }
  0x18   :  { %1003 = vmatpush3.bf16.msra.mxu0 %v1187_v22  ;;  %v1247_v9 = vld [vmem:[%s1600_s0 + $0x88] ss:$20 sps:$4 sm:$0xff]   ;;  %v1509_v11 = vld [vmem:[%s1601_s2] ss:$0 sm:$0xff] }
  0x19   :  { %1061 = vmatpush3.bf16.msra.mxu1 %v1188_v23  ;;  %1004 = vmatprep.subr.bf16.mxu0 %v1189_v24 }
  0x1a   :  { %1062 = vmatprep.subr.bf16.mxu1 %v1190_v25 }
  0x1c   :  { %1005 = vmatpush3.bf16.msra.mxu0 %v1191_v26 }
  0x1d   :  { %1063 = vmatpush3.bf16.msra.mxu1 %v1192_v27  ;;  %1006 = vmatprep.subr.bf16.mxu0 %v1193_v28 }
  0x1e   :  { %1064 = vmatprep.subr.bf16.mxu1 %v1194_v29 }
  0x20   :  { %1007 = vmatpush3.bf16.msra.mxu0 %v1195_v30 }
  0x21   :  { %1065 = vmatpush3.bf16.msra.mxu1 %v1196_v31  ;;  %1119 = vmatprep.subr.bf16.mxu0 %v1248_v34 }
  0x22   :  { %1155 = vmatprep.subr.bf16.mxu1 %v1248_v34 }
  0x23   :  { %571 = vmatmul.mubr.bf16.vlgmr.msra.gmra.mrb[0].mxu0 %v1197_v32 }
  0x24   :  { %659 = vmatmul.mubr.bf16.vlgmr.msra.gmra.mrb[0].mxu1 %v1200_v35  ;;  %1120 = vmatpush3.bf16.msra.mxu0 %v1203_v37 }
  0x25   :  { %578 = vmatprep.mubr.bf16.mxu0 %v1204_v38  ;;  %1159 = vmatpush3.bf16.msra.mxu1 %v1203_v37 }
  0x26   :  { %666 = vmatprep.mubr.bf16.mxu1 %v1206_v39  ;;  %1121 = vmatprep.subr.bf16.mxu0 %v1248_v34 }
  0x27   :  { %1156 = vmatprep.subr.bf16.mxu1 %v1248_v34 }
  0x28   :  { %1122 = vmatpush3.bf16.msra.mxu0 %v1214_v43 }
  0x29   :  { %1160 = vmatpush3.bf16.msra.mxu1 %v1214_v43  ;;  %1123 = vmatprep.subr.bf16.mxu0 %v1248_v34 }
  0x2a   :  { %1157 = vmatprep.subr.bf16.mxu1 %v1248_v34 }
  0x2b   :  { %579 = vmatmul.mubr.bf16.gmra.mrb[4].mxu0 %v1208_v40 }
  0x2c   :  { %667 = vmatmul.mubr.bf16.gmra.mrb[4].mxu1 %v1209_v41  ;;  %586 = vmatprep.mubr.bf16.mxu0 %v1210_v42 }
  0x2d   :  { %674 = vmatprep.mubr.bf16.mxu1 %v1212_v44  ;;  %1124 = vmatpush3.bf16.msra.mxu0 %v1223_v45 }
  0x2e   :  { %1161 = vmatpush3.bf16.msra.mxu1 %v1223_v45  ;;  %1125 = vmatprep.subr.bf16.mxu0 %v1248_v34 }
  0x2f   :  { %1158 = vmatprep.subr.bf16.mxu1 %v1248_v34 }
  0x31   :  { %1126 = vmatpush3.bf16.msra.mxu0 %v1236_v50 }
  0x32   :  { %1162 = vmatpush3.bf16.msra.mxu1 %v1236_v50 }
  0x33   :  { %587 = vmatmul.mubr.bf16.gmra.mrb[8].mxu0 %v1215_v46 }
  0x34   :  { %675 = vmatmul.mubr.bf16.gmra.mrb[8].mxu1 %v1216_v47  ;;  %594 = vmatprep.mubr.bf16.mxu0 %v1217_v48 }
  0x35   :  { %682 = vmatprep.mubr.bf16.mxu1 %v1219_v49 }
  0x3b   :  { %595 = vmatmul.mubr.bf16.gmra.mrb[12].mxu0 %v1221_v51 }
  0x3c   :  { %683 = vmatmul.mubr.bf16.gmra.mrb[12].mxu1 %v1222_v52  ;;  %602 = vmatprep.mubr.bf16.mxu0 %v1224_v53 }
  0x3d   :  { %690 = vmatprep.mubr.bf16.mxu1 %v1226_v54 }
  0x43   :  { %603 = vmatmul.mubr.bf16.gmra.mrb[16].mxu0 %v1228_v55 }
  0x44   :  { %691 = vmatmul.mubr.bf16.gmra.mrb[16].mxu1 %v1229_v56  ;;  %610 = vmatprep.mubr.bf16.mxu0 %v1230_v57 }
  0x45   :  { %698 = vmatprep.mubr.bf16.mxu1 %v1232_v58 }
  0x4b   :  { %611 = vmatmul.mubr.bf16.gmra.mrb[20].mxu0 %v1234_v61 }
  0x4c   :  { %699 = vmatmul.mubr.bf16.gmra.mrb[20].mxu1 %v1235_v62  ;;  %618 = vmatprep.mubr.bf16.mxu0 %v919_v63 }
  0x4d   :  { %706 = vmatprep.mubr.bf16.mxu1 %v921_v0 }
  0x53   :  { %619 = vmatmul.mubr.bf16.gmra.mrb[24].mxu0 %v918_v1 }
  0x54   :  { %707 = vmatmul.mubr.bf16.gmra.mrb[24].mxu1 %v920_v2  ;;  %1127 = vmatprep.mubr.msk.bf16.mxu0 %vm1249_vm0, %v1248_v34 }
  0x55   :  { %1143 = vmatprep.mubr.msk.bf16.mxu1 %vm1249_vm0, %v1248_v34 }
  0x5b   :  { %1128 = vmatmul.mubr.msk.bf16.vlgmr.msra.gmra.mrb[28].mxu0 %vm516_vm1, %v1241_v3 }
  0x5c   :  { %1144 = vmatmul.mubr.msk.bf16.vlgmr.msra.gmra.mrb[28].mxu1 %vm516_vm1, %v1242_v4  ;;  %1131 = vmatprep.mubr.msk.bf16.mxu0 %vm1249_vm0, %v1248_v34 }
  0x5d   :  { %1147 = vmatprep.mubr.msk.bf16.mxu1 %vm1249_vm0, %v1248_v34 }
  0x63   :  { %1132 = vmatmul.mubr.msk.bf16.gmra.mrb[32].mxu0 %vm516_vm1, %v1243_v5 }
  0x64   :  { %1148 = vmatmul.mubr.msk.bf16.gmra.mrb[32].mxu1 %vm516_vm1, %v1244_v6  ;;  %1135 = vmatprep.mubr.msk.bf16.mxu0 %vm1249_vm0, %v1248_v34 }
  0x65   :  { %1151 = vmatprep.mubr.msk.bf16.mxu1 %vm1249_vm0, %v1248_v34 }
  0x6b   :  { %1136 = vmatmul.mubr.msk.bf16.gmra.mrb[36].mxu0 %vm516_vm1, %v1245_v7 }
  0x6c   :  { %1152 = vmatmul.mubr.msk.bf16.gmra.mrb[36].mxu1 %vm516_vm1, %v1246_v8  ;;  %1139 = vmatprep.mubr.msk.bf16.mxu0 %vm1249_vm0, %v1248_v34 }
  0x73   :  { %1140 = vmatmul.mubr.msk.bf16.gmra.mrb[40].mxu0 %vm516_vm1, %v1247_v9 }
  0xf6   :  { %v1008_v10 = vpop.f32.mrb[0].mxu0 }
  0xf7   :  { %v1009_v12 = vpop.f32.mrb[1].mxu0  ;;  %v1066_v13 = vpop.f32.mrb[0].mxu1 }
  0xf8   :  { %v1010_v14 = vadd.f32 %v1009_v12, %v1008_v10  ;;  %v1011_v15 = vpop.f32.mrb[2].mxu0  ;;  %v1067_v16 = vpop.f32.mrb[1].mxu1 }
  0xf9   :  { %v1012_v17 = vpop.f32.mrb[3].mxu0  ;;  %v1068_v18 = vadd.f32 %v1067_v16, %v1066_v13  ;;  %v1069_v19 = vpop.f32.mrb[2].mxu1 }
  0xfa   :  { %v573_v20 = vadd.f32 %v1010_v14, %v1509_v11  ;;  %v1013_v21 = vadd.f32 %v1012_v17, %v1011_v15  ;;  %v1070_v22 = vpop.f32.mrb[3].mxu1 }
  0xfb   :  { %v1071_v23 = vadd.f32 %v1070_v22, %v1069_v19 }
  0xfc   :  { %v576_v24 = vadd.f32 %v1013_v21, %v1509_v11  ;;  %v1513_v25 = vadd.f32 %v1068_v18, %v573_v20 }
  0xfe   :  { %v1014_v26 = vpop.f32.mrb[4].mxu0  ;;  %v1515_v27 = vadd.f32 %v1071_v23, %v576_v24 }
  0xff   :  { %v1015_v28 = vpop.f32.mrb[5].mxu0  ;;  %v1072_v29 = vpop.f32.mrb[4].mxu1 }
 0x100   :  { %v1016_v30 = vadd.f32 %v1015_v28, %v1014_v26  ;;  %v1017_v31 = vpop.f32.mrb[6].mxu0  ;;  %v1073_v32 = vpop.f32.mrb[5].mxu1 }
 0x101   :  { %v1018_v33 = vpop.f32.mrb[7].mxu0  ;;  %v1074_v34 = vadd.f32 %v1073_v32, %v1072_v29  ;;  %v1075_v35 = vpop.f32.mrb[6].mxu1 }
 0x102   :  { %v581_v36 = vadd.f32 %v1016_v30, %v1509_v11  ;;  %v1019_v37 = vadd.f32 %v1018_v33, %v1017_v31  ;;  %v1076_v38 = vpop.f32.mrb[7].mxu1 }
 0x103   :  { %v1077_v39 = vadd.f32 %v1076_v38, %v1075_v35 }
 0x104   :  { %v584_v40 = vadd.f32 %v1019_v37, %v1509_v11  ;;  %v1519_v41 = vadd.f32 %v1074_v34, %v581_v36 }
 0x106   :  { %v1020_v42 = vpop.f32.mrb[8].mxu0  ;;  %v1521_v43 = vadd.f32 %v1077_v39, %v584_v40 }
 0x107   :  { %v1021_v44 = vpop.f32.mrb[9].mxu0  ;;  %v1078_v45 = vpop.f32.mrb[8].mxu1 }
 0x108   :  { %v1022_v46 = vadd.f32 %v1021_v44, %v1020_v42  ;;  %v1023_v47 = vpop.f32.mrb[10].mxu0  ;;  %v1079_v48 = vpop.f32.mrb[9].mxu1 }
 0x109   :  { %v1024_v49 = vpop.f32.mrb[11].mxu0  ;;  %v1080_v50 = vadd.f32 %v1079_v48, %v1078_v45  ;;  %v1081_v51 = vpop.f32.mrb[10].mxu1 }
 0x10a   :  { %v589_v52 = vadd.f32 %v1022_v46, %v1509_v11  ;;  %v1025_v53 = vadd.f32 %v1024_v49, %v1023_v47  ;;  %v1082_v54 = vpop.f32.mrb[11].mxu1 }
 0x10b   :  { %v1083_v55 = vadd.f32 %v1082_v54, %v1081_v51 }
 0x10c   :  { %v592_v56 = vadd.f32 %v1025_v53, %v1509_v11  ;;  %v1525_v57 = vadd.f32 %v1080_v50, %v589_v52 }
 0x10e   :  { %v1026_v58 = vpop.f32.mrb[12].mxu0  ;;  %v1527_v59 = vadd.f32 %v1083_v55, %v592_v56 }
 0x10f   :  { %v1027_v60 = vpop.f32.mrb[13].mxu0  ;;  %v1084_v61 = vpop.f32.mrb[12].mxu1 }
 0x110   :  { %v1028_v62 = vadd.f32 %v1027_v60, %v1026_v58  ;;  %v1029_v63 = vpop.f32.mrb[14].mxu0  ;;  %v1085_v0 = vpop.f32.mrb[13].mxu1 }
 0x111   :  { %v1030_v1 = vpop.f32.mrb[15].mxu0  ;;  %v1086_v2 = vadd.f32 %v1085_v0, %v1084_v61  ;;  %v1087_v3 = vpop.f32.mrb[14].mxu1 }
 0x112   :  { %v597_v4 = vadd.f32 %v1028_v62, %v1509_v11  ;;  %v1031_v5 = vadd.f32 %v1030_v1, %v1029_v63  ;;  %v1088_v6 = vpop.f32.mrb[15].mxu1 }
 0x113   :  { %v1089_v7 = vadd.f32 %v1088_v6, %v1087_v3 }
 0x114   :  { %v600_v8 = vadd.f32 %v1031_v5, %v1509_v11  ;;  %v1531_v9 = vadd.f32 %v1086_v2, %v597_v4 }
 0x116   :  { %v1032_v10 = vpop.f32.mrb[16].mxu0  ;;  %v1533_v12 = vadd.f32 %v1089_v7, %v600_v8 }
 0x117   :  { %v1033_v13 = vpop.f32.mrb[17].mxu0  ;;  %v1090_v14 = vpop.f32.mrb[16].mxu1 }
 0x118   :  { %v1034_v15 = vadd.f32 %v1033_v13, %v1032_v10  ;;  %v1035_v16 = vpop.f32.mrb[18].mxu0  ;;  %v1091_v17 = vpop.f32.mrb[17].mxu1 }
 0x119   :  { %v1036_v18 = vpop.f32.mrb[19].mxu0  ;;  %v1092_v19 = vadd.f32 %v1091_v17, %v1090_v14  ;;  %v1093_v20 = vpop.f32.mrb[18].mxu1 }
 0x11a   :  { %v605_v21 = vadd.f32 %v1034_v15, %v1509_v11  ;;  %v1037_v22 = vadd.f32 %v1036_v18, %v1035_v16  ;;  %v1094_v23 = vpop.f32.mrb[19].mxu1 }
 0x11b   :  { %v1095_v24 = vadd.f32 %v1094_v23, %v1093_v20 }
 0x11c   :  { %v608_v26 = vadd.f32 %v1037_v22, %v1509_v11  ;;  %v693_v28 = vadd.f32 %v1092_v19, %v605_v21 }
 0x11e   :  { %v1038_v29 = vpop.f32.mrb[20].mxu0  ;;  %v696_v30 = vadd.f32 %v1095_v24, %v608_v26 }
 0x11f   :  { %v1039_v31 = vpop.f32.mrb[21].mxu0  ;;  %v1096_v32 = vpop.f32.mrb[20].mxu1 }
 0x120   :  { %v1040_v33 = vadd.f32 %v1039_v31, %v1038_v29  ;;  %v1041_v34 = vpop.f32.mrb[22].mxu0  ;;  %v1097_v35 = vpop.f32.mrb[21].mxu1 }
 0x121   :  { %v1042_v36 = vpop.f32.mrb[23].mxu0  ;;  %v1098_v37 = vadd.f32 %v1097_v35, %v1096_v32  ;;  %v1099_v38 = vpop.f32.mrb[22].mxu1 }
 0x122   :  { %v613_v39 = vadd.f32 %v1040_v33, %v1509_v11  ;;  %v1043_v40 = vadd.f32 %v1042_v36, %v1041_v34  ;;  %v1100_v42 = vpop.f32.mrb[23].mxu1 }
 0x123   :  { %v1101_v44 = vadd.f32 %v1100_v42, %v1099_v38 }
 0x124   :  { %v616_v45 = vadd.f32 %v1043_v40, %v1509_v11  ;;  %v701_v46 = vadd.f32 %v1098_v37, %v613_v39 }
 0x126   :  { %v1044_v47 = vpop.f32.mrb[24].mxu0  ;;  %v704_v48 = vadd.f32 %v1101_v44, %v616_v45 }
 0x127   :  { %v1045_v49 = vpop.f32.mrb[25].mxu0  ;;  %v1102_v50 = vpop.f32.mrb[24].mxu1 }
 0x128   :  { %v1046_v51 = vadd.f32 %v1045_v49, %v1044_v47  ;;  %v1047_v52 = vpop.f32.mrb[26].mxu0  ;;  %v1103_v53 = vpop.f32.mrb[25].mxu1 }
 0x129   :  { %v1048_v54 = vpop.f32.mrb[27].mxu0  ;;  %v1104_v55 = vadd.f32 %v1103_v53, %v1102_v50  ;;  %v1105_v56 = vpop.f32.mrb[26].mxu1 }
 0x12a   :  { %v621_v58 = vadd.f32 %v1046_v51, %v1509_v11  ;;  %v1106_v60 = vpop.f32.mrb[27].mxu1 }
 0x12c   :  { %v709_v61 = vadd.f32 %v1104_v55, %v621_v58 }
 0x12e   :  { %v748_v62 = vpop.f32.mrb[28].mxu0 }
 0x12f   :  { %v749_v63 = vadd.f32 %v748_v62, %v1513_v25  ;;  %v780_v0 = vpop.f32.mrb[28].mxu1  ;;  %v1129_v1 = vpop.f32.mrb[29].mxu0 }
 0x130   :  { %v781_v2 = vadd.f32 %v780_v0, %v693_v28  ;;  %v1145_v3 = vpop.f32.mrb[29].mxu1  ;;  %v751_v4 = vpop.f32.mrb[30].mxu0 }
 0x131   :  { %v802_v5 = vmax.f32 %v749_v63, 0.0  ;;  %v752_v6 = vadd.f32 %v751_v4, %v1515_v27  ;;  %v783_v7 = vpop.f32.mrb[30].mxu1  ;;  %v1130_v8 = vpop.f32.mrb[31].mxu0 }
 0x132   :  { %v810_v10 = vmax.f32 %v781_v2, 0.0  ;;  %v784_v13 = vadd.f32 %v783_v7, %v696_v30  ;;  %v1146_v14 = vpop.f32.mrb[31].mxu1 }
 0x133   :  { %v979_v11 = vpack.c.bf16 %v802_v5, %v802_v5  ;;  %v803_v15 = vmax.f32 %v752_v6, 0.0 }
 0x134   :  { %v987_v16 = vpack.c.bf16 %v810_v10, %v810_v10  ;;  %v811_v17 = vmax.f32 %v784_v13, 0.0 }
 0x135   :  { %869 = vst.msk [vmem:[%s1602_s3] sm:$0xf] %vm868_vm2, %v979_v11  ;;  %v980_v25 = vpack.c.bf16 %v803_v15, %v803_v15 }
 0x136   :  { %877 = vst.msk [vmem:[%s1602_s3 + $0x20] sm:$0xf] %vm868_vm2, %v987_v16  ;;  %v988_v27 = vpack.c.bf16 %v811_v17, %v811_v17  ;;  %v756_v18 = vpop.f32.mrb[32].mxu0 }
 0x137   :  { %870 = vst.msk [vmem:[%s1602_s3 + $0x4] sm:$0xf] %vm868_vm2, %v980_v25  ;;  %v757_v19 = vadd.f32 %v756_v18, %v1519_v41  ;;  %v788_v20 = vpop.f32.mrb[32].mxu1  ;;  %v1133_v21 = vpop.f32.mrb[33].mxu0 }
 0x138   :  { %878 = vst.msk [vmem:[%s1602_s3 + $0x24] sm:$0xf] %vm868_vm2, %v988_v27  ;;  %v789_v22 = vadd.f32 %v788_v20, %v701_v46  ;;  %v1149_v23 = vpop.f32.mrb[33].mxu1  ;;  %v759_v24 = vpop.f32.mrb[34].mxu0 }
 0x139   :  { %v804_v26 = vmax.f32 %v757_v19, 0.0  ;;  %v760_v28 = vadd.f32 %v759_v24, %v1521_v43  ;;  %v791_v29 = vpop.f32.mrb[34].mxu1  ;;  %v1134_v30 = vpop.f32.mrb[35].mxu0 }
 0x13a   :  { %v812_v31 = vmax.f32 %v789_v22, 0.0  ;;  %v792_v32 = vadd.f32 %v791_v29, %v704_v48  ;;  %v1150_v33 = vpop.f32.mrb[35].mxu1 }
 0x13b   :  { %v981_v34 = vpack.c.bf16 %v804_v26, %v804_v26  ;;  %v805_v41 = vmax.f32 %v760_v28, 0.0 }
 0x13c   :  { %v989_v35 = vpack.c.bf16 %v812_v31, %v812_v31  ;;  %v813_v36 = vmax.f32 %v792_v32, 0.0 }
 0x13d   :  { %871 = vst.msk [vmem:[%s1602_s3 + $0x8] sm:$0xf] %vm868_vm2, %v981_v34  ;;  %v982_v37 = vpack.c.bf16 %v805_v41, %v805_v41 }
 0x13e   :  { %879 = vst.msk [vmem:[%s1602_s3 + $0x28] sm:$0xf] %vm868_vm2, %v989_v35  ;;  %v990_v43 = vpack.c.bf16 %v813_v36, %v813_v36  ;;  %v764_v38 = vpop.f32.mrb[36].mxu0 }
 0x13f   :  { %872 = vst.msk [vmem:[%s1602_s3 + $0xc] sm:$0xf] %vm868_vm2, %v982_v37  ;;  %v765_v39 = vadd.f32 %v764_v38, %v1525_v57  ;;  %v796_v40 = vpop.f32.mrb[36].mxu1  ;;  %v1137_v42 = vpop.f32.mrb[37].mxu0 }
 0x140   :  { %880 = vst.msk [vmem:[%s1602_s3 + $0x2c] sm:$0xf] %vm868_vm2, %v990_v43  ;;  %v797_v44 = vadd.f32 %v796_v40, %v709_v61  ;;  %v767_v45 = vpop.f32.mrb[38].mxu0  ;;  %v1153_v46 = vpop.f32.mrb[37].mxu1 }
 0x141   :  { %v806_v47 = vmax.f32 %v765_v39, 0.0  ;;  %v768_v48 = vadd.f32 %v767_v45, %v1527_v59  ;;  %v1138_v49 = vpop.f32.mrb[39].mxu0  ;;  %v799_v50 = vpop.f32.mrb[38].mxu1 }
 0x142   :  { %v814_v51 = vmax.f32 %v797_v44, 0.0  ;;  %v1154_v52 = vpop.f32.mrb[39].mxu1 }
 0x143   :  { %v983_v53 = vpack.c.bf16 %v806_v47, %v806_v47  ;;  %v807_v57 = vmax.f32 %v768_v48, 0.0 }
 0x144   :  { %v991_v54 = vpack.c.bf16 %v814_v51, %v814_v51 }
 0x145   :  { %873 = vst.msk [vmem:[%s1602_s3 + $0x10] sm:$0xf] %vm868_vm2, %v983_v53  ;;  %v984_v55 = vpack.c.bf16 %v807_v57, %v807_v57 }
 0x146   :  { %882 = vst.msk [vmem:[%s1602_s3 + $0x30] sm:$0x1] %vm881_vm3, %v991_v54  ;;  %v772_v56 = vpop.f32.mrb[40].mxu0 }
 0x147   :  { %874 = vst.msk [vmem:[%s1602_s3 + $0x14] sm:$0xf] %vm868_vm2, %v984_v55  ;;  %v773_v59 = vadd.f32 %v772_v56, %v1531_v9  ;;  %v1141_v58 = vpop.f32.mrb[41].mxu0 }
 0x148   :  { %v775_v60 = vpop.f32.mrb[42].mxu0 }
 0x149   :  { %v808_v61 = vmax.f32 %v773_v59, 0.0  ;;  %v776_v62 = vadd.f32 %v775_v60, %v1533_v12  ;;  %v1142_v63 = vpop.f32.mrb[43].mxu0 }
 0x14b   :  { %v985_v0 = vpack.c.bf16 %v808_v61, %v808_v61  ;;  %v809_v1 = vmax.f32 %v776_v62, 0.0 }
 0x14d   :  { %875 = vst.msk [vmem:[%s1602_s3 + $0x18] sm:$0xf] %vm868_vm2, %v985_v0  ;;  %v986_v2 = vpack.c.bf16 %v809_v1, %v809_v1 }
 0x14f   :  { %876 = vst.msk [vmem:[%s1602_s3 + $0x1c] sm:$0xf] %vm868_vm2, %v986_v2 }

// kernel: actor_forward.7
= control target key start
LH: loop header
LB: loop body
LE: loop exit
PB: predicated region body
PF: predicated region fallthrough
CT: control target
= control target key end

     0   :  { %v828_v36 = vlaneseq  ;;  %v8712_v37 = vmov 1966171168   ;;  %s11402_s0 = inlined_call_operand.vmem [shape: bf16[2,3200], index: 0, kind: input, shape index: {}]   ;;  %s11403_s1 = inlined_call_operand.vmem [shape: bf16[3200,512], index: 1, kind: input, shape index: {}]   ;;  %s11404_s2 = inlined_call_operand.vmem [shape: f32[1,512], index: 2, kind: input, shape index: {}]   ;;  %s11405_s3 = inlined_call_operand.vmem [shape: bf16[512,128], index: 3, kind: input, shape index: {}]   ;;  %s11406_s4 = inlined_call_operand.vmem [shape: f32[1,128], index: 4, kind: input, shape index: {}]   ;;  %s11407_s5 = inlined_call_operand.hbm [shape: f32[2,128], index: 5, kind: output, shape index: {}]  }
   0x1   :  { %v7451_v0 = vld [vmem:[%s11403_s1 + $0x4] ss:$16 sps:$4 sm:$0xff]   ;;  %v7453_v1 = vld [vmem:[%s11403_s1 + $0xc] ss:$16 sps:$4 sm:$0xff]   ;;  %v7455_v2 = vld [vmem:[%s11403_s1] ss:$16 sps:$4 sm:$0xff]   ;;  %v854_v38 = vunpack.c.l.s4 %v8712_v37 }
   0x2   :  { %5038 = vmatprep.subr.bf16.mxu0 %v7451_v0  ;;  %v7456_v3 = vld [vmem:[%s11403_s1 + $0x8] ss:$16 sps:$4 sm:$0xff]   ;;  %5571 = vmatprep.subr.bf16.mxu1 %v7453_v1  ;;  %v7457_v4 = vld [vmem:[%s11403_s1 + $0x24] ss:$16 sps:$4 sm:$0xff]   ;;  %v7459_v5 = vld [vmem:[%s11403_s1 + $0x2c] ss:$16 sps:$4 sm:$0xff]  }
   0x3   :  { %5039 = vmatpush1.bf16.msra.mxu0 %v7455_v2  ;;  %5572 = vmatpush1.bf16.msra.mxu1 %v7456_v3  ;;  %v7461_v6 = vld [vmem:[%s11403_s1 + $0x20] ss:$16 sps:$4 sm:$0xff]   ;;  %v7462_v7 = vld [vmem:[%s11403_s1 + $0x28] ss:$16 sps:$4 sm:$0xff]   ;;  %v7463_v8 = vld [vmem:[%s11403_s1 + $0x44] ss:$16 sps:$4 sm:$0xff]   ;;  %v855_v43 = vunpack.c.0.s8 %v854_v38 }
   0x4   :  { %5040 = vmatprep.subr.bf16.mxu0 %v7457_v4  ;;  %5573 = vmatprep.subr.bf16.mxu1 %v7459_v5  ;;  %v7465_v9 = vld [vmem:[%s11403_s1 + $0x4c] ss:$16 sps:$4 sm:$0xff]   ;;  %v7467_v10 = vld [vmem:[%s11403_s1 + $0x40] ss:$16 sps:$4 sm:$0xff]   ;;  %v7468_v11 = vld [vmem:[%s11403_s1 + $0x48] ss:$16 sps:$4 sm:$0xff]  }
   0x5   :  { %v7469_v12 = vld [vmem:[%s11403_s1 + $0x64] ss:$16 sps:$4 sm:$0xff]   ;;  %v7471_v13 = vld [vmem:[%s11403_s1 + $0x6c] ss:$16 sps:$4 sm:$0xff]   ;;  %v7473_v14 = vld [vmem:[%s11403_s1 + $0x60] ss:$16 sps:$4 sm:$0xff]  }
   0x6   :  { %v7474_v15 = vld [vmem:[%s11403_s1 + $0x68] ss:$16 sps:$4 sm:$0xff]   ;;  %v7475_v16 = vld [vmem:[%s11403_s1 + $0x84] ss:$16 sps:$4 sm:$0xff]   ;;  %v7477_v17 = vld [vmem:[%s11403_s1 + $0x8c] ss:$16 sps:$4 sm:$0xff]  }
   0x7   :  { %5041 = vmatpush1.bf16.msra.mxu0 %v7461_v6  ;;  %5574 = vmatpush1.bf16.msra.mxu1 %v7462_v7  ;;  %v7479_v18 = vld [vmem:[%s11403_s1 + $0x80] ss:$16 sps:$4 sm:$0xff]   ;;  %v7480_v19 = vld [vmem:[%s11403_s1 + $0x88] ss:$16 sps:$4 sm:$0xff]   ;;  %v7481_v20 = vld [vmem:[%s11403_s1 + $0xa4] ss:$16 sps:$4 sm:$0xff]  }
   0x8   :  { %5042 = vmatprep.subr.bf16.mxu0 %v7463_v8  ;;  %5575 = vmatprep.subr.bf16.mxu1 %v7465_v9  ;;  %v7483_v21 = vld [vmem:[%s11403_s1 + $0xac] ss:$16 sps:$4 sm:$0xff]   ;;  %v7485_v22 = vld [vmem:[%s11403_s1 + $0xa0] ss:$16 sps:$4 sm:$0xff]   ;;  %v7486_v23 = vld [vmem:[%s11403_s1 + $0xa8] ss:$16 sps:$4 sm:$0xff]  }
   0x9   :  { %v7487_v24 = vld [vmem:[%s11403_s1 + $0xc4] ss:$16 sps:$4 sm:$0xff]   ;;  %v7489_v25 = vld [vmem:[%s11403_s1 + $0xcc] ss:$16 sps:$4 sm:$0xff]   ;;  %v7491_v26 = vld [vmem:[%s11403_s1 + $0xc0] ss:$16 sps:$4 sm:$0xff]  }
   0xa   :  { %v7492_v27 = vld [vmem:[%s11403_s1 + $0xc8] ss:$16 sps:$4 sm:$0xff]   ;;  %v7493_v28 = vld [vmem:[%s11403_s1 + $0xe4] ss:$16 sps:$4 sm:$0xff]   ;;  %v7495_v29 = vld [vmem:[%s11403_s1 + $0xec] ss:$16 sps:$4 sm:$0xff]  }
   0xb   :  { %5043 = vmatpush1.bf16.msra.mxu0 %v7467_v10  ;;  %5576 = vmatpush1.bf16.msra.mxu1 %v7468_v11  ;;  %v7497_v30 = vld [vmem:[%s11403_s1 + $0xe0] ss:$16 sps:$4 sm:$0xff]   ;;  %v7498_v31 = vld [vmem:[%s11403_s1 + $0xe8] ss:$16 sps:$4 sm:$0xff]   ;;  %v7499_v32 = vld [vmem:[%s11403_s1 + $0x104] ss:$16 sps:$4 sm:$0xff]  }
   0xc   :  { %5044 = vmatprep.subr.bf16.mxu0 %v7469_v12  ;;  %5577 = vmatprep.subr.bf16.mxu1 %v7471_v13  ;;  %v7501_v33 = vld [vmem:[%s11403_s1 + $0x10c] ss:$16 sps:$4 sm:$0xff]   ;;  %v7503_v34 = vld [vmem:[%s11403_s1 + $0x100] ss:$16 sps:$4 sm:$0xff]   ;;  %v7504_v35 = vld [vmem:[%s11403_s1 + $0x108] ss:$16 sps:$4 sm:$0xff]  }
   0xd   :  { %v7505_v39 = vld [vmem:[%s11403_s1 + $0x124] ss:$16 sps:$4 sm:$0xff]   ;;  %v7507_v40 = vld [vmem:[%s11403_s1 + $0x12c] ss:$16 sps:$4 sm:$0xff]   ;;  %v7509_v41 = vld [vmem:[%s11403_s1 + $0x120] ss:$16 sps:$4 sm:$0xff]  }
   0xe   :  { %v8862_v42 = vshrl.u32 %v828_v36, 7  ;;  %v7510_v44 = vld [vmem:[%s11403_s1 + $0x128] ss:$16 sps:$4 sm:$0xff]   ;;  %v7511_v45 = vld [vmem:[%s11403_s1 + $0x144] ss:$16 sps:$4 sm:$0xff]  }
   0xf   :  { %5045 = vmatpush1.bf16.msra.mxu0 %v7473_v14  ;;  %5578 = vmatpush1.bf16.msra.mxu1 %v7474_v15  ;;  %v7513_v46 = vld [vmem:[%s11403_s1 + $0x14c] ss:$16 sps:$4 sm:$0xff]   ;;  %v7515_v47 = vld [vmem:[%s11403_s1 + $0x140] ss:$16 sps:$4 sm:$0xff]   ;;  %v7516_v48 = vld [vmem:[%s11403_s1 + $0x148] ss:$16 sps:$4 sm:$0xff]  }
  0x10   :  { %5046 = vmatprep.subr.bf16.mxu0 %v7475_v16  ;;  %5579 = vmatprep.subr.bf16.mxu1 %v7477_v17  ;;  %v8880_v49 = vsub.s32 %v855_v43, %v8862_v42  ;;  %v7517_v50 = vld [vmem:[%s11403_s1 + $0x164] ss:$16 sps:$4 sm:$0xff]   ;;  %v7519_v51 = vld [vmem:[%s11403_s1 + $0x16c] ss:$16 sps:$4 sm:$0xff]   ;;  %v7521_v53 = vld [vmem:[%s11403_s1 + $0x160] ss:$16 sps:$4 sm:$0xff]  }
  0x11   :  { %v8891_v52 = vld [vmem:[%s11402_s0] sm:$0xff]  ;;  %v7522_v55 = vld [vmem:[%s11403_s1 + $0x168] ss:$16 sps:$4 sm:$0xff]   ;;  %v7525_v57 = vld [vmem:[%s11403_s1 + $0x18c] ss:$16 sps:$4 sm:$0xff]  }
  0x12   :  { %v859_v54 = vrot.slane %v8891_v52, %v8880_v49  ;;  %v7523_v56 = vld [vmem:[%s11403_s1 + $0x184] ss:$16 sps:$4 sm:$0xff]   ;;  %v7527_v59 = vld [vmem:[%s11403_s1 + $0x180] ss:$16 sps:$4 sm:$0xff]   ;;  %v7528_v61 = vld [vmem:[%s11403_s1 + $0x188] ss:$16 sps:$4 sm:$0xff]  }
  0x13   :  { %5047 = vmatpush1.bf16.msra.mxu0 %v7479_v18  ;;  %5580 = vmatpush1.bf16.msra.mxu1 %v7480_v19  ;;  %v7529_v62 = vld [vmem:[%s11403_s1 + $0x1a4] ss:$16 sps:$4 sm:$0xff]   ;;  %v7531_v63 = vld [vmem:[%s11403_s1 + $0x1ac] ss:$16 sps:$4 sm:$0xff]   ;;  %v7533_v0 = vld [vmem:[%s11403_s1 + $0x1a0] ss:$16 sps:$4 sm:$0xff]  }
  0x14   :  { %5048 = vmatprep.subr.bf16.mxu0 %v7481_v20  ;;  %5581 = vmatprep.subr.bf16.mxu1 %v7483_v21  ;;  %v867_v58 = vcombine.high %v859_v54, %v859_v54  ;;  %v7534_v1 = vld [vmem:[%s11403_s1 + $0x1a8] ss:$16 sps:$4 sm:$0xff]   ;;  %v7535_v2 = vld [vmem:[%s11403_s1 + $0x1c4] ss:$16 sps:$4 sm:$0xff]   ;;  %v7537_v3 = vld [vmem:[%s11403_s1 + $0x1cc] ss:$16 sps:$4 sm:$0xff]   ;;  %v8960_v13 = vrot.slane %v859_v54, %v8880_v49 }
  0x15   :  { %v7539_v4 = vld [vmem:[%s11403_s1 + $0x1c0] ss:$16 sps:$4 sm:$0xff]   ;;  %v7540_v5 = vld [vmem:[%s11403_s1 + $0x1c8] ss:$16 sps:$4 sm:$0xff]   ;;  %v7541_v6 = vld [vmem:[%s11403_s1 + $0x1e4] ss:$16 sps:$4 sm:$0xff]  }
  0x16   :  { %v889_v60 = vrot.slane %v867_v58, %v8880_v49  ;;  %v7543_v7 = vld [vmem:[%s11403_s1 + $0x1ec] ss:$16 sps:$4 sm:$0xff]   ;;  %v7545_v8 = vld [vmem:[%s11403_s1 + $0x1e0] ss:$16 sps:$4 sm:$0xff]   ;;  %v7546_v9 = vld [vmem:[%s11403_s1 + $0x1e8] ss:$16 sps:$4 sm:$0xff]  }
  0x17   :  { %5049 = vmatpush1.bf16.msra.mxu0 %v7485_v22  ;;  %5582 = vmatpush1.bf16.msra.mxu1 %v7486_v23  ;;  %v7549_v10 = vld [vmem:[%s11403_s1 + $0x204] ss:$16 sps:$4 sm:$0xff]   ;;  %v7552_v11 = vld [vmem:[%s11403_s1 + $0x20c] ss:$16 sps:$4 sm:$0xff]   ;;  %v7547_v12 = vld [vmem:[%s11403_s1 + $0x200] ss:$16 sps:$4 sm:$0xff]  }
  0x18   :  { %5050 = vmatprep.subr.bf16.mxu0 %v7487_v24  ;;  %5583 = vmatprep.subr.bf16.mxu1 %v7489_v25  ;;  %v7550_v14 = vld [vmem:[%s11403_s1 + $0x208] ss:$16 sps:$4 sm:$0xff]   ;;  %v7555_v15 = vld [vmem:[%s11403_s1 + $0x224] ss:$16 sps:$4 sm:$0xff]   ;;  %v7558_v16 = vld [vmem:[%s11403_s1 + $0x22c] ss:$16 sps:$4 sm:$0xff]   ;;  %v899_v17 = vcombine.high %v889_v60, %v889_v60 }
  0x19   :  { %5070 = vmatprep.mubr.bf16.mxu0 %v889_v60  ;;  %5603 = vmatprep.mubr.bf16.mxu1 %v889_v60  ;;  %v7553_v18 = vld [vmem:[%s11403_s1 + $0x220] ss:$16 sps:$4 sm:$0xff]   ;;  %v7556_v19 = vld [vmem:[%s11403_s1 + $0x228] ss:$16 sps:$4 sm:$0xff]   ;;  %v7561_v20 = vld [vmem:[%s11403_s1 + $0x244] ss:$16 sps:$4 sm:$0xff]  }
  0x1a   :  { %v7564_v21 = vld [vmem:[%s11403_s1 + $0x24c] ss:$16 sps:$4 sm:$0xff]   ;;  %v7559_v22 = vld [vmem:[%s11403_s1 + $0x240] ss:$16 sps:$4 sm:$0xff]   ;;  %v7562_v23 = vld [vmem:[%s11403_s1 + $0x248] ss:$16 sps:$4 sm:$0xff]  }
  0x1b   :  { %5051 = vmatpush1.bf16.msra.mxu0 %v7491_v26  ;;  %5584 = vmatpush1.bf16.msra.mxu1 %v7492_v27  ;;  %v7567_v24 = vld [vmem:[%s11403_s1 + $0x264] ss:$16 sps:$4 sm:$0xff]   ;;  %v7570_v25 = vld [vmem:[%s11403_s1 + $0x26c] ss:$16 sps:$4 sm:$0xff]   ;;  %v7565_v26 = vld [vmem:[%s11403_s1 + $0x260] ss:$16 sps:$4 sm:$0xff]  }
  0x1c   :  { %5052 = vmatprep.subr.bf16.mxu0 %v7493_v28  ;;  %5585 = vmatprep.subr.bf16.mxu1 %v7495_v29  ;;  %v7568_v27 = vld [vmem:[%s11403_s1 + $0x268] ss:$16 sps:$4 sm:$0xff]   ;;  %v7573_v28 = vld [vmem:[%s11403_s1 + $0x284] ss:$16 sps:$4 sm:$0xff]   ;;  %v7576_v29 = vld [vmem:[%s11403_s1 + $0x28c] ss:$16 sps:$4 sm:$0xff]  }
  0x1d   :  { %v7585_v36 = vld [vmem:[%s11403_s1 + $0x2c4] ss:$16 sps:$4 sm:$0xff]   ;;  %v7588_v37 = vld [vmem:[%s11403_s1 + $0x2cc] ss:$16 sps:$4 sm:$0xff]   ;;  %v7583_v38 = vld [vmem:[%s11403_s1 + $0x2c0] ss:$16 sps:$4 sm:$0xff]  }
  0x1e   :  { %v7589_v43 = vld [vmem:[%s11403_s1 + $0x2e0] ss:$16 sps:$4 sm:$0xff]   ;;  %v7604_v54 = vld [vmem:[%s11403_s1 + $0x328] ss:$16 sps:$4 sm:$0xff]   ;;  %v7618_v60 = vld [vmem:[%s11403_s1 + $0x36c] ss:$16 sps:$4 sm:$0xff]  }
  0x1f   :  { %5053 = vmatpush1.bf16.msra.mxu0 %v7497_v30  ;;  %5586 = vmatpush1.bf16.msra.mxu1 %v7498_v31  ;;  %v7571_v30 = vld [vmem:[%s11403_s1 + $0x280] ss:$16 sps:$4 sm:$0xff]   ;;  %v7574_v31 = vld [vmem:[%s11403_s1 + $0x288] ss:$16 sps:$4 sm:$0xff]  }
  0x20   :  { %5054 = vmatprep.subr.bf16.mxu0 %v7499_v32  ;;  %5587 = vmatprep.subr.bf16.mxu1 %v7501_v33  ;;  %v7579_v32 = vld [vmem:[%s11403_s1 + $0x2a4] ss:$16 sps:$4 sm:$0xff]   ;;  %v7582_v33 = vld [vmem:[%s11403_s1 + $0x2ac] ss:$16 sps:$4 sm:$0xff]   ;;  %v7610_v58 = vld [vmem:[%s11403_s1 + $0x348] ss:$16 sps:$4 sm:$0xff]  }
  0x23   :  { %5055 = vmatpush1.bf16.msra.mxu0 %v7503_v34  ;;  %5588 = vmatpush1.bf16.msra.mxu1 %v7504_v35  ;;  %v7577_v34 = vld [vmem:[%s11403_s1 + $0x2a0] ss:$16 sps:$4 sm:$0xff]   ;;  %v7580_v35 = vld [vmem:[%s11403_s1 + $0x2a8] ss:$16 sps:$4 sm:$0xff]  }
  0x24   :  { %5056 = vmatprep.subr.bf16.mxu0 %v7505_v39  ;;  %5589 = vmatprep.subr.bf16.mxu1 %v7507_v40  ;;  %v7586_v39 = vld [vmem:[%s11403_s1 + $0x2c8] ss:$16 sps:$4 sm:$0xff]   ;;  %v7591_v40 = vld [vmem:[%s11403_s1 + $0x2e4] ss:$16 sps:$4 sm:$0xff]  }
  0x27   :  { %5057 = vmatpush1.bf16.msra.mxu0 %v7509_v41  ;;  %5590 = vmatpush1.bf16.msra.mxu1 %v7510_v44  ;;  %v7594_v41 = vld [vmem:[%s11403_s1 + $0x2ec] ss:$16 sps:$4 sm:$0xff]   ;;  %v7592_v44 = vld [vmem:[%s11403_s1 + $0x2e8] ss:$16 sps:$4 sm:$0xff]  }
  0x28   :  { %5058 = vmatprep.subr.bf16.mxu0 %v7511_v45  ;;  %5591 = vmatprep.subr.bf16.mxu1 %v7513_v46  ;;  %v7597_v45 = vld [vmem:[%s11403_s1 + $0x304] ss:$16 sps:$4 sm:$0xff]   ;;  %v7600_v46 = vld [vmem:[%s11403_s1 + $0x30c] ss:$16 sps:$4 sm:$0xff]  }
  0x2b   :  { %5059 = vmatpush1.bf16.msra.mxu0 %v7515_v47  ;;  %5592 = vmatpush1.bf16.msra.mxu1 %v7516_v48  ;;  %v7595_v47 = vld [vmem:[%s11403_s1 + $0x300] ss:$16 sps:$4 sm:$0xff]   ;;  %v7598_v48 = vld [vmem:[%s11403_s1 + $0x308] ss:$16 sps:$4 sm:$0xff]  }
  0x2c   :  { %5060 = vmatprep.subr.bf16.mxu0 %v7517_v50  ;;  %5593 = vmatprep.subr.bf16.mxu1 %v7519_v51  ;;  %v7603_v50 = vld [vmem:[%s11403_s1 + $0x324] ss:$16 sps:$4 sm:$0xff]   ;;  %v7606_v51 = vld [vmem:[%s11403_s1 + $0x32c] ss:$16 sps:$4 sm:$0xff]  }
  0x2f   :  { %5061 = vmatpush1.bf16.msra.mxu0 %v7521_v53  ;;  %5594 = vmatpush1.bf16.msra.mxu1 %v7522_v55  ;;  %v7601_v53 = vld [vmem:[%s11403_s1 + $0x320] ss:$16 sps:$4 sm:$0xff]   ;;  %v7609_v55 = vld [vmem:[%s11403_s1 + $0x344] ss:$16 sps:$4 sm:$0xff]  }
  0x30   :  { %5062 = vmatprep.subr.bf16.mxu0 %v7523_v56  ;;  %5595 = vmatprep.subr.bf16.mxu1 %v7525_v57  ;;  %v7612_v56 = vld [vmem:[%s11403_s1 + $0x34c] ss:$16 sps:$4 sm:$0xff]   ;;  %v7607_v57 = vld [vmem:[%s11403_s1 + $0x340] ss:$16 sps:$4 sm:$0xff]  }
  0x33   :  { %5063 = vmatpush1.bf16.msra.mxu0 %v7527_v59  ;;  %5596 = vmatpush1.bf16.msra.mxu1 %v7528_v61  ;;  %v7615_v59 = vld [vmem:[%s11403_s1 + $0x364] ss:$16 sps:$4 sm:$0xff]   ;;  %v7613_v61 = vld [vmem:[%s11403_s1 + $0x360] ss:$16 sps:$4 sm:$0xff]  }
  0x34   :  { %5064 = vmatprep.subr.bf16.mxu0 %v7529_v62  ;;  %5597 = vmatprep.subr.bf16.mxu1 %v7531_v63  ;;  %v7616_v62 = vld [vmem:[%s11403_s1 + $0x368] ss:$16 sps:$4 sm:$0xff]   ;;  %v7621_v63 = vld [vmem:[%s11403_s1 + $0x384] ss:$16 sps:$4 sm:$0xff]  }
  0x37   :  { %5065 = vmatpush1.bf16.msra.mxu0 %v7533_v0  ;;  %5598 = vmatpush1.bf16.msra.mxu1 %v7534_v1  ;;  %v7624_v0 = vld [vmem:[%s11403_s1 + $0x38c] ss:$16 sps:$4 sm:$0xff]   ;;  %v7619_v1 = vld [vmem:[%s11403_s1 + $0x380] ss:$16 sps:$4 sm:$0xff]  }
  0x38   :  { %5066 = vmatprep.subr.bf16.mxu0 %v7535_v2  ;;  %5599 = vmatprep.subr.bf16.mxu1 %v7537_v3  ;;  %v7622_v2 = vld [vmem:[%s11403_s1 + $0x388] ss:$16 sps:$4 sm:$0xff]   ;;  %v7627_v3 = vld [vmem:[%s11403_s1 + $0x3a4] ss:$16 sps:$4 sm:$0xff]  }
  0x3b   :  { %5067 = vmatpush1.bf16.msra.mxu0 %v7539_v4  ;;  %5600 = vmatpush1.bf16.msra.mxu1 %v7540_v5  ;;  %v7630_v4 = vld [vmem:[%s11403_s1 + $0x3ac] ss:$16 sps:$4 sm:$0xff]   ;;  %v7625_v5 = vld [vmem:[%s11403_s1 + $0x3a0] ss:$16 sps:$4 sm:$0xff]  }
  0x3c   :  { %5068 = vmatprep.subr.bf16.mxu0 %v7541_v6  ;;  %5601 = vmatprep.subr.bf16.mxu1 %v7543_v7  ;;  %v7628_v6 = vld [vmem:[%s11403_s1 + $0x3a8] ss:$16 sps:$4 sm:$0xff]   ;;  %v7633_v7 = vld [vmem:[%s11403_s1 + $0x3c4] ss:$16 sps:$4 sm:$0xff]  }
  0x3f   :  { %5069 = vmatpush1.bf16.msra.mxu0 %v7545_v8  ;;  %5602 = vmatpush1.bf16.msra.mxu1 %v7546_v9  ;;  %v7636_v8 = vld [vmem:[%s11403_s1 + $0x3cc] ss:$16 sps:$4 sm:$0xff]   ;;  %v852_v9 = vcombine.high %v8891_v52, %v8891_v52 }
  0x40   :  { %5079 = vmatprep.subr.bf16.mxu0 %v7549_v10  ;;  %5612 = vmatprep.subr.bf16.mxu1 %v7552_v11  ;;  %v7631_v10 = vld [vmem:[%s11403_s1 + $0x3c0] ss:$16 sps:$4 sm:$0xff]   ;;  %v7634_v11 = vld [vmem:[%s11403_s1 + $0x3c8] ss:$16 sps:$4 sm:$0xff]   ;;  %v7642_v52 = vld [vmem:[%s11403_s1 + $0x3ec] ss:$16 sps:$4 sm:$0xff]  }
  0x42   :  { %5071 = vmatmul.mubr.bf16.vlgmr.msra.gmra.mrb[0].mxu0 %v8960_v13  ;;  %5604 = vmatmul.mubr.bf16.vlgmr.msra.gmra.mrb[0].mxu1 %v8960_v13 }
  0x43   :  { %5080 = vmatpush1.bf16.msra.mxu0 %v7547_v12  ;;  %5613 = vmatpush1.bf16.msra.mxu1 %v7550_v14  ;;  %v7639_v12 = vld [vmem:[%s11403_s1 + $0x3e4] ss:$16 sps:$4 sm:$0xff]   ;;  %v9144_v14 = vrot.slane %v852_v9, %v8880_v49  ;;  %v7718_v9 = vld [vmem:[%s11403_s1 + $0x588] ss:$16 sps:$4 sm:$0xff]  }
  0x44   :  { %5081 = vmatprep.subr.bf16.mxu0 %v7555_v15  ;;  %5614 = vmatprep.subr.bf16.mxu1 %v7558_v16  ;;  %v7637_v15 = vld [vmem:[%s11403_s1 + $0x3e0] ss:$16 sps:$4 sm:$0xff]   ;;  %v7640_v16 = vld [vmem:[%s11403_s1 + $0x3e8] ss:$16 sps:$4 sm:$0xff]  }
  0x45   :  { %5111 = vmatprep.mubr.bf16.mxu0 %v899_v17  ;;  %5644 = vmatprep.mubr.bf16.mxu1 %v899_v17  ;;  %v7645_v17 = vld [vmem:[%s11403_s1 + $0x404] ss:$16 sps:$4 sm:$0xff]  }
  0x47   :  { %5082 = vmatpush1.bf16.msra.mxu0 %v7553_v18  ;;  %5615 = vmatpush1.bf16.msra.mxu1 %v7556_v19  ;;  %v7648_v18 = vld [vmem:[%s11403_s1 + $0x40c] ss:$16 sps:$4 sm:$0xff]   ;;  %v868_v19 = vcombine.high %v9144_v14, %v9144_v14 }
  0x48   :  { %5083 = vmatprep.subr.bf16.mxu0 %v7561_v20  ;;  %5616 = vmatprep.subr.bf16.mxu1 %v7564_v21  ;;  %v7643_v20 = vld [vmem:[%s11403_s1 + $0x400] ss:$16 sps:$4 sm:$0xff]   ;;  %v897_v21 = vcombine.high %v8960_v13, %v8960_v13 }
  0x49   :  { %v7649_v13 = vld [vmem:[%s11403_s1 + $0x420] ss:$16 sps:$4 sm:$0xff]  }
  0x4b   :  { %5084 = vmatpush1.bf16.msra.mxu0 %v7559_v22  ;;  %5617 = vmatpush1.bf16.msra.mxu1 %v7562_v23  ;;  %v7646_v22 = vld [vmem:[%s11403_s1 + $0x408] ss:$16 sps:$4 sm:$0xff]   ;;  %v7651_v23 = vld [vmem:[%s11403_s1 + $0x424] ss:$16 sps:$4 sm:$0xff]  }
  0x4c   :  { %5085 = vmatprep.subr.bf16.mxu0 %v7567_v24  ;;  %5618 = vmatprep.subr.bf16.mxu1 %v7570_v25  ;;  %v7654_v24 = vld [vmem:[%s11403_s1 + $0x42c] ss:$16 sps:$4 sm:$0xff]   ;;  %v9175_v25 = vrot.slane %v868_v19, %v8880_v49  ;;  %v7735_v19 = vld [vmem:[%s11403_s1 + $0x5e4] ss:$16 sps:$4 sm:$0xff]  }
  0x4f   :  { %5086 = vmatpush1.bf16.msra.mxu0 %v7565_v26  ;;  %5619 = vmatpush1.bf16.msra.mxu1 %v7568_v27  ;;  %v7652_v26 = vld [vmem:[%s11403_s1 + $0x428] ss:$16 sps:$4 sm:$0xff]   ;;  %v7657_v27 = vld [vmem:[%s11403_s1 + $0x444] ss:$16 sps:$4 sm:$0xff]  }
  0x50   :  { %5087 = vmatprep.subr.bf16.mxu0 %v7573_v28  ;;  %5620 = vmatprep.subr.bf16.mxu1 %v7576_v29  ;;  %v7660_v28 = vld [vmem:[%s11403_s1 + $0x44c] ss:$16 sps:$4 sm:$0xff]   ;;  %v7655_v29 = vld [vmem:[%s11403_s1 + $0x440] ss:$16 sps:$4 sm:$0xff]  }
  0x53   :  { %5088 = vmatpush1.bf16.msra.mxu0 %v7571_v30  ;;  %5621 = vmatpush1.bf16.msra.mxu1 %v7574_v31  ;;  %v7658_v30 = vld [vmem:[%s11403_s1 + $0x448] ss:$16 sps:$4 sm:$0xff]   ;;  %v7663_v31 = vld [vmem:[%s11403_s1 + $0x464] ss:$16 sps:$4 sm:$0xff]  }
  0x54   :  { %5089 = vmatprep.subr.bf16.mxu0 %v7579_v32  ;;  %5622 = vmatprep.subr.bf16.mxu1 %v7582_v33  ;;  %v7666_v32 = vld [vmem:[%s11403_s1 + $0x46c] ss:$16 sps:$4 sm:$0xff]   ;;  %v7661_v33 = vld [vmem:[%s11403_s1 + $0x460] ss:$16 sps:$4 sm:$0xff]  }
  0x57   :  { %5090 = vmatpush1.bf16.msra.mxu0 %v7577_v34  ;;  %5623 = vmatpush1.bf16.msra.mxu1 %v7580_v35  ;;  %v7664_v34 = vld [vmem:[%s11403_s1 + $0x468] ss:$16 sps:$4 sm:$0xff]   ;;  %v7669_v35 = vld [vmem:[%s11403_s1 + $0x484] ss:$16 sps:$4 sm:$0xff]  }
  0x58   :  { %5091 = vmatprep.subr.bf16.mxu0 %v7585_v36  ;;  %5624 = vmatprep.subr.bf16.mxu1 %v7588_v37  ;;  %v7672_v36 = vld [vmem:[%s11403_s1 + $0x48c] ss:$16 sps:$4 sm:$0xff]   ;;  %v7667_v37 = vld [vmem:[%s11403_s1 + $0x480] ss:$16 sps:$4 sm:$0xff]  }
  0x5b   :  { %5092 = vmatpush1.bf16.msra.mxu0 %v7583_v38  ;;  %5625 = vmatpush1.bf16.msra.mxu1 %v7586_v39  ;;  %v7670_v38 = vld [vmem:[%s11403_s1 + $0x488] ss:$16 sps:$4 sm:$0xff]   ;;  %v7675_v39 = vld [vmem:[%s11403_s1 + $0x4a4] ss:$16 sps:$4 sm:$0xff]  }
  0x5c   :  { %5093 = vmatprep.subr.bf16.mxu0 %v7591_v40  ;;  %5626 = vmatprep.subr.bf16.mxu1 %v7594_v41  ;;  %v7678_v40 = vld [vmem:[%s11403_s1 + $0x4ac] ss:$16 sps:$4 sm:$0xff]   ;;  %v7673_v41 = vld [vmem:[%s11403_s1 + $0x4a0] ss:$16 sps:$4 sm:$0xff]  }
  0x5f   :  { %5094 = vmatpush1.bf16.msra.mxu0 %v7589_v43  ;;  %5627 = vmatpush1.bf16.msra.mxu1 %v7592_v44  ;;  %v7676_v43 = vld [vmem:[%s11403_s1 + $0x4a8] ss:$16 sps:$4 sm:$0xff]   ;;  %v7681_v44 = vld [vmem:[%s11403_s1 + $0x4c4] ss:$16 sps:$4 sm:$0xff]  }
  0x60   :  { %5095 = vmatprep.subr.bf16.mxu0 %v7597_v45  ;;  %5628 = vmatprep.subr.bf16.mxu1 %v7600_v46  ;;  %v7684_v45 = vld [vmem:[%s11403_s1 + $0x4cc] ss:$16 sps:$4 sm:$0xff]   ;;  %v7679_v46 = vld [vmem:[%s11403_s1 + $0x4c0] ss:$16 sps:$4 sm:$0xff]  }
  0x63   :  { %5096 = vmatpush1.bf16.msra.mxu0 %v7595_v47  ;;  %5629 = vmatpush1.bf16.msra.mxu1 %v7598_v48  ;;  %v7682_v47 = vld [vmem:[%s11403_s1 + $0x4c8] ss:$16 sps:$4 sm:$0xff]   ;;  %v7687_v48 = vld [vmem:[%s11403_s1 + $0x4e4] ss:$16 sps:$4 sm:$0xff]  }
  0x64   :  { %5097 = vmatprep.subr.bf16.mxu0 %v7603_v50  ;;  %5630 = vmatprep.subr.bf16.mxu1 %v7606_v51  ;;  %v7690_v50 = vld [vmem:[%s11403_s1 + $0x4ec] ss:$16 sps:$4 sm:$0xff]   ;;  %v7685_v51 = vld [vmem:[%s11403_s1 + $0x4e0] ss:$16 sps:$4 sm:$0xff]  }
  0x67   :  { %5098 = vmatpush1.bf16.msra.mxu0 %v7601_v53  ;;  %5631 = vmatpush1.bf16.msra.mxu1 %v7604_v54  ;;  %v7688_v53 = vld [vmem:[%s11403_s1 + $0x4e8] ss:$16 sps:$4 sm:$0xff]   ;;  %v7693_v54 = vld [vmem:[%s11403_s1 + $0x504] ss:$16 sps:$4 sm:$0xff]  }
  0x68   :  { %5099 = vmatprep.subr.bf16.mxu0 %v7609_v55  ;;  %5632 = vmatprep.subr.bf16.mxu1 %v7612_v56  ;;  %v7696_v55 = vld [vmem:[%s11403_s1 + $0x50c] ss:$16 sps:$4 sm:$0xff]   ;;  %v7691_v56 = vld [vmem:[%s11403_s1 + $0x500] ss:$16 sps:$4 sm:$0xff]  }
  0x6b   :  { %5100 = vmatpush1.bf16.msra.mxu0 %v7607_v57  ;;  %5633 = vmatpush1.bf16.msra.mxu1 %v7610_v58  ;;  %v7694_v57 = vld [vmem:[%s11403_s1 + $0x508] ss:$16 sps:$4 sm:$0xff]   ;;  %v7699_v58 = vld [vmem:[%s11403_s1 + $0x524] ss:$16 sps:$4 sm:$0xff]  }
  0x6c   :  { %5101 = vmatprep.subr.bf16.mxu0 %v7615_v59  ;;  %5634 = vmatprep.subr.bf16.mxu1 %v7618_v60  ;;  %v7702_v59 = vld [vmem:[%s11403_s1 + $0x52c] ss:$16 sps:$4 sm:$0xff]   ;;  %v7697_v60 = vld [vmem:[%s11403_s1 + $0x520] ss:$16 sps:$4 sm:$0xff]  }
  0x6f   :  { %5102 = vmatpush1.bf16.msra.mxu0 %v7613_v61  ;;  %5635 = vmatpush1.bf16.msra.mxu1 %v7616_v62  ;;  %v7700_v61 = vld [vmem:[%s11403_s1 + $0x528] ss:$16 sps:$4 sm:$0xff]   ;;  %v7705_v62 = vld [vmem:[%s11403_s1 + $0x544] ss:$16 sps:$4 sm:$0xff]  }
  0x70   :  { %5103 = vmatprep.subr.bf16.mxu0 %v7621_v63  ;;  %5636 = vmatprep.subr.bf16.mxu1 %v7624_v0  ;;  %v7708_v63 = vld [vmem:[%s11403_s1 + $0x54c] ss:$16 sps:$4 sm:$0xff]   ;;  %v7703_v0 = vld [vmem:[%s11403_s1 + $0x540] ss:$16 sps:$4 sm:$0xff]  }
  0x73   :  { %5104 = vmatpush1.bf16.msra.mxu0 %v7619_v1  ;;  %5637 = vmatpush1.bf16.msra.mxu1 %v7622_v2  ;;  %v7706_v1 = vld [vmem:[%s11403_s1 + $0x548] ss:$16 sps:$4 sm:$0xff]   ;;  %v7711_v2 = vld [vmem:[%s11403_s1 + $0x564] ss:$16 sps:$4 sm:$0xff]  }
  0x74   :  { %5105 = vmatprep.subr.bf16.mxu0 %v7627_v3  ;;  %5638 = vmatprep.subr.bf16.mxu1 %v7630_v4  ;;  %v7714_v3 = vld [vmem:[%s11403_s1 + $0x56c] ss:$16 sps:$4 sm:$0xff]   ;;  %v7709_v4 = vld [vmem:[%s11403_s1 + $0x560] ss:$16 sps:$4 sm:$0xff]  }
  0x77   :  { %5106 = vmatpush1.bf16.msra.mxu0 %v7625_v5  ;;  %5639 = vmatpush1.bf16.msra.mxu1 %v7628_v6  ;;  %v7712_v5 = vld [vmem:[%s11403_s1 + $0x568] ss:$16 sps:$4 sm:$0xff]   ;;  %v7717_v6 = vld [vmem:[%s11403_s1 + $0x584] ss:$16 sps:$4 sm:$0xff]  }
  0x78   :  { %5107 = vmatprep.subr.bf16.mxu0 %v7633_v7  ;;  %5640 = vmatprep.subr.bf16.mxu1 %v7636_v8  ;;  %v7720_v7 = vld [vmem:[%s11403_s1 + $0x58c] ss:$16 sps:$4 sm:$0xff]   ;;  %v7715_v8 = vld [vmem:[%s11403_s1 + $0x580] ss:$16 sps:$4 sm:$0xff]  }
  0x7b   :  { %5108 = vmatpush1.bf16.msra.mxu0 %v7631_v10  ;;  %5641 = vmatpush1.bf16.msra.mxu1 %v7634_v11  ;;  %v7723_v10 = vld [vmem:[%s11403_s1 + $0x5a4] ss:$16 sps:$4 sm:$0xff]   ;;  %v7726_v11 = vld [vmem:[%s11403_s1 + $0x5ac] ss:$16 sps:$4 sm:$0xff]  }
  0x7c   :  { %5109 = vmatprep.subr.bf16.mxu0 %v7639_v12  ;;  %5642 = vmatprep.subr.bf16.mxu1 %v7642_v52  ;;  %v7721_v12 = vld [vmem:[%s11403_s1 + $0x5a0] ss:$16 sps:$4 sm:$0xff]   ;;  %v7724_v52 = vld [vmem:[%s11403_s1 + $0x5a8] ss:$16 sps:$4 sm:$0xff]  }
  0x7f   :  { %5110 = vmatpush1.bf16.msra.mxu0 %v7637_v15  ;;  %5643 = vmatpush1.bf16.msra.mxu1 %v7640_v16  ;;  %v7729_v15 = vld [vmem:[%s11403_s1 + $0x5c4] ss:$16 sps:$4 sm:$0xff]   ;;  %v7732_v16 = vld [vmem:[%s11403_s1 + $0x5cc] ss:$16 sps:$4 sm:$0xff]  }
  0x80   :  { %5120 = vmatprep.subr.bf16.mxu0 %v7645_v17  ;;  %5653 = vmatprep.subr.bf16.mxu1 %v7648_v18  ;;  %v7727_v17 = vld [vmem:[%s11403_s1 + $0x5c0] ss:$16 sps:$4 sm:$0xff]   ;;  %v7730_v18 = vld [vmem:[%s11403_s1 + $0x5c8] ss:$16 sps:$4 sm:$0xff]  }
  0x82   :  { %5112 = vmatmul.mubr.bf16.vlgmr.msra.gmra.mrb[0].mxu0 %v897_v21  ;;  %5645 = vmatmul.mubr.bf16.vlgmr.msra.gmra.mrb[0].mxu1 %v897_v21  ;;  %v7733_v21 = vld [vmem:[%s11403_s1 + $0x5e0] ss:$16 sps:$4 sm:$0xff]  }
  0x83   :  { %5121 = vmatpush1.bf16.msra.mxu0 %v7643_v20  ;;  %5654 = vmatpush1.bf16.msra.mxu1 %v7646_v22  ;;  %v7738_v20 = vld [vmem:[%s11403_s1 + $0x5ec] ss:$16 sps:$4 sm:$0xff]   ;;  %v7736_v22 = vld [vmem:[%s11403_s1 + $0x5e8] ss:$16 sps:$4 sm:$0xff]  }
  0x84   :  { %5122 = vmatprep.subr.bf16.mxu0 %v7651_v23  ;;  %5655 = vmatprep.subr.bf16.mxu1 %v7654_v24  ;;  %v7742_v23 = vld [vmem:[%s11403_s1 + $0x604] ss:$16 sps:$4 sm:$0xff]   ;;  %v7745_v24 = vld [vmem:[%s11403_s1 + $0x60c] ss:$16 sps:$4 sm:$0xff]  }
  0x85   :  { %5152 = vmatprep.mubr.bf16.mxu0 %v9175_v25  ;;  %5685 = vmatprep.mubr.bf16.mxu1 %v9175_v25 }
  0x87   :  { %5123 = vmatpush1.bf16.msra.mxu0 %v7649_v13  ;;  %5656 = vmatpush1.bf16.msra.mxu1 %v7652_v26  ;;  %v7740_v13 = vld [vmem:[%s11403_s1 + $0x600] ss:$16 sps:$4 sm:$0xff]   ;;  %v9364_v26 = vrot.slane %v9144_v14, %v8880_v49  ;;  %v900_v14 = vcombine.high %v9175_v25, %v9175_v25  ;;  %v7754_v25 = vld [vmem:[%s11403_s1 + $0x644] ss:$16 sps:$4 sm:$0xff]  }
  0x88   :  { %5124 = vmatprep.subr.bf16.mxu0 %v7657_v27  ;;  %5657 = vmatprep.subr.bf16.mxu1 %v7660_v28  ;;  %v7743_v27 = vld [vmem:[%s11403_s1 + $0x608] ss:$16 sps:$4 sm:$0xff]   ;;  %v7748_v28 = vld [vmem:[%s11403_s1 + $0x624] ss:$16 sps:$4 sm:$0xff]  }
  0x8b   :  { %5125 = vmatpush1.bf16.msra.mxu0 %v7655_v29  ;;  %5658 = vmatpush1.bf16.msra.mxu1 %v7658_v30  ;;  %v7751_v29 = vld [vmem:[%s11403_s1 + $0x62c] ss:$16 sps:$4 sm:$0xff]   ;;  %v7746_v30 = vld [vmem:[%s11403_s1 + $0x620] ss:$16 sps:$4 sm:$0xff]  }
  0x8c   :  { %5126 = vmatprep.subr.bf16.mxu0 %v7663_v31  ;;  %5659 = vmatprep.subr.bf16.mxu1 %v7666_v32  ;;  %v7749_v31 = vld [vmem:[%s11403_s1 + $0x628] ss:$16 sps:$4 sm:$0xff]   ;;  %v7757_v32 = vld [vmem:[%s11403_s1 + $0x64c] ss:$16 sps:$4 sm:$0xff]  }
  0x8f   :  { %5127 = vmatpush1.bf16.msra.mxu0 %v7661_v33  ;;  %5660 = vmatpush1.bf16.msra.mxu1 %v7664_v34  ;;  %v7752_v33 = vld [vmem:[%s11403_s1 + $0x640] ss:$16 sps:$4 sm:$0xff]   ;;  %v7755_v34 = vld [vmem:[%s11403_s1 + $0x648] ss:$16 sps:$4 sm:$0xff]  }
  0x90   :  { %5128 = vmatprep.subr.bf16.mxu0 %v7669_v35  ;;  %5661 = vmatprep.subr.bf16.mxu1 %v7672_v36  ;;  %v7760_v35 = vld [vmem:[%s11403_s1 + $0x664] ss:$16 sps:$4 sm:$0xff]   ;;  %v7763_v36 = vld [vmem:[%s11403_s1 + $0x66c] ss:$16 sps:$4 sm:$0xff]  }
  0x93   :  { %5129 = vmatpush1.bf16.msra.mxu0 %v7667_v37  ;;  %5662 = vmatpush1.bf16.msra.mxu1 %v7670_v38  ;;  %v7758_v37 = vld [vmem:[%s11403_s1 + $0x660] ss:$16 sps:$4 sm:$0xff]   ;;  %v7761_v38 = vld [vmem:[%s11403_s1 + $0x668] ss:$16 sps:$4 sm:$0xff]  }
  0x94   :  { %5130 = vmatprep.subr.bf16.mxu0 %v7675_v39  ;;  %5663 = vmatprep.subr.bf16.mxu1 %v7678_v40  ;;  %v7766_v39 = vld [vmem:[%s11403_s1 + $0x684] ss:$16 sps:$4 sm:$0xff]   ;;  %v7769_v40 = vld [vmem:[%s11403_s1 + $0x68c] ss:$16 sps:$4 sm:$0xff]  }
  0x97   :  { %5131 = vmatpush1.bf16.msra.mxu0 %v7673_v41  ;;  %5664 = vmatpush1.bf16.msra.mxu1 %v7676_v43  ;;  %v7764_v41 = vld [vmem:[%s11403_s1 + $0x680] ss:$16 sps:$4 sm:$0xff]   ;;  %v7767_v43 = vld [vmem:[%s11403_s1 + $0x688] ss:$16 sps:$4 sm:$0xff]  }
  0x98   :  { %5132 = vmatprep.subr.bf16.mxu0 %v7681_v44  ;;  %5665 = vmatprep.subr.bf16.mxu1 %v7684_v45  ;;  %v7772_v44 = vld [vmem:[%s11403_s1 + $0x6a4] ss:$16 sps:$4 sm:$0xff]   ;;  %v7775_v45 = vld [vmem:[%s11403_s1 + $0x6ac] ss:$16 sps:$4 sm:$0xff]  }
  0x9b   :  { %5133 = vmatpush1.bf16.msra.mxu0 %v7679_v46  ;;  %5666 = vmatpush1.bf16.msra.mxu1 %v7682_v47  ;;  %v7770_v46 = vld [vmem:[%s11403_s1 + $0x6a0] ss:$16 sps:$4 sm:$0xff]   ;;  %v7773_v47 = vld [vmem:[%s11403_s1 + $0x6a8] ss:$16 sps:$4 sm:$0xff]  }
  0x9c   :  { %5134 = vmatprep.subr.bf16.mxu0 %v7687_v48  ;;  %5667 = vmatprep.subr.bf16.mxu1 %v7690_v50  ;;  %v7778_v48 = vld [vmem:[%s11403_s1 + $0x6c4] ss:$16 sps:$4 sm:$0xff]   ;;  %v7781_v50 = vld [vmem:[%s11403_s1 + $0x6cc] ss:$16 sps:$4 sm:$0xff]  }
  0x9f   :  { %5135 = vmatpush1.bf16.msra.mxu0 %v7685_v51  ;;  %5668 = vmatpush1.bf16.msra.mxu1 %v7688_v53  ;;  %v7776_v51 = vld [vmem:[%s11403_s1 + $0x6c0] ss:$16 sps:$4 sm:$0xff]   ;;  %v7779_v53 = vld [vmem:[%s11403_s1 + $0x6c8] ss:$16 sps:$4 sm:$0xff]  }
  0xa0   :  { %5136 = vmatprep.subr.bf16.mxu0 %v7693_v54  ;;  %5669 = vmatprep.subr.bf16.mxu1 %v7696_v55  ;;  %v7784_v54 = vld [vmem:[%s11403_s1 + $0x6e4] ss:$16 sps:$4 sm:$0xff]   ;;  %v7787_v55 = vld [vmem:[%s11403_s1 + $0x6ec] ss:$16 sps:$4 sm:$0xff]  }
  0xa3   :  { %5137 = vmatpush1.bf16.msra.mxu0 %v7691_v56  ;;  %5670 = vmatpush1.bf16.msra.mxu1 %v7694_v57  ;;  %v7782_v56 = vld [vmem:[%s11403_s1 + $0x6e0] ss:$16 sps:$4 sm:$0xff]   ;;  %v7785_v57 = vld [vmem:[%s11403_s1 + $0x6e8] ss:$16 sps:$4 sm:$0xff]  }
  0xa4   :  { %5138 = vmatprep.subr.bf16.mxu0 %v7699_v58  ;;  %5671 = vmatprep.subr.bf16.mxu1 %v7702_v59  ;;  %v7790_v58 = vld [vmem:[%s11403_s1 + $0x704] ss:$16 sps:$4 sm:$0xff]   ;;  %v7793_v59 = vld [vmem:[%s11403_s1 + $0x70c] ss:$16 sps:$4 sm:$0xff]  }
  0xa7   :  { %5139 = vmatpush1.bf16.msra.mxu0 %v7697_v60  ;;  %5672 = vmatpush1.bf16.msra.mxu1 %v7700_v61  ;;  %v7788_v60 = vld [vmem:[%s11403_s1 + $0x700] ss:$16 sps:$4 sm:$0xff]   ;;  %v7791_v61 = vld [vmem:[%s11403_s1 + $0x708] ss:$16 sps:$4 sm:$0xff]  }
  0xa8   :  { %5140 = vmatprep.subr.bf16.mxu0 %v7705_v62  ;;  %5673 = vmatprep.subr.bf16.mxu1 %v7708_v63  ;;  %v7796_v62 = vld [vmem:[%s11403_s1 + $0x724] ss:$16 sps:$4 sm:$0xff]   ;;  %v7799_v63 = vld [vmem:[%s11403_s1 + $0x72c] ss:$16 sps:$4 sm:$0xff]  }
  0xab   :  { %5141 = vmatpush1.bf16.msra.mxu0 %v7703_v0  ;;  %5674 = vmatpush1.bf16.msra.mxu1 %v7706_v1  ;;  %v7794_v0 = vld [vmem:[%s11403_s1 + $0x720] ss:$16 sps:$4 sm:$0xff]   ;;  %v7797_v1 = vld [vmem:[%s11403_s1 + $0x728] ss:$16 sps:$4 sm:$0xff]  }
  0xac   :  { %5142 = vmatprep.subr.bf16.mxu0 %v7711_v2  ;;  %5675 = vmatprep.subr.bf16.mxu1 %v7714_v3  ;;  %v7802_v2 = vld [vmem:[%s11403_s1 + $0x744] ss:$16 sps:$4 sm:$0xff]   ;;  %v7805_v3 = vld [vmem:[%s11403_s1 + $0x74c] ss:$16 sps:$4 sm:$0xff]  }
  0xaf   :  { %5143 = vmatpush1.bf16.msra.mxu0 %v7709_v4  ;;  %5676 = vmatpush1.bf16.msra.mxu1 %v7712_v5  ;;  %v7800_v4 = vld [vmem:[%s11403_s1 + $0x740] ss:$16 sps:$4 sm:$0xff]   ;;  %v7803_v5 = vld [vmem:[%s11403_s1 + $0x748] ss:$16 sps:$4 sm:$0xff]  }
  0xb0   :  { %5144 = vmatprep.subr.bf16.mxu0 %v7717_v6  ;;  %5677 = vmatprep.subr.bf16.mxu1 %v7720_v7  ;;  %v7808_v6 = vld [vmem:[%s11403_s1 + $0x764] ss:$16 sps:$4 sm:$0xff]   ;;  %v7811_v7 = vld [vmem:[%s11403_s1 + $0x76c] ss:$16 sps:$4 sm:$0xff]  }
  0xb3   :  { %5145 = vmatpush1.bf16.msra.mxu0 %v7715_v8  ;;  %5678 = vmatpush1.bf16.msra.mxu1 %v7718_v9  ;;  %v7806_v8 = vld [vmem:[%s11403_s1 + $0x760] ss:$16 sps:$4 sm:$0xff]   ;;  %v7809_v9 = vld [vmem:[%s11403_s1 + $0x768] ss:$16 sps:$4 sm:$0xff]  }
  0xb4   :  { %5146 = vmatprep.subr.bf16.mxu0 %v7723_v10  ;;  %5679 = vmatprep.subr.bf16.mxu1 %v7726_v11  ;;  %v7814_v10 = vld [vmem:[%s11403_s1 + $0x784] ss:$16 sps:$4 sm:$0xff]   ;;  %v7817_v11 = vld [vmem:[%s11403_s1 + $0x78c] ss:$16 sps:$4 sm:$0xff]  }
  0xb7   :  { %5147 = vmatpush1.bf16.msra.mxu0 %v7721_v12  ;;  %5680 = vmatpush1.bf16.msra.mxu1 %v7724_v52  ;;  %v7812_v12 = vld [vmem:[%s11403_s1 + $0x780] ss:$16 sps:$4 sm:$0xff]   ;;  %v7815_v52 = vld [vmem:[%s11403_s1 + $0x788] ss:$16 sps:$4 sm:$0xff]  }
  0xb8   :  { %5148 = vmatprep.subr.bf16.mxu0 %v7729_v15  ;;  %5681 = vmatprep.subr.bf16.mxu1 %v7732_v16  ;;  %v7820_v15 = vld [vmem:[%s11403_s1 + $0x7a4] ss:$16 sps:$4 sm:$0xff]   ;;  %v7823_v16 = vld [vmem:[%s11403_s1 + $0x7ac] ss:$16 sps:$4 sm:$0xff]  }
  0xbb   :  { %5149 = vmatpush1.bf16.msra.mxu0 %v7727_v17  ;;  %5682 = vmatpush1.bf16.msra.mxu1 %v7730_v18  ;;  %v7818_v17 = vld [vmem:[%s11403_s1 + $0x7a0] ss:$16 sps:$4 sm:$0xff]   ;;  %v7821_v18 = vld [vmem:[%s11403_s1 + $0x7a8] ss:$16 sps:$4 sm:$0xff]  }
  0xbc   :  { %5150 = vmatprep.subr.bf16.mxu0 %v7735_v19  ;;  %5683 = vmatprep.subr.bf16.mxu1 %v7738_v20  ;;  %v7826_v19 = vld [vmem:[%s11403_s1 + $0x7c4] ss:$16 sps:$4 sm:$0xff]   ;;  %v7829_v20 = vld [vmem:[%s11403_s1 + $0x7cc] ss:$16 sps:$4 sm:$0xff]  }
  0xbf   :  { %5151 = vmatpush1.bf16.msra.mxu0 %v7733_v21  ;;  %5684 = vmatpush1.bf16.msra.mxu1 %v7736_v22  ;;  %v9538_v21 = vld.sshfl [vmem:[%s11402_s0 + $0x8] sm:$0xff pattern:$0x75316420]  ;;  %v7824_v22 = vld [vmem:[%s11403_s1 + $0x7c0] ss:$16 sps:$4 sm:$0xff]  }
  0xc0   :  { %5161 = vmatprep.subr.bf16.mxu0 %v7742_v23  ;;  %5694 = vmatprep.subr.bf16.mxu1 %v7745_v24  ;;  %v7827_v23 = vld [vmem:[%s11403_s1 + $0x7c8] ss:$16 sps:$4 sm:$0xff]   ;;  %v7832_v24 = vld [vmem:[%s11403_s1 + $0x7e4] ss:$16 sps:$4 sm:$0xff]  }
  0xc2   :  { %5153 = vmatmul.mubr.bf16.vlgmr.msra.gmra.mrb[0].mxu0 %v9364_v26  ;;  %5686 = vmatmul.mubr.bf16.vlgmr.msra.gmra.mrb[0].mxu1 %v9364_v26 }
  0xc3   :  { %5162 = vmatpush1.bf16.msra.mxu0 %v7740_v13  ;;  %5695 = vmatpush1.bf16.msra.mxu1 %v7743_v27  ;;  %v7835_v13 = vld [vmem:[%s11403_s1 + $0x7ec] ss:$16 sps:$4 sm:$0xff]   ;;  %v7830_v27 = vld [vmem:[%s11403_s1 + $0x7e0] ss:$16 sps:$4 sm:$0xff]  }
  0xc4   :  { %5163 = vmatprep.subr.bf16.mxu0 %v7748_v28  ;;  %5696 = vmatprep.subr.bf16.mxu1 %v7751_v29  ;;  %v7833_v28 = vld [vmem:[%s11403_s1 + $0x7e8] ss:$16 sps:$4 sm:$0xff]   ;;  %v7838_v29 = vld [vmem:[%s11403_s1 + $0x804] ss:$16 sps:$4 sm:$0xff]  }
  0xc5   :  { %5193 = vmatprep.mubr.bf16.mxu0 %v900_v14  ;;  %5726 = vmatprep.mubr.bf16.mxu1 %v900_v14  ;;  %v7841_v14 = vld [vmem:[%s11403_s1 + $0x80c] ss:$16 sps:$4 sm:$0xff]  }
  0xc7   :  { %5164 = vmatpush1.bf16.msra.mxu0 %v7746_v30  ;;  %5697 = vmatpush1.bf16.msra.mxu1 %v7749_v31  ;;  %v916_v30 = vcombine.high %v9538_v21, %v9538_v21  ;;  %v898_v31 = vcombine.high %v9364_v26, %v9364_v26  ;;  %v7847_v26 = vld [vmem:[%s11403_s1 + $0x82c] ss:$16 sps:$4 sm:$0xff]  }
  0xc8   :  { %5165 = vmatprep.subr.bf16.mxu0 %v7754_v25  ;;  %5698 = vmatprep.subr.bf16.mxu1 %v7757_v32  ;;  %v7836_v25 = vld [vmem:[%s11403_s1 + $0x800] ss:$16 sps:$4 sm:$0xff]   ;;  %v7839_v32 = vld [vmem:[%s11403_s1 + $0x808] ss:$16 sps:$4 sm:$0xff]  }
  0xcb   :  { %5166 = vmatpush1.bf16.msra.mxu0 %v7752_v33  ;;  %5699 = vmatpush1.bf16.msra.mxu1 %v7755_v34  ;;  %v7844_v33 = vld [vmem:[%s11403_s1 + $0x824] ss:$16 sps:$4 sm:$0xff]   ;;  %v9581_v34 = vrot.slane %v916_v30, %v8880_v49 }
  0xcc   :  { %5167 = vmatprep.subr.bf16.mxu0 %v7760_v35  ;;  %5700 = vmatprep.subr.bf16.mxu1 %v7763_v36  ;;  %v7842_v35 = vld [vmem:[%s11403_s1 + $0x820] ss:$16 sps:$4 sm:$0xff]   ;;  %v7845_v36 = vld [vmem:[%s11403_s1 + $0x828] ss:$16 sps:$4 sm:$0xff]   ;;  %v7928_v30 = vld [vmem:[%s11403_s1 + $0x9e4] ss:$16 sps:$4 sm:$0xff]  }
  0xcf   :  { %5168 = vmatpush1.bf16.msra.mxu0 %v7758_v37  ;;  %5701 = vmatpush1.bf16.msra.mxu1 %v7761_v38  ;;  %v7850_v37 = vld [vmem:[%s11403_s1 + $0x844] ss:$16 sps:$4 sm:$0xff]   ;;  %v7853_v38 = vld [vmem:[%s11403_s1 + $0x84c] ss:$16 sps:$4 sm:$0xff]  }
  0xd0   :  { %5169 = vmatprep.subr.bf16.mxu0 %v7766_v39  ;;  %5702 = vmatprep.subr.bf16.mxu1 %v7769_v40  ;;  %v7848_v39 = vld [vmem:[%s11403_s1 + $0x840] ss:$16 sps:$4 sm:$0xff]   ;;  %v7851_v40 = vld [vmem:[%s11403_s1 + $0x848] ss:$16 sps:$4 sm:$0xff]  }
  0xd3   :  { %5170 = vmatpush1.bf16.msra.mxu0 %v7764_v41  ;;  %5703 = vmatpush1.bf16.msra.mxu1 %v7767_v43  ;;  %v7856_v41 = vld [vmem:[%s11403_s1 + $0x864] ss:$16 sps:$4 sm:$0xff]   ;;  %v7859_v43 = vld [vmem:[%s11403_s1 + $0x86c] ss:$16 sps:$4 sm:$0xff]  }
  0xd4   :  { %5171 = vmatprep.subr.bf16.mxu0 %v7772_v44  ;;  %5704 = vmatprep.subr.bf16.mxu1 %v7775_v45  ;;  %v7854_v44 = vld [vmem:[%s11403_s1 + $0x860] ss:$16 sps:$4 sm:$0xff]   ;;  %v7857_v45 = vld [vmem:[%s11403_s1 + $0x868] ss:$16 sps:$4 sm:$0xff]  }
  0xd7   :  { %5172 = vmatpush1.bf16.msra.mxu0 %v7770_v46  ;;  %5705 = vmatpush1.bf16.msra.mxu1 %v7773_v47  ;;  %v7862_v46 = vld [vmem:[%s11403_s1 + $0x884] ss:$16 sps:$4 sm:$0xff]   ;;  %v7865_v47 = vld [vmem:[%s11403_s1 + $0x88c] ss:$16 sps:$4 sm:$0xff]  }
  0xd8   :  { %5173 = vmatprep.subr.bf16.mxu0 %v7778_v48  ;;  %5706 = vmatprep.subr.bf16.mxu1 %v7781_v50  ;;  %v7860_v48 = vld [vmem:[%s11403_s1 + $0x880] ss:$16 sps:$4 sm:$0xff]   ;;  %v7863_v50 = vld [vmem:[%s11403_s1 + $0x888] ss:$16 sps:$4 sm:$0xff]  }
  0xdb   :  { %5174 = vmatpush1.bf16.msra.mxu0 %v7776_v51  ;;  %5707 = vmatpush1.bf16.msra.mxu1 %v7779_v53  ;;  %v7868_v51 = vld [vmem:[%s11403_s1 + $0x8a4] ss:$16 sps:$4 sm:$0xff]   ;;  %v7871_v53 = vld [vmem:[%s11403_s1 + $0x8ac] ss:$16 sps:$4 sm:$0xff]  }
  0xdc   :  { %5175 = vmatprep.subr.bf16.mxu0 %v7784_v54  ;;  %5708 = vmatprep.subr.bf16.mxu1 %v7787_v55  ;;  %v7866_v54 = vld [vmem:[%s11403_s1 + $0x8a0] ss:$16 sps:$4 sm:$0xff]   ;;  %v7869_v55 = vld [vmem:[%s11403_s1 + $0x8a8] ss:$16 sps:$4 sm:$0xff]  }
  0xdf   :  { %5176 = vmatpush1.bf16.msra.mxu0 %v7782_v56  ;;  %5709 = vmatpush1.bf16.msra.mxu1 %v7785_v57  ;;  %v7874_v56 = vld [vmem:[%s11403_s1 + $0x8c4] ss:$16 sps:$4 sm:$0xff]   ;;  %v7877_v57 = vld [vmem:[%s11403_s1 + $0x8cc] ss:$16 sps:$4 sm:$0xff]  }
  0xe0   :  { %5177 = vmatprep.subr.bf16.mxu0 %v7790_v58  ;;  %5710 = vmatprep.subr.bf16.mxu1 %v7793_v59  ;;  %v7872_v58 = vld [vmem:[%s11403_s1 + $0x8c0] ss:$16 sps:$4 sm:$0xff]   ;;  %v7875_v59 = vld [vmem:[%s11403_s1 + $0x8c8] ss:$16 sps:$4 sm:$0xff]  }
  0xe3   :  { %5178 = vmatpush1.bf16.msra.mxu0 %v7788_v60  ;;  %5711 = vmatpush1.bf16.msra.mxu1 %v7791_v61  ;;  %v7880_v60 = vld [vmem:[%s11403_s1 + $0x8e4] ss:$16 sps:$4 sm:$0xff]   ;;  %v7883_v61 = vld [vmem:[%s11403_s1 + $0x8ec] ss:$16 sps:$4 sm:$0xff]  }
  0xe4   :  { %5179 = vmatprep.subr.bf16.mxu0 %v7796_v62  ;;  %5712 = vmatprep.subr.bf16.mxu1 %v7799_v63  ;;  %v7878_v62 = vld [vmem:[%s11403_s1 + $0x8e0] ss:$16 sps:$4 sm:$0xff]   ;;  %v7881_v63 = vld [vmem:[%s11403_s1 + $0x8e8] ss:$16 sps:$4 sm:$0xff]  }
  0xe7   :  { %5180 = vmatpush1.bf16.msra.mxu0 %v7794_v0  ;;  %5713 = vmatpush1.bf16.msra.mxu1 %v7797_v1  ;;  %v7886_v0 = vld [vmem:[%s11403_s1 + $0x904] ss:$16 sps:$4 sm:$0xff]   ;;  %v7889_v1 = vld [vmem:[%s11403_s1 + $0x90c] ss:$16 sps:$4 sm:$0xff]  }
  0xe8   :  { %5181 = vmatprep.subr.bf16.mxu0 %v7802_v2  ;;  %5714 = vmatprep.subr.bf16.mxu1 %v7805_v3  ;;  %v7884_v2 = vld [vmem:[%s11403_s1 + $0x900] ss:$16 sps:$4 sm:$0xff]   ;;  %v7887_v3 = vld [vmem:[%s11403_s1 + $0x908] ss:$16 sps:$4 sm:$0xff]  }
  0xeb   :  { %5182 = vmatpush1.bf16.msra.mxu0 %v7800_v4  ;;  %5715 = vmatpush1.bf16.msra.mxu1 %v7803_v5  ;;  %v7892_v4 = vld [vmem:[%s11403_s1 + $0x924] ss:$16 sps:$4 sm:$0xff]   ;;  %v7895_v5 = vld [vmem:[%s11403_s1 + $0x92c] ss:$16 sps:$4 sm:$0xff]  }
  0xec   :  { %5183 = vmatprep.subr.bf16.mxu0 %v7808_v6  ;;  %5716 = vmatprep.subr.bf16.mxu1 %v7811_v7  ;;  %v7890_v6 = vld [vmem:[%s11403_s1 + $0x920] ss:$16 sps:$4 sm:$0xff]   ;;  %v7893_v7 = vld [vmem:[%s11403_s1 + $0x928] ss:$16 sps:$4 sm:$0xff]  }
  0xef   :  { %5184 = vmatpush1.bf16.msra.mxu0 %v7806_v8  ;;  %5717 = vmatpush1.bf16.msra.mxu1 %v7809_v9  ;;  %v7898_v8 = vld [vmem:[%s11403_s1 + $0x944] ss:$16 sps:$4 sm:$0xff]   ;;  %v7901_v9 = vld [vmem:[%s11403_s1 + $0x94c] ss:$16 sps:$4 sm:$0xff]  }
  0xf0   :  { %5185 = vmatprep.subr.bf16.mxu0 %v7814_v10  ;;  %5718 = vmatprep.subr.bf16.mxu1 %v7817_v11  ;;  %v7896_v10 = vld [vmem:[%s11403_s1 + $0x940] ss:$16 sps:$4 sm:$0xff]   ;;  %v7899_v11 = vld [vmem:[%s11403_s1 + $0x948] ss:$16 sps:$4 sm:$0xff]  }
  0xf3   :  { %5186 = vmatpush1.bf16.msra.mxu0 %v7812_v12  ;;  %5719 = vmatpush1.bf16.msra.mxu1 %v7815_v52  ;;  %v7904_v12 = vld [vmem:[%s11403_s1 + $0x964] ss:$16 sps:$4 sm:$0xff]   ;;  %v7907_v52 = vld [vmem:[%s11403_s1 + $0x96c] ss:$16 sps:$4 sm:$0xff]  }
  0xf4   :  { %5187 = vmatprep.subr.bf16.mxu0 %v7820_v15  ;;  %5720 = vmatprep.subr.bf16.mxu1 %v7823_v16  ;;  %v7902_v15 = vld [vmem:[%s11403_s1 + $0x960] ss:$16 sps:$4 sm:$0xff]   ;;  %v7905_v16 = vld [vmem:[%s11403_s1 + $0x968] ss:$16 sps:$4 sm:$0xff]  }
  0xf7   :  { %5188 = vmatpush1.bf16.msra.mxu0 %v7818_v17  ;;  %5721 = vmatpush1.bf16.msra.mxu1 %v7821_v18  ;;  %v7910_v17 = vld [vmem:[%s11403_s1 + $0x984] ss:$16 sps:$4 sm:$0xff]   ;;  %v7913_v18 = vld [vmem:[%s11403_s1 + $0x98c] ss:$16 sps:$4 sm:$0xff]  }
  0xf8   :  { %5189 = vmatprep.subr.bf16.mxu0 %v7826_v19  ;;  %5722 = vmatprep.subr.bf16.mxu1 %v7829_v20  ;;  %v7908_v19 = vld [vmem:[%s11403_s1 + $0x980] ss:$16 sps:$4 sm:$0xff]   ;;  %v7911_v20 = vld [vmem:[%s11403_s1 + $0x988] ss:$16 sps:$4 sm:$0xff]  }
  0xfb   :  { %5190 = vmatpush1.bf16.msra.mxu0 %v7824_v22  ;;  %5723 = vmatpush1.bf16.msra.mxu1 %v7827_v23  ;;  %v7916_v22 = vld [vmem:[%s11403_s1 + $0x9a4] ss:$16 sps:$4 sm:$0xff]   ;;  %v7919_v23 = vld [vmem:[%s11403_s1 + $0x9ac] ss:$16 sps:$4 sm:$0xff]  }
  0xfc   :  { %5191 = vmatprep.subr.bf16.mxu0 %v7832_v24  ;;  %5724 = vmatprep.subr.bf16.mxu1 %v7835_v13  ;;  %v7914_v24 = vld [vmem:[%s11403_s1 + $0x9a0] ss:$16 sps:$4 sm:$0xff]   ;;  %v7917_v13 = vld [vmem:[%s11403_s1 + $0x9a8] ss:$16 sps:$4 sm:$0xff]  }
  0xff   :  { %5192 = vmatpush1.bf16.msra.mxu0 %v7830_v27  ;;  %5725 = vmatpush1.bf16.msra.mxu1 %v7833_v28  ;;  %v7922_v27 = vld [vmem:[%s11403_s1 + $0x9c4] ss:$16 sps:$4 sm:$0xff]   ;;  %v7925_v28 = vld [vmem:[%s11403_s1 + $0x9cc] ss:$16 sps:$4 sm:$0xff]  }
 0x100   :  { %5202 = vmatprep.subr.bf16.mxu0 %v7838_v29  ;;  %5735 = vmatprep.subr.bf16.mxu1 %v7841_v14  ;;  %v7920_v29 = vld [vmem:[%s11403_s1 + $0x9c0] ss:$16 sps:$4 sm:$0xff]   ;;  %v7923_v14 = vld [vmem:[%s11403_s1 + $0x9c8] ss:$16 sps:$4 sm:$0xff]  }
 0x102   :  { %5194 = vmatmul.mubr.bf16.vlgmr.msra.gmra.mrb[0].mxu0 %v898_v31  ;;  %5727 = vmatmul.mubr.bf16.vlgmr.msra.gmra.mrb[0].mxu1 %v898_v31  ;;  %v7931_v31 = vld [vmem:[%s11403_s1 + $0x9ec] ss:$16 sps:$4 sm:$0xff]  }
 0x103   :  { %5203 = vmatpush1.bf16.msra.mxu0 %v7836_v25  ;;  %5736 = vmatpush1.bf16.msra.mxu1 %v7839_v32  ;;  %v7926_v25 = vld [vmem:[%s11403_s1 + $0x9e0] ss:$16 sps:$4 sm:$0xff]   ;;  %v7929_v32 = vld [vmem:[%s11403_s1 + $0x9e8] ss:$16 sps:$4 sm:$0xff]  }
 0x104   :  { %5204 = vmatprep.subr.bf16.mxu0 %v7844_v33  ;;  %5737 = vmatprep.subr.bf16.mxu1 %v7847_v26  ;;  %v7934_v33 = vld [vmem:[%s11403_s1 + $0xa04] ss:$16 sps:$4 sm:$0xff]   ;;  %v7937_v26 = vld [vmem:[%s11403_s1 + $0xa0c] ss:$16 sps:$4 sm:$0xff]  }
 0x105   :  { %5234 = vmatprep.mubr.bf16.mxu0 %v9581_v34  ;;  %5767 = vmatprep.mubr.bf16.mxu1 %v9581_v34 }
 0x107   :  { %5205 = vmatpush1.bf16.msra.mxu0 %v7842_v35  ;;  %5738 = vmatpush1.bf16.msra.mxu1 %v7845_v36  ;;  %v9767_v35 = vrot.slane %v9538_v21, %v8880_v49  ;;  %v7932_v36 = vld [vmem:[%s11403_s1 + $0xa00] ss:$16 sps:$4 sm:$0xff]   ;;  %v7943_v21 = vld [vmem:[%s11403_s1 + $0xa2c] ss:$16 sps:$4 sm:$0xff]  }
 0x108   :  { %5206 = vmatprep.subr.bf16.mxu0 %v7850_v37  ;;  %5739 = vmatprep.subr.bf16.mxu1 %v7853_v38  ;;  %v7935_v37 = vld [vmem:[%s11403_s1 + $0xa08] ss:$16 sps:$4 sm:$0xff]   ;;  %v7940_v38 = vld [vmem:[%s11403_s1 + $0xa24] ss:$16 sps:$4 sm:$0xff]  }
 0x10b   :  { %5207 = vmatpush1.bf16.msra.mxu0 %v7848_v39  ;;  %5740 = vmatpush1.bf16.msra.mxu1 %v7851_v40  ;;  %v948_v39 = vcombine.high %v9581_v34, %v9581_v34  ;;  %v7938_v40 = vld [vmem:[%s11403_s1 + $0xa20] ss:$16 sps:$4 sm:$0xff]   ;;  %v7946_v34 = vld [vmem:[%s11403_s1 + $0xa44] ss:$16 sps:$4 sm:$0xff]  }
 0x10c   :  { %5208 = vmatprep.subr.bf16.mxu0 %v7856_v41  ;;  %5741 = vmatprep.subr.bf16.mxu1 %v7859_v43  ;;  %v7941_v41 = vld [vmem:[%s11403_s1 + $0xa28] ss:$16 sps:$4 sm:$0xff]   ;;  %v7949_v43 = vld [vmem:[%s11403_s1 + $0xa4c] ss:$16 sps:$4 sm:$0xff]  }
 0x10f   :  { %5209 = vmatpush1.bf16.msra.mxu0 %v7854_v44  ;;  %5742 = vmatpush1.bf16.msra.mxu1 %v7857_v45  ;;  %v7944_v44 = vld [vmem:[%s11403_s1 + $0xa40] ss:$16 sps:$4 sm:$0xff]   ;;  %v7947_v45 = vld [vmem:[%s11403_s1 + $0xa48] ss:$16 sps:$4 sm:$0xff]  }
 0x110   :  { %5210 = vmatprep.subr.bf16.mxu0 %v7862_v46  ;;  %5743 = vmatprep.subr.bf16.mxu1 %v7865_v47  ;;  %v7952_v46 = vld [vmem:[%s11403_s1 + $0xa64] ss:$16 sps:$4 sm:$0xff]   ;;  %v7955_v47 = vld [vmem:[%s11403_s1 + $0xa6c] ss:$16 sps:$4 sm:$0xff]  }
 0x113   :  { %5211 = vmatpush1.bf16.msra.mxu0 %v7860_v48  ;;  %5744 = vmatpush1.bf16.msra.mxu1 %v7863_v50  ;;  %v7950_v48 = vld [vmem:[%s11403_s1 + $0xa60] ss:$16 sps:$4 sm:$0xff]   ;;  %v7953_v50 = vld [vmem:[%s11403_s1 + $0xa68] ss:$16 sps:$4 sm:$0xff]  }
 0x114   :  { %5212 = vmatprep.subr.bf16.mxu0 %v7868_v51  ;;  %5745 = vmatprep.subr.bf16.mxu1 %v7871_v53  ;;  %v7958_v51 = vld [vmem:[%s11403_s1 + $0xa84] ss:$16 sps:$4 sm:$0xff]   ;;  %v7961_v53 = vld [vmem:[%s11403_s1 + $0xa8c] ss:$16 sps:$4 sm:$0xff]  }
 0x117   :  { %5213 = vmatpush1.bf16.msra.mxu0 %v7866_v54  ;;  %5746 = vmatpush1.bf16.msra.mxu1 %v7869_v55  ;;  %v7956_v54 = vld [vmem:[%s11403_s1 + $0xa80] ss:$16 sps:$4 sm:$0xff]   ;;  %v7959_v55 = vld [vmem:[%s11403_s1 + $0xa88] ss:$16 sps:$4 sm:$0xff]  }
 0x118   :  { %5214 = vmatprep.subr.bf16.mxu0 %v7874_v56  ;;  %5747 = vmatprep.subr.bf16.mxu1 %v7877_v57  ;;  %v7964_v56 = vld [vmem:[%s11403_s1 + $0xaa4] ss:$16 sps:$4 sm:$0xff]   ;;  %v7967_v57 = vld [vmem:[%s11403_s1 + $0xaac] ss:$16 sps:$4 sm:$0xff]  }
 0x11b   :  { %5215 = vmatpush1.bf16.msra.mxu0 %v7872_v58  ;;  %5748 = vmatpush1.bf16.msra.mxu1 %v7875_v59  ;;  %v7962_v58 = vld [vmem:[%s11403_s1 + $0xaa0] ss:$16 sps:$4 sm:$0xff]   ;;  %v7965_v59 = vld [vmem:[%s11403_s1 + $0xaa8] ss:$16 sps:$4 sm:$0xff]  }
 0x11c   :  { %5216 = vmatprep.subr.bf16.mxu0 %v7880_v60  ;;  %5749 = vmatprep.subr.bf16.mxu1 %v7883_v61  ;;  %v7970_v60 = vld [vmem:[%s11403_s1 + $0xac4] ss:$16 sps:$4 sm:$0xff]   ;;  %v7973_v61 = vld [vmem:[%s11403_s1 + $0xacc] ss:$16 sps:$4 sm:$0xff]  }
 0x11f   :  { %5217 = vmatpush1.bf16.msra.mxu0 %v7878_v62  ;;  %5750 = vmatpush1.bf16.msra.mxu1 %v7881_v63  ;;  %v7968_v62 = vld [vmem:[%s11403_s1 + $0xac0] ss:$16 sps:$4 sm:$0xff]   ;;  %v7971_v63 = vld [vmem:[%s11403_s1 + $0xac8] ss:$16 sps:$4 sm:$0xff]  }
 0x120   :  { %5218 = vmatprep.subr.bf16.mxu0 %v7886_v0  ;;  %5751 = vmatprep.subr.bf16.mxu1 %v7889_v1  ;;  %v7976_v0 = vld [vmem:[%s11403_s1 + $0xae4] ss:$16 sps:$4 sm:$0xff]   ;;  %v7979_v1 = vld [vmem:[%s11403_s1 + $0xaec] ss:$16 sps:$4 sm:$0xff]  }
 0x123   :  { %5219 = vmatpush1.bf16.msra.mxu0 %v7884_v2  ;;  %5752 = vmatpush1.bf16.msra.mxu1 %v7887_v3  ;;  %v7974_v2 = vld [vmem:[%s11403_s1 + $0xae0] ss:$16 sps:$4 sm:$0xff]   ;;  %v7977_v3 = vld [vmem:[%s11403_s1 + $0xae8] ss:$16 sps:$4 sm:$0xff]  }
 0x124   :  { %5220 = vmatprep.subr.bf16.mxu0 %v7892_v4  ;;  %5753 = vmatprep.subr.bf16.mxu1 %v7895_v5  ;;  %v7982_v4 = vld [vmem:[%s11403_s1 + $0xb04] ss:$16 sps:$4 sm:$0xff]   ;;  %v7985_v5 = vld [vmem:[%s11403_s1 + $0xb0c] ss:$16 sps:$4 sm:$0xff]  }
 0x127   :  { %5221 = vmatpush1.bf16.msra.mxu0 %v7890_v6  ;;  %5754 = vmatpush1.bf16.msra.mxu1 %v7893_v7  ;;  %v7980_v6 = vld [vmem:[%s11403_s1 + $0xb00] ss:$16 sps:$4 sm:$0xff]   ;;  %v7983_v7 = vld [vmem:[%s11403_s1 + $0xb08] ss:$16 sps:$4 sm:$0xff]  }
 0x128   :  { %5222 = vmatprep.subr.bf16.mxu0 %v7898_v8  ;;  %5755 = vmatprep.subr.bf16.mxu1 %v7901_v9  ;;  %v7988_v8 = vld [vmem:[%s11403_s1 + $0xb24] ss:$16 sps:$4 sm:$0xff]   ;;  %v7991_v9 = vld [vmem:[%s11403_s1 + $0xb2c] ss:$16 sps:$4 sm:$0xff]  }
 0x12b   :  { %5223 = vmatpush1.bf16.msra.mxu0 %v7896_v10  ;;  %5756 = vmatpush1.bf16.msra.mxu1 %v7899_v11  ;;  %v7986_v10 = vld [vmem:[%s11403_s1 + $0xb20] ss:$16 sps:$4 sm:$0xff]   ;;  %v7989_v11 = vld [vmem:[%s11403_s1 + $0xb28] ss:$16 sps:$4 sm:$0xff]  }
 0x12c   :  { %5224 = vmatprep.subr.bf16.mxu0 %v7904_v12  ;;  %5757 = vmatprep.subr.bf16.mxu1 %v7907_v52  ;;  %v7994_v12 = vld [vmem:[%s11403_s1 + $0xb44] ss:$16 sps:$4 sm:$0xff]   ;;  %v7997_v52 = vld [vmem:[%s11403_s1 + $0xb4c] ss:$16 sps:$4 sm:$0xff]  }
 0x12f   :  { %5225 = vmatpush1.bf16.msra.mxu0 %v7902_v15  ;;  %5758 = vmatpush1.bf16.msra.mxu1 %v7905_v16  ;;  %v7992_v15 = vld [vmem:[%s11403_s1 + $0xb40] ss:$16 sps:$4 sm:$0xff]   ;;  %v7995_v16 = vld [vmem:[%s11403_s1 + $0xb48] ss:$16 sps:$4 sm:$0xff]  }
 0x130   :  { %5226 = vmatprep.subr.bf16.mxu0 %v7910_v17  ;;  %5759 = vmatprep.subr.bf16.mxu1 %v7913_v18  ;;  %v8000_v17 = vld [vmem:[%s11403_s1 + $0xb64] ss:$16 sps:$4 sm:$0xff]   ;;  %v8003_v18 = vld [vmem:[%s11403_s1 + $0xb6c] ss:$16 sps:$4 sm:$0xff]  }
 0x133   :  { %5227 = vmatpush1.bf16.msra.mxu0 %v7908_v19  ;;  %5760 = vmatpush1.bf16.msra.mxu1 %v7911_v20  ;;  %v7998_v19 = vld [vmem:[%s11403_s1 + $0xb60] ss:$16 sps:$4 sm:$0xff]   ;;  %v8001_v20 = vld [vmem:[%s11403_s1 + $0xb68] ss:$16 sps:$4 sm:$0xff]  }
 0x134   :  { %5228 = vmatprep.subr.bf16.mxu0 %v7916_v22  ;;  %5761 = vmatprep.subr.bf16.mxu1 %v7919_v23  ;;  %v8006_v22 = vld [vmem:[%s11403_s1 + $0xb84] ss:$16 sps:$4 sm:$0xff]   ;;  %v8009_v23 = vld [vmem:[%s11403_s1 + $0xb8c] ss:$16 sps:$4 sm:$0xff]  }
 0x137   :  { %5229 = vmatpush1.bf16.msra.mxu0 %v7914_v24  ;;  %5762 = vmatpush1.bf16.msra.mxu1 %v7917_v13  ;;  %v8004_v24 = vld [vmem:[%s11403_s1 + $0xb80] ss:$16 sps:$4 sm:$0xff]   ;;  %v8007_v13 = vld [vmem:[%s11403_s1 + $0xb88] ss:$16 sps:$4 sm:$0xff]  }
 0x138   :  { %5230 = vmatprep.subr.bf16.mxu0 %v7922_v27  ;;  %5763 = vmatprep.subr.bf16.mxu1 %v7925_v28  ;;  %v8012_v27 = vld [vmem:[%s11403_s1 + $0xba4] ss:$16 sps:$4 sm:$0xff]   ;;  %v8015_v28 = vld [vmem:[%s11403_s1 + $0xbac] ss:$16 sps:$4 sm:$0xff]  }
 0x13b   :  { %5231 = vmatpush1.bf16.msra.mxu0 %v7920_v29  ;;  %5764 = vmatpush1.bf16.msra.mxu1 %v7923_v14  ;;  %v8010_v29 = vld [vmem:[%s11403_s1 + $0xba0] ss:$16 sps:$4 sm:$0xff]   ;;  %v8013_v14 = vld [vmem:[%s11403_s1 + $0xba8] ss:$16 sps:$4 sm:$0xff]  }
 0x13c   :  { %5232 = vmatprep.subr.bf16.mxu0 %v7928_v30  ;;  %5765 = vmatprep.subr.bf16.mxu1 %v7931_v31  ;;  %v8018_v30 = vld [vmem:[%s11403_s1 + $0xbc4] ss:$16 sps:$4 sm:$0xff]   ;;  %v8021_v31 = vld [vmem:[%s11403_s1 + $0xbcc] ss:$16 sps:$4 sm:$0xff]  }
 0x13f   :  { %5233 = vmatpush1.bf16.msra.mxu0 %v7926_v25  ;;  %5766 = vmatpush1.bf16.msra.mxu1 %v7929_v32  ;;  %v8686_v25 = vld [vmem:[%s11402_s0 + $0x8] sm:$0xff] }
 0x140   :  { %5243 = vmatprep.subr.bf16.mxu0 %v7934_v33  ;;  %5776 = vmatprep.subr.bf16.mxu1 %v7937_v26  ;;  %v901_v32 = vcombine.high %v8686_v25, %v8686_v25  ;;  %v8016_v33 = vld [vmem:[%s11403_s1 + $0xbc0] ss:$16 sps:$4 sm:$0xff]   ;;  %v8019_v26 = vld [vmem:[%s11403_s1 + $0xbc8] ss:$16 sps:$4 sm:$0xff]  }
 0x141   :  { %v8100_v25 = vld [vmem:[%s11403_s1 + $0xd80] ss:$16 sps:$4 sm:$0xff]  }
 0x142   :  { %5235 = vmatmul.mubr.bf16.vlgmr.msra.gmra.mrb[0].mxu0 %v9767_v35  ;;  %5768 = vmatmul.mubr.bf16.vlgmr.msra.gmra.mrb[0].mxu1 %v9767_v35 }
 0x143   :  { %5244 = vmatpush1.bf16.msra.mxu0 %v7932_v36  ;;  %5777 = vmatpush1.bf16.msra.mxu1 %v7935_v37  ;;  %v8024_v36 = vld [vmem:[%s11403_s1 + $0xbe4] ss:$16 sps:$4 sm:$0xff]   ;;  %v8027_v37 = vld [vmem:[%s11403_s1 + $0xbec] ss:$16 sps:$4 sm:$0xff]  }
 0x144   :  { %5245 = vmatprep.subr.bf16.mxu0 %v7940_v38  ;;  %5778 = vmatprep.subr.bf16.mxu1 %v7943_v21  ;;  %v9957_v38 = vrot.slane %v901_v32, %v8880_v49  ;;  %v8022_v21 = vld [vmem:[%s11403_s1 + $0xbe0] ss:$16 sps:$4 sm:$0xff]   ;;  %v8103_v32 = vld [vmem:[%s11403_s1 + $0xd88] ss:$16 sps:$4 sm:$0xff]  }
 0x145   :  { %5275 = vmatprep.mubr.bf16.mxu0 %v948_v39  ;;  %5808 = vmatprep.mubr.bf16.mxu1 %v948_v39  ;;  %v8025_v39 = vld [vmem:[%s11403_s1 + $0xbe8] ss:$16 sps:$4 sm:$0xff]  }
 0x147   :  { %5246 = vmatpush1.bf16.msra.mxu0 %v7938_v40  ;;  %5779 = vmatpush1.bf16.msra.mxu1 %v7941_v41  ;;  %v8030_v40 = vld [vmem:[%s11403_s1 + $0xc04] ss:$16 sps:$4 sm:$0xff]   ;;  %v8033_v41 = vld [vmem:[%s11403_s1 + $0xc0c] ss:$16 sps:$4 sm:$0xff]  }
 0x148   :  { %5247 = vmatprep.subr.bf16.mxu0 %v7946_v34  ;;  %5780 = vmatprep.subr.bf16.mxu1 %v7949_v43  ;;  %v917_v34 = vcombine.high %v9957_v38, %v9957_v38  ;;  %v946_v43 = vcombine.high %v9767_v35, %v9767_v35  ;;  %v8039_v35 = vld [vmem:[%s11403_s1 + $0xc2c] ss:$16 sps:$4 sm:$0xff]  }
 0x14b   :  { %5248 = vmatpush1.bf16.msra.mxu0 %v7944_v44  ;;  %5781 = vmatpush1.bf16.msra.mxu1 %v7947_v45  ;;  %v8028_v44 = vld [vmem:[%s11403_s1 + $0xc00] ss:$16 sps:$4 sm:$0xff]   ;;  %v8031_v45 = vld [vmem:[%s11403_s1 + $0xc08] ss:$16 sps:$4 sm:$0xff]  }
 0x14c   :  { %5249 = vmatprep.subr.bf16.mxu0 %v7952_v46  ;;  %5782 = vmatprep.subr.bf16.mxu1 %v7955_v47  ;;  %v8036_v46 = vld [vmem:[%s11403_s1 + $0xc24] ss:$16 sps:$4 sm:$0xff]   ;;  %v9988_v47 = vrot.slane %v917_v34, %v8880_v49 }
 0x14d   :  { %v8120_v34 = vld [vmem:[%s11403_s1 + $0xde4] ss:$16 sps:$4 sm:$0xff]  }
 0x14f   :  { %5250 = vmatpush1.bf16.msra.mxu0 %v7950_v48  ;;  %5783 = vmatpush1.bf16.msra.mxu1 %v7953_v50  ;;  %v8034_v48 = vld [vmem:[%s11403_s1 + $0xc20] ss:$16 sps:$4 sm:$0xff]   ;;  %v8037_v50 = vld [vmem:[%s11403_s1 + $0xc28] ss:$16 sps:$4 sm:$0xff]  }
 0x150   :  { %5251 = vmatprep.subr.bf16.mxu0 %v7958_v51  ;;  %5784 = vmatprep.subr.bf16.mxu1 %v7961_v53  ;;  %v8042_v51 = vld [vmem:[%s11403_s1 + $0xc44] ss:$16 sps:$4 sm:$0xff]   ;;  %v8045_v53 = vld [vmem:[%s11403_s1 + $0xc4c] ss:$16 sps:$4 sm:$0xff]  }
 0x153   :  { %5252 = vmatpush1.bf16.msra.mxu0 %v7956_v54  ;;  %5785 = vmatpush1.bf16.msra.mxu1 %v7959_v55  ;;  %v8040_v54 = vld [vmem:[%s11403_s1 + $0xc40] ss:$16 sps:$4 sm:$0xff]   ;;  %v8043_v55 = vld [vmem:[%s11403_s1 + $0xc48] ss:$16 sps:$4 sm:$0xff]  }
 0x154   :  { %5253 = vmatprep.subr.bf16.mxu0 %v7964_v56  ;;  %5786 = vmatprep.subr.bf16.mxu1 %v7967_v57  ;;  %v8048_v56 = vld [vmem:[%s11403_s1 + $0xc64] ss:$16 sps:$4 sm:$0xff]   ;;  %v8051_v57 = vld [vmem:[%s11403_s1 + $0xc6c] ss:$16 sps:$4 sm:$0xff]  }
 0x157   :  { %5254 = vmatpush1.bf16.msra.mxu0 %v7962_v58  ;;  %5787 = vmatpush1.bf16.msra.mxu1 %v7965_v59  ;;  %v8046_v58 = vld [vmem:[%s11403_s1 + $0xc60] ss:$16 sps:$4 sm:$0xff]   ;;  %v8049_v59 = vld [vmem:[%s11403_s1 + $0xc68] ss:$16 sps:$4 sm:$0xff]  }
 0x158   :  { %5255 = vmatprep.subr.bf16.mxu0 %v7970_v60  ;;  %5788 = vmatprep.subr.bf16.mxu1 %v7973_v61  ;;  %v8054_v60 = vld [vmem:[%s11403_s1 + $0xc84] ss:$16 sps:$4 sm:$0xff]   ;;  %v8057_v61 = vld [vmem:[%s11403_s1 + $0xc8c] ss:$16 sps:$4 sm:$0xff]  }
 0x15b   :  { %5256 = vmatpush1.bf16.msra.mxu0 %v7968_v62  ;;  %5789 = vmatpush1.bf16.msra.mxu1 %v7971_v63  ;;  %v8052_v62 = vld [vmem:[%s11403_s1 + $0xc80] ss:$16 sps:$4 sm:$0xff]   ;;  %v8055_v63 = vld [vmem:[%s11403_s1 + $0xc88] ss:$16 sps:$4 sm:$0xff]  }
 0x15c   :  { %5257 = vmatprep.subr.bf16.mxu0 %v7976_v0  ;;  %5790 = vmatprep.subr.bf16.mxu1 %v7979_v1  ;;  %v8060_v0 = vld [vmem:[%s11403_s1 + $0xca4] ss:$16 sps:$4 sm:$0xff]   ;;  %v8063_v1 = vld [vmem:[%s11403_s1 + $0xcac] ss:$16 sps:$4 sm:$0xff]  }
 0x15f   :  { %5258 = vmatpush1.bf16.msra.mxu0 %v7974_v2  ;;  %5791 = vmatpush1.bf16.msra.mxu1 %v7977_v3  ;;  %v8058_v2 = vld [vmem:[%s11403_s1 + $0xca0] ss:$16 sps:$4 sm:$0xff]   ;;  %v8061_v3 = vld [vmem:[%s11403_s1 + $0xca8] ss:$16 sps:$4 sm:$0xff]  }
 0x160   :  { %5259 = vmatprep.subr.bf16.mxu0 %v7982_v4  ;;  %5792 = vmatprep.subr.bf16.mxu1 %v7985_v5  ;;  %v8066_v4 = vld [vmem:[%s11403_s1 + $0xcc4] ss:$16 sps:$4 sm:$0xff]   ;;  %v8069_v5 = vld [vmem:[%s11403_s1 + $0xccc] ss:$16 sps:$4 sm:$0xff]  }
 0x163   :  { %5260 = vmatpush1.bf16.msra.mxu0 %v7980_v6  ;;  %5793 = vmatpush1.bf16.msra.mxu1 %v7983_v7  ;;  %v8064_v6 = vld [vmem:[%s11403_s1 + $0xcc0] ss:$16 sps:$4 sm:$0xff]   ;;  %v8067_v7 = vld [vmem:[%s11403_s1 + $0xcc8] ss:$16 sps:$4 sm:$0xff]  }
 0x164   :  { %5261 = vmatprep.subr.bf16.mxu0 %v7988_v8  ;;  %5794 = vmatprep.subr.bf16.mxu1 %v7991_v9  ;;  %v8072_v8 = vld [vmem:[%s11403_s1 + $0xce4] ss:$16 sps:$4 sm:$0xff]   ;;  %v8075_v9 = vld [vmem:[%s11403_s1 + $0xcec] ss:$16 sps:$4 sm:$0xff]  }
 0x167   :  { %5262 = vmatpush1.bf16.msra.mxu0 %v7986_v10  ;;  %5795 = vmatpush1.bf16.msra.mxu1 %v7989_v11  ;;  %v8070_v10 = vld [vmem:[%s11403_s1 + $0xce0] ss:$16 sps:$4 sm:$0xff]   ;;  %v8073_v11 = vld [vmem:[%s11403_s1 + $0xce8] ss:$16 sps:$4 sm:$0xff]  }
 0x168   :  { %5263 = vmatprep.subr.bf16.mxu0 %v7994_v12  ;;  %5796 = vmatprep.subr.bf16.mxu1 %v7997_v52  ;;  %v8078_v12 = vld [vmem:[%s11403_s1 + $0xd04] ss:$16 sps:$4 sm:$0xff]   ;;  %v8081_v52 = vld [vmem:[%s11403_s1 + $0xd0c] ss:$16 sps:$4 sm:$0xff]  }
 0x16b   :  { %5264 = vmatpush1.bf16.msra.mxu0 %v7992_v15  ;;  %5797 = vmatpush1.bf16.msra.mxu1 %v7995_v16  ;;  %v8076_v15 = vld [vmem:[%s11403_s1 + $0xd00] ss:$16 sps:$4 sm:$0xff]   ;;  %v8079_v16 = vld [vmem:[%s11403_s1 + $0xd08] ss:$16 sps:$4 sm:$0xff]  }
 0x16c   :  { %5265 = vmatprep.subr.bf16.mxu0 %v8000_v17  ;;  %5798 = vmatprep.subr.bf16.mxu1 %v8003_v18  ;;  %v8084_v17 = vld [vmem:[%s11403_s1 + $0xd24] ss:$16 sps:$4 sm:$0xff]   ;;  %v8087_v18 = vld [vmem:[%s11403_s1 + $0xd2c] ss:$16 sps:$4 sm:$0xff]  }
 0x16f   :  { %5266 = vmatpush1.bf16.msra.mxu0 %v7998_v19  ;;  %5799 = vmatpush1.bf16.msra.mxu1 %v8001_v20  ;;  %v8082_v19 = vld [vmem:[%s11403_s1 + $0xd20] ss:$16 sps:$4 sm:$0xff]   ;;  %v8085_v20 = vld [vmem:[%s11403_s1 + $0xd28] ss:$16 sps:$4 sm:$0xff]  }
 0x170   :  { %5267 = vmatprep.subr.bf16.mxu0 %v8006_v22  ;;  %5800 = vmatprep.subr.bf16.mxu1 %v8009_v23  ;;  %v8090_v22 = vld [vmem:[%s11403_s1 + $0xd44] ss:$16 sps:$4 sm:$0xff]   ;;  %v8093_v23 = vld [vmem:[%s11403_s1 + $0xd4c] ss:$16 sps:$4 sm:$0xff]  }
 0x173   :  { %5268 = vmatpush1.bf16.msra.mxu0 %v8004_v24  ;;  %5801 = vmatpush1.bf16.msra.mxu1 %v8007_v13  ;;  %v8088_v24 = vld [vmem:[%s11403_s1 + $0xd40] ss:$16 sps:$4 sm:$0xff]   ;;  %v8091_v13 = vld [vmem:[%s11403_s1 + $0xd48] ss:$16 sps:$4 sm:$0xff]  }
 0x174   :  { %5269 = vmatprep.subr.bf16.mxu0 %v8012_v27  ;;  %5802 = vmatprep.subr.bf16.mxu1 %v8015_v28  ;;  %v8096_v27 = vld [vmem:[%s11403_s1 + $0xd64] ss:$16 sps:$4 sm:$0xff]   ;;  %v8099_v28 = vld [vmem:[%s11403_s1 + $0xd6c] ss:$16 sps:$4 sm:$0xff]  }
 0x177   :  { %5270 = vmatpush1.bf16.msra.mxu0 %v8010_v29  ;;  %5803 = vmatpush1.bf16.msra.mxu1 %v8013_v14  ;;  %v8094_v29 = vld [vmem:[%s11403_s1 + $0xd60] ss:$16 sps:$4 sm:$0xff]   ;;  %v8097_v14 = vld [vmem:[%s11403_s1 + $0xd68] ss:$16 sps:$4 sm:$0xff]  }
 0x178   :  { %5271 = vmatprep.subr.bf16.mxu0 %v8018_v30  ;;  %5804 = vmatprep.subr.bf16.mxu1 %v8021_v31  ;;  %v8102_v30 = vld [vmem:[%s11403_s1 + $0xd84] ss:$16 sps:$4 sm:$0xff]   ;;  %v8105_v31 = vld [vmem:[%s11403_s1 + $0xd8c] ss:$16 sps:$4 sm:$0xff]  }
 0x17b   :  { %5272 = vmatpush1.bf16.msra.mxu0 %v8016_v33  ;;  %5805 = vmatpush1.bf16.msra.mxu1 %v8019_v26  ;;  %v8108_v33 = vld [vmem:[%s11403_s1 + $0xda4] ss:$16 sps:$4 sm:$0xff]   ;;  %v8111_v26 = vld [vmem:[%s11403_s1 + $0xdac] ss:$16 sps:$4 sm:$0xff]  }
 0x17c   :  { %5273 = vmatprep.subr.bf16.mxu0 %v8024_v36  ;;  %5806 = vmatprep.subr.bf16.mxu1 %v8027_v37  ;;  %v8106_v36 = vld [vmem:[%s11403_s1 + $0xda0] ss:$16 sps:$4 sm:$0xff]   ;;  %v8109_v37 = vld [vmem:[%s11403_s1 + $0xda8] ss:$16 sps:$4 sm:$0xff]  }
 0x17f   :  { %5274 = vmatpush1.bf16.msra.mxu0 %v8022_v21  ;;  %5807 = vmatpush1.bf16.msra.mxu1 %v8025_v39  ;;  %v8114_v21 = vld [vmem:[%s11403_s1 + $0xdc4] ss:$16 sps:$4 sm:$0xff]   ;;  %v8117_v39 = vld [vmem:[%s11403_s1 + $0xdcc] ss:$16 sps:$4 sm:$0xff]  }
 0x180   :  { %5284 = vmatprep.subr.bf16.mxu0 %v8030_v40  ;;  %5817 = vmatprep.subr.bf16.mxu1 %v8033_v41  ;;  %v8112_v40 = vld [vmem:[%s11403_s1 + $0xdc0] ss:$16 sps:$4 sm:$0xff]   ;;  %v8115_v41 = vld [vmem:[%s11403_s1 + $0xdc8] ss:$16 sps:$4 sm:$0xff]  }
 0x182   :  { %5276 = vmatmul.mubr.bf16.vlgmr.msra.gmra.mrb[0].mxu0 %v946_v43  ;;  %5809 = vmatmul.mubr.bf16.vlgmr.msra.gmra.mrb[0].mxu1 %v946_v43  ;;  %v8123_v43 = vld [vmem:[%s11403_s1 + $0xdec] ss:$16 sps:$4 sm:$0xff]  }
 0x183   :  { %5285 = vmatpush1.bf16.msra.mxu0 %v8028_v44  ;;  %5818 = vmatpush1.bf16.msra.mxu1 %v8031_v45  ;;  %v8118_v44 = vld [vmem:[%s11403_s1 + $0xde0] ss:$16 sps:$4 sm:$0xff]   ;;  %v8121_v45 = vld [vmem:[%s11403_s1 + $0xde8] ss:$16 sps:$4 sm:$0xff]  }
 0x184   :  { %5286 = vmatprep.subr.bf16.mxu0 %v8036_v46  ;;  %5819 = vmatprep.subr.bf16.mxu1 %v8039_v35  ;;  %v8127_v46 = vld [vmem:[%s11403_s1 + $0xe04] ss:$16 sps:$4 sm:$0xff]   ;;  %v8130_v35 = vld [vmem:[%s11403_s1 + $0xe0c] ss:$16 sps:$4 sm:$0xff]  }
 0x185   :  { %5316 = vmatprep.mubr.bf16.mxu0 %v9988_v47  ;;  %5849 = vmatprep.mubr.bf16.mxu1 %v9988_v47 }
 0x187   :  { %5287 = vmatpush1.bf16.msra.mxu0 %v8034_v48  ;;  %5820 = vmatpush1.bf16.msra.mxu1 %v8037_v50  ;;  %v10174_v48 = vrot.slane %v9957_v38, %v8880_v49  ;;  %v8125_v50 = vld [vmem:[%s11403_s1 + $0xe00] ss:$16 sps:$4 sm:$0xff]   ;;  %v8136_v38 = vld [vmem:[%s11403_s1 + $0xe2c] ss:$16 sps:$4 sm:$0xff]  }
 0x188   :  { %5288 = vmatprep.subr.bf16.mxu0 %v8042_v51  ;;  %5821 = vmatprep.subr.bf16.mxu1 %v8045_v53  ;;  %v8128_v51 = vld [vmem:[%s11403_s1 + $0xe08] ss:$16 sps:$4 sm:$0xff]   ;;  %v8133_v53 = vld [vmem:[%s11403_s1 + $0xe24] ss:$16 sps:$4 sm:$0xff]  }
 0x18b   :  { %5289 = vmatpush1.bf16.msra.mxu0 %v8040_v54  ;;  %5822 = vmatpush1.bf16.msra.mxu1 %v8043_v55  ;;  %v949_v54 = vcombine.high %v9988_v47, %v9988_v47  ;;  %v8131_v55 = vld [vmem:[%s11403_s1 + $0xe20] ss:$16 sps:$4 sm:$0xff]   ;;  %v8139_v47 = vld [vmem:[%s11403_s1 + $0xe44] ss:$16 sps:$4 sm:$0xff]  }
 0x18c   :  { %5290 = vmatprep.subr.bf16.mxu0 %v8048_v56  ;;  %5823 = vmatprep.subr.bf16.mxu1 %v8051_v57  ;;  %v8134_v56 = vld [vmem:[%s11403_s1 + $0xe28] ss:$16 sps:$4 sm:$0xff]   ;;  %v8142_v57 = vld [vmem:[%s11403_s1 + $0xe4c] ss:$16 sps:$4 sm:$0xff]  }
 0x18f   :  { %5291 = vmatpush1.bf16.msra.mxu0 %v8046_v58  ;;  %5824 = vmatpush1.bf16.msra.mxu1 %v8049_v59  ;;  %v8137_v58 = vld [vmem:[%s11403_s1 + $0xe40] ss:$16 sps:$4 sm:$0xff]   ;;  %v8140_v59 = vld [vmem:[%s11403_s1 + $0xe48] ss:$16 sps:$4 sm:$0xff]  }
 0x190   :  { %5292 = vmatprep.subr.bf16.mxu0 %v8054_v60  ;;  %5825 = vmatprep.subr.bf16.mxu1 %v8057_v61  ;;  %v8145_v60 = vld [vmem:[%s11403_s1 + $0xe64] ss:$16 sps:$4 sm:$0xff]   ;;  %v8148_v61 = vld [vmem:[%s11403_s1 + $0xe6c] ss:$16 sps:$4 sm:$0xff]  }
 0x193   :  { %5293 = vmatpush1.bf16.msra.mxu0 %v8052_v62  ;;  %5826 = vmatpush1.bf16.msra.mxu1 %v8055_v63  ;;  %v8143_v62 = vld [vmem:[%s11403_s1 + $0xe60] ss:$16 sps:$4 sm:$0xff]   ;;  %v8146_v63 = vld [vmem:[%s11403_s1 + $0xe68] ss:$16 sps:$4 sm:$0xff]  }
 0x194   :  { %5294 = vmatprep.subr.bf16.mxu0 %v8060_v0  ;;  %5827 = vmatprep.subr.bf16.mxu1 %v8063_v1  ;;  %v8151_v0 = vld [vmem:[%s11403_s1 + $0xe84] ss:$16 sps:$4 sm:$0xff]   ;;  %v8154_v1 = vld [vmem:[%s11403_s1 + $0xe8c] ss:$16 sps:$4 sm:$0xff]  }
 0x197   :  { %5295 = vmatpush1.bf16.msra.mxu0 %v8058_v2  ;;  %5828 = vmatpush1.bf16.msra.mxu1 %v8061_v3  ;;  %v8149_v2 = vld [vmem:[%s11403_s1 + $0xe80] ss:$16 sps:$4 sm:$0xff]   ;;  %v8152_v3 = vld [vmem:[%s11403_s1 + $0xe88] ss:$16 sps:$4 sm:$0xff]  }
 0x198   :  { %5296 = vmatprep.subr.bf16.mxu0 %v8066_v4  ;;  %5829 = vmatprep.subr.bf16.mxu1 %v8069_v5  ;;  %v8157_v4 = vld [vmem:[%s11403_s1 + $0xea4] ss:$16 sps:$4 sm:$0xff]   ;;  %v8160_v5 = vld [vmem:[%s11403_s1 + $0xeac] ss:$16 sps:$4 sm:$0xff]  }
 0x19b   :  { %5297 = vmatpush1.bf16.msra.mxu0 %v8064_v6  ;;  %5830 = vmatpush1.bf16.msra.mxu1 %v8067_v7  ;;  %v8155_v6 = vld [vmem:[%s11403_s1 + $0xea0] ss:$16 sps:$4 sm:$0xff]   ;;  %v8158_v7 = vld [vmem:[%s11403_s1 + $0xea8] ss:$16 sps:$4 sm:$0xff]  }
 0x19c   :  { %5298 = vmatprep.subr.bf16.mxu0 %v8072_v8  ;;  %5831 = vmatprep.subr.bf16.mxu1 %v8075_v9  ;;  %v8163_v8 = vld [vmem:[%s11403_s1 + $0xec4] ss:$16 sps:$4 sm:$0xff]   ;;  %v8166_v9 = vld [vmem:[%s11403_s1 + $0xecc] ss:$16 sps:$4 sm:$0xff]  }
 0x19f   :  { %5299 = vmatpush1.bf16.msra.mxu0 %v8070_v10  ;;  %5832 = vmatpush1.bf16.msra.mxu1 %v8073_v11  ;;  %v8161_v10 = vld [vmem:[%s11403_s1 + $0xec0] ss:$16 sps:$4 sm:$0xff]   ;;  %v8164_v11 = vld [vmem:[%s11403_s1 + $0xec8] ss:$16 sps:$4 sm:$0xff]  }
 0x1a0   :  { %5300 = vmatprep.subr.bf16.mxu0 %v8078_v12  ;;  %5833 = vmatprep.subr.bf16.mxu1 %v8081_v52  ;;  %v8169_v12 = vld [vmem:[%s11403_s1 + $0xee4] ss:$16 sps:$4 sm:$0xff]   ;;  %v8172_v52 = vld [vmem:[%s11403_s1 + $0xeec] ss:$16 sps:$4 sm:$0xff]  }
 0x1a3   :  { %5301 = vmatpush1.bf16.msra.mxu0 %v8076_v15  ;;  %5834 = vmatpush1.bf16.msra.mxu1 %v8079_v16  ;;  %v8167_v15 = vld [vmem:[%s11403_s1 + $0xee0] ss:$16 sps:$4 sm:$0xff]   ;;  %v8170_v16 = vld [vmem:[%s11403_s1 + $0xee8] ss:$16 sps:$4 sm:$0xff]  }
 0x1a4   :  { %5302 = vmatprep.subr.bf16.mxu0 %v8084_v17  ;;  %5835 = vmatprep.subr.bf16.mxu1 %v8087_v18  ;;  %v8175_v17 = vld [vmem:[%s11403_s1 + $0xf04] ss:$16 sps:$4 sm:$0xff]   ;;  %v8178_v18 = vld [vmem:[%s11403_s1 + $0xf0c] ss:$16 sps:$4 sm:$0xff]  }
 0x1a7   :  { %5303 = vmatpush1.bf16.msra.mxu0 %v8082_v19  ;;  %5836 = vmatpush1.bf16.msra.mxu1 %v8085_v20  ;;  %v8173_v19 = vld [vmem:[%s11403_s1 + $0xf00] ss:$16 sps:$4 sm:$0xff]   ;;  %v8176_v20 = vld [vmem:[%s11403_s1 + $0xf08] ss:$16 sps:$4 sm:$0xff]  }
 0x1a8   :  { %5304 = vmatprep.subr.bf16.mxu0 %v8090_v22  ;;  %5837 = vmatprep.subr.bf16.mxu1 %v8093_v23  ;;  %v8181_v22 = vld [vmem:[%s11403_s1 + $0xf24] ss:$16 sps:$4 sm:$0xff]   ;;  %v8184_v23 = vld [vmem:[%s11403_s1 + $0xf2c] ss:$16 sps:$4 sm:$0xff]  }
 0x1ab   :  { %5305 = vmatpush1.bf16.msra.mxu0 %v8088_v24  ;;  %5838 = vmatpush1.bf16.msra.mxu1 %v8091_v13  ;;  %v8179_v24 = vld [vmem:[%s11403_s1 + $0xf20] ss:$16 sps:$4 sm:$0xff]   ;;  %v8182_v13 = vld [vmem:[%s11403_s1 + $0xf28] ss:$16 sps:$4 sm:$0xff]  }
 0x1ac   :  { %5306 = vmatprep.subr.bf16.mxu0 %v8096_v27  ;;  %5839 = vmatprep.subr.bf16.mxu1 %v8099_v28  ;;  %v8187_v27 = vld [vmem:[%s11403_s1 + $0xf44] ss:$16 sps:$4 sm:$0xff]   ;;  %v8190_v28 = vld [vmem:[%s11403_s1 + $0xf4c] ss:$16 sps:$4 sm:$0xff]  }
 0x1af   :  { %5307 = vmatpush1.bf16.msra.mxu0 %v8094_v29  ;;  %5840 = vmatpush1.bf16.msra.mxu1 %v8097_v14  ;;  %v8185_v29 = vld [vmem:[%s11403_s1 + $0xf40] ss:$16 sps:$4 sm:$0xff]   ;;  %v8188_v14 = vld [vmem:[%s11403_s1 + $0xf48] ss:$16 sps:$4 sm:$0xff]  }
 0x1b0   :  { %5308 = vmatprep.subr.bf16.mxu0 %v8102_v30  ;;  %5841 = vmatprep.subr.bf16.mxu1 %v8105_v31  ;;  %v8193_v30 = vld [vmem:[%s11403_s1 + $0xf64] ss:$16 sps:$4 sm:$0xff]   ;;  %v8196_v31 = vld [vmem:[%s11403_s1 + $0xf6c] ss:$16 sps:$4 sm:$0xff]  }
 0x1b3   :  { %5309 = vmatpush1.bf16.msra.mxu0 %v8100_v25  ;;  %5842 = vmatpush1.bf16.msra.mxu1 %v8103_v32  ;;  %v8191_v25 = vld [vmem:[%s11403_s1 + $0xf60] ss:$16 sps:$4 sm:$0xff]   ;;  %v8194_v32 = vld [vmem:[%s11403_s1 + $0xf68] ss:$16 sps:$4 sm:$0xff]  }
 0x1b4   :  { %5310 = vmatprep.subr.bf16.mxu0 %v8108_v33  ;;  %5843 = vmatprep.subr.bf16.mxu1 %v8111_v26  ;;  %v8199_v33 = vld [vmem:[%s11403_s1 + $0xf84] ss:$16 sps:$4 sm:$0xff]   ;;  %v8202_v26 = vld [vmem:[%s11403_s1 + $0xf8c] ss:$16 sps:$4 sm:$0xff]  }
 0x1b7   :  { %5311 = vmatpush1.bf16.msra.mxu0 %v8106_v36  ;;  %5844 = vmatpush1.bf16.msra.mxu1 %v8109_v37  ;;  %v8197_v36 = vld [vmem:[%s11403_s1 + $0xf80] ss:$16 sps:$4 sm:$0xff]   ;;  %v8200_v37 = vld [vmem:[%s11403_s1 + $0xf88] ss:$16 sps:$4 sm:$0xff]  }
 0x1b8   :  { %5312 = vmatprep.subr.bf16.mxu0 %v8114_v21  ;;  %5845 = vmatprep.subr.bf16.mxu1 %v8117_v39  ;;  %v8205_v21 = vld [vmem:[%s11403_s1 + $0xfa4] ss:$16 sps:$4 sm:$0xff]   ;;  %v8208_v39 = vld [vmem:[%s11403_s1 + $0xfac] ss:$16 sps:$4 sm:$0xff]  }
 0x1bb   :  { %5313 = vmatpush1.bf16.msra.mxu0 %v8112_v40  ;;  %5846 = vmatpush1.bf16.msra.mxu1 %v8115_v41 }
 0x1bc   :  { %5314 = vmatprep.subr.bf16.mxu0 %v8120_v34  ;;  %5847 = vmatprep.subr.bf16.mxu1 %v8123_v43 }
 0x1bf   :  { %5315 = vmatpush1.bf16.msra.mxu0 %v8118_v44  ;;  %5848 = vmatpush1.bf16.msra.mxu1 %v8121_v45 }
 0x1c0   :  { %5325 = vmatprep.subr.bf16.mxu0 %v8127_v46  ;;  %5858 = vmatprep.subr.bf16.mxu1 %v8130_v35 }
 0x1c2   :  { %5317 = vmatmul.mubr.bf16.vlgmr.msra.gmra.mrb[0].mxu0 %v10174_v48  ;;  %5850 = vmatmul.mubr.bf16.vlgmr.msra.gmra.mrb[0].mxu1 %v10174_v48 }
 0x1c3   :  { %5326 = vmatpush1.bf16.msra.mxu0 %v8125_v50  ;;  %5859 = vmatpush1.bf16.msra.mxu1 %v8128_v51 }
 0x1c4   :  { %5327 = vmatprep.subr.bf16.mxu0 %v8133_v53  ;;  %5860 = vmatprep.subr.bf16.mxu1 %v8136_v38 }
 0x1c5   :  { %5357 = vmatprep.mubr.bf16.mxu0 %v949_v54  ;;  %5890 = vmatprep.mubr.bf16.mxu1 %v949_v54 }
 0x1c7   :  { %5328 = vmatpush1.bf16.msra.mxu0 %v8131_v55  ;;  %5861 = vmatpush1.bf16.msra.mxu1 %v8134_v56 }
 0x1c8   :  { %5329 = vmatprep.subr.bf16.mxu0 %v8139_v47  ;;  %5862 = vmatprep.subr.bf16.mxu1 %v8142_v57 }
 0x1cb   :  { %5330 = vmatpush1.bf16.msra.mxu0 %v8137_v58  ;;  %5863 = vmatpush1.bf16.msra.mxu1 %v8140_v59 }
 0x1cc   :  { %5331 = vmatprep.subr.bf16.mxu0 %v8145_v60  ;;  %5864 = vmatprep.subr.bf16.mxu1 %v8148_v61 }
 0x1cf   :  { %5332 = vmatpush1.bf16.msra.mxu0 %v8143_v62  ;;  %5865 = vmatpush1.bf16.msra.mxu1 %v8146_v63 }
 0x1d0   :  { %5333 = vmatprep.subr.bf16.mxu0 %v8151_v0  ;;  %5866 = vmatprep.subr.bf16.mxu1 %v8154_v1 }
 0x1d3   :  { %5334 = vmatpush1.bf16.msra.mxu0 %v8149_v2  ;;  %5867 = vmatpush1.bf16.msra.mxu1 %v8152_v3 }
 0x1d4   :  { %5335 = vmatprep.subr.bf16.mxu0 %v8157_v4  ;;  %5868 = vmatprep.subr.bf16.mxu1 %v8160_v5 }
 0x1d7   :  { %5336 = vmatpush1.bf16.msra.mxu0 %v8155_v6  ;;  %5869 = vmatpush1.bf16.msra.mxu1 %v8158_v7 }
 0x1d8   :  { %5337 = vmatprep.subr.bf16.mxu0 %v8163_v8  ;;  %5870 = vmatprep.subr.bf16.mxu1 %v8166_v9 }
 0x1db   :  { %5338 = vmatpush1.bf16.msra.mxu0 %v8161_v10  ;;  %5871 = vmatpush1.bf16.msra.mxu1 %v8164_v11 }
 0x1dc   :  { %5339 = vmatprep.subr.bf16.mxu0 %v8169_v12  ;;  %5872 = vmatprep.subr.bf16.mxu1 %v8172_v52 }
 0x1df   :  { %5340 = vmatpush1.bf16.msra.mxu0 %v8167_v15  ;;  %5873 = vmatpush1.bf16.msra.mxu1 %v8170_v16 }
 0x1e0   :  { %5341 = vmatprep.subr.bf16.mxu0 %v8175_v17  ;;  %5874 = vmatprep.subr.bf16.mxu1 %v8178_v18 }
 0x1e3   :  { %5342 = vmatpush1.bf16.msra.mxu0 %v8173_v19  ;;  %5875 = vmatpush1.bf16.msra.mxu1 %v8176_v20 }
 0x1e4   :  { %5343 = vmatprep.subr.bf16.mxu0 %v8181_v22  ;;  %5876 = vmatprep.subr.bf16.mxu1 %v8184_v23 }
 0x1e7   :  { %5344 = vmatpush1.bf16.msra.mxu0 %v8179_v24  ;;  %5877 = vmatpush1.bf16.msra.mxu1 %v8182_v13 }
 0x1e8   :  { %5345 = vmatprep.subr.bf16.mxu0 %v8187_v27  ;;  %5878 = vmatprep.subr.bf16.mxu1 %v8190_v28 }
 0x1eb   :  { %5346 = vmatpush1.bf16.msra.mxu0 %v8185_v29  ;;  %5879 = vmatpush1.bf16.msra.mxu1 %v8188_v14 }
 0x1ec   :  { %5347 = vmatprep.subr.bf16.mxu0 %v8193_v30  ;;  %5880 = vmatprep.subr.bf16.mxu1 %v8196_v31 }
 0x1ef   :  { %5348 = vmatpush1.bf16.msra.mxu0 %v8191_v25  ;;  %5881 = vmatpush1.bf16.msra.mxu1 %v8194_v32 }
 0x1f0   :  { %5349 = vmatprep.subr.bf16.mxu0 %v8199_v33  ;;  %5882 = vmatprep.subr.bf16.mxu1 %v8202_v26 }
 0x1f1   :  { %10 = vsyncpa [#allocation3], 0  ;;  %v8203_v40 = vld [vmem:[%s11403_s1 + $0xfa0] ss:$16 sps:$4 sm:$0xff]   ;;  %v8206_v41 = vld [vmem:[%s11403_s1 + $0xfa8] ss:$16 sps:$4 sm:$0xff]   ;;  %v947_v47 = vcombine.high %v10174_v48, %v10174_v48 }
 0x1f2   :  { %v8211_v34 = vld [vmem:[%s11403_s1 + $0xfc4] ss:$16 sps:$4 sm:$0xff]   ;;  %v8214_v43 = vld [vmem:[%s11403_s1 + $0xfcc] ss:$16 sps:$4 sm:$0xff]   ;;  %v8209_v45 = vld [vmem:[%s11403_s1 + $0xfc0] ss:$16 sps:$4 sm:$0xff]  }
 0x1f3   :  { %5350 = vmatpush1.bf16.msra.mxu0 %v8197_v36  ;;  %5883 = vmatpush1.bf16.msra.mxu1 %v8200_v37  ;;  %v10351_v44 = vld [vmem:[%s11402_s0 + $0x10] sm:$0xff]  ;;  %v8212_v46 = vld [vmem:[%s11403_s1 + $0xfc8] ss:$16 sps:$4 sm:$0xff]   ;;  %v8220_v50 = vld [vmem:[%s11403_s1 + $0xfec] ss:$16 sps:$4 sm:$0xff]   ;;  %s8714_s13 = smov [#allocation2]  }
 0x1f4   :  { %5351 = vmatprep.subr.bf16.mxu0 %v8205_v21  ;;  %5884 = vmatprep.subr.bf16.mxu1 %v8208_v39  ;;  %v8217_v35 = vld [vmem:[%s11403_s1 + $0xfe4] ss:$16 sps:$4 sm:$0xff]   ;;  %v10367_v51 = vrot.slane %v10351_v44, %v8880_v49  ;;  %v8215_v53 = vld [vmem:[%s11403_s1 + $0xfe0] ss:$16 sps:$4 sm:$0xff]   ;;  %v8218_v38 = vld [vmem:[%s11403_s1 + $0xfe8] ss:$16 sps:$4 sm:$0xff]  }
 0x1f5   :  { %v8223_v54 = vld [vmem:[%s11403_s1 + $0x1004] ss:$16 sps:$4 sm:$0xff]   ;;  %v8226_v55 = vld [vmem:[%s11403_s1 + $0x100c] ss:$16 sps:$4 sm:$0xff]   ;;  %v8221_v57 = vld [vmem:[%s11403_s1 + $0x1000] ss:$16 sps:$4 sm:$0xff]  }
 0x1f6   :  { %v965_v56 = vcombine.high %v10367_v51, %v10367_v51  ;;  %v8224_v58 = vld [vmem:[%s11403_s1 + $0x1008] ss:$16 sps:$4 sm:$0xff]   ;;  %v8229_v59 = vld [vmem:[%s11403_s1 + $0x1024] ss:$16 sps:$4 sm:$0xff]   ;;  %v8232_v48 = vld [vmem:[%s11403_s1 + $0x102c] ss:$16 sps:$4 sm:$0xff]  }
 0x1f7   :  { %5352 = vmatpush1.bf16.msra.mxu0 %v8203_v40  ;;  %5885 = vmatpush1.bf16.msra.mxu1 %v8206_v41  ;;  %v8227_v61 = vld [vmem:[%s11403_s1 + $0x1020] ss:$16 sps:$4 sm:$0xff]   ;;  %v8230_v62 = vld [vmem:[%s11403_s1 + $0x1028] ss:$16 sps:$4 sm:$0xff]   ;;  %v8235_v63 = vld [vmem:[%s11403_s1 + $0x1044] ss:$16 sps:$4 sm:$0xff]  }
 0x1f8   :  { %5353 = vmatprep.subr.bf16.mxu0 %v8211_v34  ;;  %5886 = vmatprep.subr.bf16.mxu1 %v8214_v43  ;;  %v10398_v60 = vrot.slane %v965_v56, %v8880_v49  ;;  %v8238_v0 = vld [vmem:[%s11403_s1 + $0x104c] ss:$16 sps:$4 sm:$0xff]   ;;  %v8233_v1 = vld [vmem:[%s11403_s1 + $0x1040] ss:$16 sps:$4 sm:$0xff]   ;;  %v8236_v2 = vld [vmem:[%s11403_s1 + $0x1048] ss:$16 sps:$4 sm:$0xff]  }
 0x1f9   :  { %v8241_v3 = vld [vmem:[%s11403_s1 + $0x1064] ss:$16 sps:$4 sm:$0xff]   ;;  %v8244_v4 = vld [vmem:[%s11403_s1 + $0x106c] ss:$16 sps:$4 sm:$0xff]   ;;  %v8239_v5 = vld [vmem:[%s11403_s1 + $0x1060] ss:$16 sps:$4 sm:$0xff]  }
 0x1fa   :  { %v8242_v6 = vld [vmem:[%s11403_s1 + $0x1068] ss:$16 sps:$4 sm:$0xff]   ;;  %v8247_v7 = vld [vmem:[%s11403_s1 + $0x1084] ss:$16 sps:$4 sm:$0xff]   ;;  %v8250_v8 = vld [vmem:[%s11403_s1 + $0x108c] ss:$16 sps:$4 sm:$0xff]  }
 0x1fb   :  { %5354 = vmatpush1.bf16.msra.mxu0 %v8209_v45  ;;  %5887 = vmatpush1.bf16.msra.mxu1 %v8212_v46  ;;  %v8245_v9 = vld [vmem:[%s11403_s1 + $0x1080] ss:$16 sps:$4 sm:$0xff]   ;;  %v8248_v10 = vld [vmem:[%s11403_s1 + $0x1088] ss:$16 sps:$4 sm:$0xff]   ;;  %v8253_v11 = vld [vmem:[%s11403_s1 + $0x10a4] ss:$16 sps:$4 sm:$0xff]  }
 0x1fc   :  { %5355 = vmatprep.subr.bf16.mxu0 %v8217_v35  ;;  %5888 = vmatprep.subr.bf16.mxu1 %v8220_v50  ;;  %v8256_v12 = vld [vmem:[%s11403_s1 + $0x10ac] ss:$16 sps:$4 sm:$0xff]   ;;  %v8251_v52 = vld [vmem:[%s11403_s1 + $0x10a0] ss:$16 sps:$4 sm:$0xff]   ;;  %v8254_v15 = vld [vmem:[%s11403_s1 + $0x10a8] ss:$16 sps:$4 sm:$0xff]  }
 0x1fd   :  { %v8259_v16 = vld [vmem:[%s11403_s1 + $0x10c4] ss:$16 sps:$4 sm:$0xff]   ;;  %v8262_v17 = vld [vmem:[%s11403_s1 + $0x10cc] ss:$16 sps:$4 sm:$0xff]   ;;  %v8257_v18 = vld [vmem:[%s11403_s1 + $0x10c0] ss:$16 sps:$4 sm:$0xff]  }
 0x1fe   :  { %v8260_v19 = vld [vmem:[%s11403_s1 + $0x10c8] ss:$16 sps:$4 sm:$0xff]   ;;  %v8265_v20 = vld [vmem:[%s11403_s1 + $0x10e4] ss:$16 sps:$4 sm:$0xff]   ;;  %v8268_v22 = vld [vmem:[%s11403_s1 + $0x10ec] ss:$16 sps:$4 sm:$0xff]  }
 0x1ff   :  { %5356 = vmatpush1.bf16.msra.mxu0 %v8215_v53  ;;  %5889 = vmatpush1.bf16.msra.mxu1 %v8218_v38  ;;  %v8263_v23 = vld [vmem:[%s11403_s1 + $0x10e0] ss:$16 sps:$4 sm:$0xff]   ;;  %v8266_v24 = vld [vmem:[%s11403_s1 + $0x10e8] ss:$16 sps:$4 sm:$0xff]   ;;  %v8271_v13 = vld [vmem:[%s11403_s1 + $0x1104] ss:$16 sps:$4 sm:$0xff]  }
 0x200   :  { %5366 = vmatprep.subr.bf16.mxu0 %v8223_v54  ;;  %5899 = vmatprep.subr.bf16.mxu1 %v8226_v55  ;;  %v8274_v27 = vld [vmem:[%s11403_s1 + $0x110c] ss:$16 sps:$4 sm:$0xff]   ;;  %v8269_v28 = vld [vmem:[%s11403_s1 + $0x1100] ss:$16 sps:$4 sm:$0xff]   ;;  %v8272_v29 = vld [vmem:[%s11403_s1 + $0x1108] ss:$16 sps:$4 sm:$0xff]  }
 0x201   :  { %v8277_v14 = vld [vmem:[%s11403_s1 + $0x1124] ss:$16 sps:$4 sm:$0xff]   ;;  %v8280_v30 = vld [vmem:[%s11403_s1 + $0x112c] ss:$16 sps:$4 sm:$0xff]   ;;  %v8275_v31 = vld [vmem:[%s11403_s1 + $0x1120] ss:$16 sps:$4 sm:$0xff]  }
 0x202   :  { %5358 = vmatmul.mubr.bf16.vlgmr.msra.gmra.mrb[0].mxu0 %v947_v47  ;;  %5891 = vmatmul.mubr.bf16.vlgmr.msra.gmra.mrb[0].mxu1 %v947_v47  ;;  %v8278_v25 = vld [vmem:[%s11403_s1 + $0x1128] ss:$16 sps:$4 sm:$0xff]   ;;  %v8283_v32 = vld [vmem:[%s11403_s1 + $0x1144] ss:$16 sps:$4 sm:$0xff]   ;;  %v8286_v33 = vld [vmem:[%s11403_s1 + $0x114c] ss:$16 sps:$4 sm:$0xff]  }
 0x203   :  { %5367 = vmatpush1.bf16.msra.mxu0 %v8221_v57  ;;  %5900 = vmatpush1.bf16.msra.mxu1 %v8224_v58  ;;  %v8281_v26 = vld [vmem:[%s11403_s1 + $0x1140] ss:$16 sps:$4 sm:$0xff]   ;;  %v8284_v36 = vld [vmem:[%s11403_s1 + $0x1148] ss:$16 sps:$4 sm:$0xff]   ;;  %v8289_v37 = vld [vmem:[%s11403_s1 + $0x1164] ss:$16 sps:$4 sm:$0xff]  }
 0x204   :  { %5368 = vmatprep.subr.bf16.mxu0 %v8229_v59  ;;  %5901 = vmatprep.subr.bf16.mxu1 %v8232_v48  ;;  %v8292_v21 = vld [vmem:[%s11403_s1 + $0x116c] ss:$16 sps:$4 sm:$0xff]   ;;  %v8287_v39 = vld [vmem:[%s11403_s1 + $0x1160] ss:$16 sps:$4 sm:$0xff]   ;;  %v8290_v40 = vld [vmem:[%s11403_s1 + $0x1168] ss:$16 sps:$4 sm:$0xff]  }
 0x205   :  { %5398 = vmatprep.mubr.bf16.mxu0 %v10398_v60  ;;  %5931 = vmatprep.mubr.bf16.mxu1 %v10398_v60  ;;  %v8295_v41 = vld [vmem:[%s11403_s1 + $0x1184] ss:$16 sps:$4 sm:$0xff]   ;;  %v8298_v34 = vld [vmem:[%s11403_s1 + $0x118c] ss:$16 sps:$4 sm:$0xff]   ;;  %v8293_v43 = vld [vmem:[%s11403_s1 + $0x1180] ss:$16 sps:$4 sm:$0xff]  }
 0x206   :  { %v8296_v45 = vld [vmem:[%s11403_s1 + $0x1188] ss:$16 sps:$4 sm:$0xff]   ;;  %v8301_v46 = vld [vmem:[%s11403_s1 + $0x11a4] ss:$16 sps:$4 sm:$0xff]   ;;  %v8304_v35 = vld [vmem:[%s11403_s1 + $0x11ac] ss:$16 sps:$4 sm:$0xff]  }
 0x207   :  { %5369 = vmatpush1.bf16.msra.mxu0 %v8227_v61  ;;  %5902 = vmatpush1.bf16.msra.mxu1 %v8230_v62  ;;  %v8299_v50 = vld [vmem:[%s11403_s1 + $0x11a0] ss:$16 sps:$4 sm:$0xff]   ;;  %v8302_v53 = vld [vmem:[%s11403_s1 + $0x11a8] ss:$16 sps:$4 sm:$0xff]   ;;  %v8307_v38 = vld [vmem:[%s11403_s1 + $0x11c4] ss:$16 sps:$4 sm:$0xff]   ;;  %v10584_v62 = vrot.slane %v10367_v51, %v8880_v49 }
 0x208   :  { %5370 = vmatprep.subr.bf16.mxu0 %v8235_v63  ;;  %5903 = vmatprep.subr.bf16.mxu1 %v8238_v0  ;;  %v8310_v54 = vld [vmem:[%s11403_s1 + $0x11cc] ss:$16 sps:$4 sm:$0xff]   ;;  %v8305_v55 = vld [vmem:[%s11403_s1 + $0x11c0] ss:$16 sps:$4 sm:$0xff]   ;;  %v8308_v56 = vld [vmem:[%s11403_s1 + $0x11c8] ss:$16 sps:$4 sm:$0xff]  }
 0x209   :  { %v8313_v47 = vld [vmem:[%s11403_s1 + $0x11e4] ss:$16 sps:$4 sm:$0xff]   ;;  %v8316_v57 = vld [vmem:[%s11403_s1 + $0x11ec] ss:$16 sps:$4 sm:$0xff]   ;;  %v8311_v58 = vld [vmem:[%s11403_s1 + $0x11e0] ss:$16 sps:$4 sm:$0xff]  }
 0x20a   :  { %v8314_v59 = vld [vmem:[%s11403_s1 + $0x11e8] ss:$16 sps:$4 sm:$0xff]   ;;  %v8319_v48 = vld [vmem:[%s11403_s1 + $0x1204] ss:$16 sps:$4 sm:$0xff]   ;;  %v8322_v61 = vld [vmem:[%s11403_s1 + $0x120c] ss:$16 sps:$4 sm:$0xff]  }
 0x20b   :  { %5371 = vmatpush1.bf16.msra.mxu0 %v8233_v1  ;;  %5904 = vmatpush1.bf16.msra.mxu1 %v8236_v2  ;;  %v8317_v63 = vld [vmem:[%s11403_s1 + $0x1200] ss:$16 sps:$4 sm:$0xff]   ;;  %v8320_v0 = vld [vmem:[%s11403_s1 + $0x1208] ss:$16 sps:$4 sm:$0xff]   ;;  %v8325_v1 = vld [vmem:[%s11403_s1 + $0x1224] ss:$16 sps:$4 sm:$0xff]   ;;  %v997_v2 = vcombine.high %v10398_v60, %v10398_v60 }
 0x20c   :  { %5372 = vmatprep.subr.bf16.mxu0 %v8241_v3  ;;  %5905 = vmatprep.subr.bf16.mxu1 %v8244_v4  ;;  %v8328_v51 = vld [vmem:[%s11403_s1 + $0x122c] ss:$16 sps:$4 sm:$0xff]   ;;  %v8323_v3 = vld [vmem:[%s11403_s1 + $0x1220] ss:$16 sps:$4 sm:$0xff]   ;;  %v8326_v4 = vld [vmem:[%s11403_s1 + $0x1228] ss:$16 sps:$4 sm:$0xff]  }
 0x20d   :  { %v8331_v60 = vld [vmem:[%s11403_s1 + $0x1244] ss:$16 sps:$4 sm:$0xff]   ;;  %s6462_s14 = sshll.u32 %s8714_s13, 4  ;;  %s6463_s14 = int_to_ptr.vmem [resolvable:$true] %s6462_s14 }
 0x20e   :  { %s8688_s15 = scalar_lea.vmem %s6463_s14, 32  ;;  %p8693_p1 = scmp.lt.s32.totalorder %s6463_s14, %s6463_s14 }
 0x20f   :  { %5373 = vmatpush1.bf16.msra.mxu0 %v8239_v5  ;;  %5906 = vmatpush1.bf16.msra.mxu1 %v8242_v6  ;;  %v8334_v5 = vld [vmem:[%s11403_s1 + $0x124c] ss:$16 sps:$4 sm:$0xff]   ;;  %v8329_v6 = vld [vmem:[%s11403_s1 + $0x1240] ss:$16 sps:$4 sm:$0xff]   ;;  %p8689_p0 = scmp.ne.s32.totalorder %s6463_s14, %s8688_s15  ;;  %p8694_p2 = scmp.lt.s32.totalorder %s8688_s15, %s8688_s15 }
 0x210   :  { %5374 = vmatprep.subr.bf16.mxu0 %v8247_v7  ;;  %5907 = vmatprep.subr.bf16.mxu1 %v8250_v8  ;;  %v8332_v7 = vld [vmem:[%s11403_s1 + $0x1248] ss:$16 sps:$4 sm:$0xff]   ;;  %v8337_v8 = vld [vmem:[%s11403_s1 + $0x1264] ss:$16 sps:$4 sm:$0xff]  }
 0x211   :  { %p8695_p3 = por %p8694_p2, %p8693_p1 }
 0x213   :  { %5375 = vmatpush1.bf16.msra.mxu0 %v8245_v9  ;;  %5908 = vmatpush1.bf16.msra.mxu1 %v8248_v10  ;;  %v8340_v9 = vld [vmem:[%s11403_s1 + $0x126c] ss:$16 sps:$4 sm:$0xff]   ;;  %v8335_v10 = vld [vmem:[%s11403_s1 + $0x1260] ss:$16 sps:$4 sm:$0xff]   ;;  %p8696_p4 = pnand %p8695_p3, %p8689_p0 }
 0x214   :  { %5376 = vmatprep.subr.bf16.mxu0 %v8253_v11  ;;  %5909 = vmatprep.subr.bf16.mxu1 %v8256_v12  ;;  %v8338_v11 = vld [vmem:[%s11403_s1 + $0x1268] ss:$16 sps:$4 sm:$0xff]   ;;  %v8343_v12 = vld [vmem:[%s11403_s1 + $0x1284] ss:$16 sps:$4 sm:$0xff]  }
 0x217   :  { %5377 = vmatpush1.bf16.msra.mxu0 %v8251_v52  ;;  %5910 = vmatpush1.bf16.msra.mxu1 %v8254_v15  ;;  %v8346_v52 = vld [vmem:[%s11403_s1 + $0x128c] ss:$16 sps:$4 sm:$0xff]   ;;  %v8341_v15 = vld [vmem:[%s11403_s1 + $0x1280] ss:$16 sps:$4 sm:$0xff]  }
 0x218   :  { %5378 = vmatprep.subr.bf16.mxu0 %v8259_v16  ;;  %5911 = vmatprep.subr.bf16.mxu1 %v8262_v17  ;;  %v8344_v16 = vld [vmem:[%s11403_s1 + $0x1288] ss:$16 sps:$4 sm:$0xff]   ;;  %v8349_v17 = vld [vmem:[%s11403_s1 + $0x12a4] ss:$16 sps:$4 sm:$0xff]  }
 0x21b   :  { %5379 = vmatpush1.bf16.msra.mxu0 %v8257_v18  ;;  %5912 = vmatpush1.bf16.msra.mxu1 %v8260_v19  ;;  %v8352_v18 = vld [vmem:[%s11403_s1 + $0x12ac] ss:$16 sps:$4 sm:$0xff]   ;;  %v8347_v19 = vld [vmem:[%s11403_s1 + $0x12a0] ss:$16 sps:$4 sm:$0xff]  }
 0x21c   :  { %5380 = vmatprep.subr.bf16.mxu0 %v8265_v20  ;;  %5913 = vmatprep.subr.bf16.mxu1 %v8268_v22  ;;  %v8350_v20 = vld [vmem:[%s11403_s1 + $0x12a8] ss:$16 sps:$4 sm:$0xff]   ;;  %v8355_v22 = vld [vmem:[%s11403_s1 + $0x12c4] ss:$16 sps:$4 sm:$0xff]  }
 0x21f   :  { %5381 = vmatpush1.bf16.msra.mxu0 %v8263_v23  ;;  %5914 = vmatpush1.bf16.msra.mxu1 %v8266_v24  ;;  %v8358_v23 = vld [vmem:[%s11403_s1 + $0x12cc] ss:$16 sps:$4 sm:$0xff]   ;;  %v8353_v24 = vld [vmem:[%s11403_s1 + $0x12c0] ss:$16 sps:$4 sm:$0xff]  }
 0x220   :  { %5382 = vmatprep.subr.bf16.mxu0 %v8271_v13  ;;  %5915 = vmatprep.subr.bf16.mxu1 %v8274_v27  ;;  %v8356_v13 = vld [vmem:[%s11403_s1 + $0x12c8] ss:$16 sps:$4 sm:$0xff]   ;;  %v8361_v27 = vld [vmem:[%s11403_s1 + $0x12e4] ss:$16 sps:$4 sm:$0xff]  }
 0x223   :  { %5383 = vmatpush1.bf16.msra.mxu0 %v8269_v28  ;;  %5916 = vmatpush1.bf16.msra.mxu1 %v8272_v29  ;;  %v8364_v28 = vld [vmem:[%s11403_s1 + $0x12ec] ss:$16 sps:$4 sm:$0xff]   ;;  %v8359_v29 = vld [vmem:[%s11403_s1 + $0x12e0] ss:$16 sps:$4 sm:$0xff]  }
 0x224   :  { %5384 = vmatprep.subr.bf16.mxu0 %v8277_v14  ;;  %5917 = vmatprep.subr.bf16.mxu1 %v8280_v30  ;;  %v8362_v14 = vld [vmem:[%s11403_s1 + $0x12e8] ss:$16 sps:$4 sm:$0xff]   ;;  %v8367_v30 = vld [vmem:[%s11403_s1 + $0x1304] ss:$16 sps:$4 sm:$0xff]  }
 0x227   :  { %5385 = vmatpush1.bf16.msra.mxu0 %v8275_v31  ;;  %5918 = vmatpush1.bf16.msra.mxu1 %v8278_v25  ;;  %v8370_v31 = vld [vmem:[%s11403_s1 + $0x130c] ss:$16 sps:$4 sm:$0xff]   ;;  %v8365_v25 = vld [vmem:[%s11403_s1 + $0x1300] ss:$16 sps:$4 sm:$0xff]  }
 0x228   :  { %5386 = vmatprep.subr.bf16.mxu0 %v8283_v32  ;;  %5919 = vmatprep.subr.bf16.mxu1 %v8286_v33  ;;  %v8368_v32 = vld [vmem:[%s11403_s1 + $0x1308] ss:$16 sps:$4 sm:$0xff]   ;;  %v8373_v33 = vld [vmem:[%s11403_s1 + $0x1324] ss:$16 sps:$4 sm:$0xff]  }
 0x22b   :  { %5387 = vmatpush1.bf16.msra.mxu0 %v8281_v26  ;;  %5920 = vmatpush1.bf16.msra.mxu1 %v8284_v36  ;;  %v8376_v26 = vld [vmem:[%s11403_s1 + $0x132c] ss:$16 sps:$4 sm:$0xff]   ;;  %v8371_v36 = vld [vmem:[%s11403_s1 + $0x1320] ss:$16 sps:$4 sm:$0xff]  }
 0x22c   :  { %5388 = vmatprep.subr.bf16.mxu0 %v8289_v37  ;;  %5921 = vmatprep.subr.bf16.mxu1 %v8292_v21  ;;  %v8374_v37 = vld [vmem:[%s11403_s1 + $0x1328] ss:$16 sps:$4 sm:$0xff]   ;;  %v8379_v21 = vld [vmem:[%s11403_s1 + $0x1344] ss:$16 sps:$4 sm:$0xff]  }
 0x22f   :  { %5389 = vmatpush1.bf16.msra.mxu0 %v8287_v39  ;;  %5922 = vmatpush1.bf16.msra.mxu1 %v8290_v40  ;;  %v8382_v39 = vld [vmem:[%s11403_s1 + $0x134c] ss:$16 sps:$4 sm:$0xff]   ;;  %v8377_v40 = vld [vmem:[%s11403_s1 + $0x1340] ss:$16 sps:$4 sm:$0xff]  }
 0x230   :  { %5390 = vmatprep.subr.bf16.mxu0 %v8295_v41  ;;  %5923 = vmatprep.subr.bf16.mxu1 %v8298_v34  ;;  %v8380_v41 = vld [vmem:[%s11403_s1 + $0x1348] ss:$16 sps:$4 sm:$0xff]   ;;  %v8385_v34 = vld [vmem:[%s11403_s1 + $0x1364] ss:$16 sps:$4 sm:$0xff]  }
 0x233   :  { %5391 = vmatpush1.bf16.msra.mxu0 %v8293_v43  ;;  %5924 = vmatpush1.bf16.msra.mxu1 %v8296_v45  ;;  %v8388_v43 = vld [vmem:[%s11403_s1 + $0x136c] ss:$16 sps:$4 sm:$0xff]   ;;  %v8383_v45 = vld [vmem:[%s11403_s1 + $0x1360] ss:$16 sps:$4 sm:$0xff]  }
 0x234   :  { %5392 = vmatprep.subr.bf16.mxu0 %v8301_v46  ;;  %5925 = vmatprep.subr.bf16.mxu1 %v8304_v35  ;;  %v8386_v46 = vld [vmem:[%s11403_s1 + $0x1368] ss:$16 sps:$4 sm:$0xff]   ;;  %v8391_v35 = vld [vmem:[%s11403_s1 + $0x1384] ss:$16 sps:$4 sm:$0xff]  }
 0x237   :  { %5393 = vmatpush1.bf16.msra.mxu0 %v8299_v50  ;;  %5926 = vmatpush1.bf16.msra.mxu1 %v8302_v53  ;;  %v8394_v50 = vld [vmem:[%s11403_s1 + $0x138c] ss:$16 sps:$4 sm:$0xff]   ;;  %v8389_v53 = vld [vmem:[%s11403_s1 + $0x1380] ss:$16 sps:$4 sm:$0xff]  }
 0x238   :  { %5394 = vmatprep.subr.bf16.mxu0 %v8307_v38  ;;  %5927 = vmatprep.subr.bf16.mxu1 %v8310_v54  ;;  %v8392_v38 = vld [vmem:[%s11403_s1 + $0x1388] ss:$16 sps:$4 sm:$0xff]   ;;  %v8397_v54 = vld [vmem:[%s11403_s1 + $0x13a4] ss:$16 sps:$4 sm:$0xff]  }
 0x23b   :  { %5395 = vmatpush1.bf16.msra.mxu0 %v8305_v55  ;;  %5928 = vmatpush1.bf16.msra.mxu1 %v8308_v56  ;;  %v8400_v55 = vld [vmem:[%s11403_s1 + $0x13ac] ss:$16 sps:$4 sm:$0xff]   ;;  %v8395_v56 = vld [vmem:[%s11403_s1 + $0x13a0] ss:$16 sps:$4 sm:$0xff]  }
 0x23c   :  { %5396 = vmatprep.subr.bf16.mxu0 %v8313_v47  ;;  %5929 = vmatprep.subr.bf16.mxu1 %v8316_v57  ;;  %v8398_v47 = vld [vmem:[%s11403_s1 + $0x13a8] ss:$16 sps:$4 sm:$0xff]   ;;  %v8403_v57 = vld [vmem:[%s11403_s1 + $0x13c4] ss:$16 sps:$4 sm:$0xff]  }
 0x23f   :  { %5397 = vmatpush1.bf16.msra.mxu0 %v8311_v58  ;;  %5930 = vmatpush1.bf16.msra.mxu1 %v8314_v59  ;;  %v8406_v58 = vld [vmem:[%s11403_s1 + $0x13cc] ss:$16 sps:$4 sm:$0xff]   ;;  %v950_v59 = vcombine.high %v10351_v44, %v10351_v44 }
 0x240   :  { %5407 = vmatprep.subr.bf16.mxu0 %v8319_v48  ;;  %5940 = vmatprep.subr.bf16.mxu1 %v8322_v61  ;;  %v8401_v48 = vld [vmem:[%s11403_s1 + $0x13c0] ss:$16 sps:$4 sm:$0xff]   ;;  %v8404_v61 = vld [vmem:[%s11403_s1 + $0x13c8] ss:$16 sps:$4 sm:$0xff]   ;;  %v8412_v44 = vld [vmem:[%s11403_s1 + $0x13ec] ss:$16 sps:$4 sm:$0xff]  }
 0x242   :  { %5399 = vmatmul.mubr.bf16.vlgmr.msra.gmra.mrb[0].mxu0 %v10584_v62  ;;  %5932 = vmatmul.mubr.bf16.vlgmr.msra.gmra.mrb[0].mxu1 %v10584_v62 }
 0x243   :  { %5408 = vmatpush1.bf16.msra.mxu0 %v8317_v63  ;;  %5941 = vmatpush1.bf16.msra.mxu1 %v8320_v0  ;;  %v8409_v63 = vld [vmem:[%s11403_s1 + $0x13e4] ss:$16 sps:$4 sm:$0xff]   ;;  %v10773_v0 = vrot.slane %v950_v59, %v8880_v49  ;;  %v8488_v59 = vld [vmem:[%s11403_s1 + $0x1588] ss:$16 sps:$4 sm:$0xff]  }
 0x244   :  { %5409 = vmatprep.subr.bf16.mxu0 %v8325_v1  ;;  %5942 = vmatprep.subr.bf16.mxu1 %v8328_v51  ;;  %v8407_v1 = vld [vmem:[%s11403_s1 + $0x13e0] ss:$16 sps:$4 sm:$0xff]   ;;  %v8410_v51 = vld [vmem:[%s11403_s1 + $0x13e8] ss:$16 sps:$4 sm:$0xff]  }
 0x245   :  { %5439 = vmatprep.mubr.bf16.mxu0 %v997_v2  ;;  %5972 = vmatprep.mubr.bf16.mxu1 %v997_v2  ;;  %v8415_v2 = vld [vmem:[%s11403_s1 + $0x1404] ss:$16 sps:$4 sm:$0xff]  }
 0x247   :  { %5410 = vmatpush1.bf16.msra.mxu0 %v8323_v3  ;;  %5943 = vmatpush1.bf16.msra.mxu1 %v8326_v4  ;;  %v8418_v3 = vld [vmem:[%s11403_s1 + $0x140c] ss:$16 sps:$4 sm:$0xff]   ;;  %v966_v4 = vcombine.high %v10773_v0, %v10773_v0 }
 0x248   :  { %5411 = vmatprep.subr.bf16.mxu0 %v8331_v60  ;;  %5944 = vmatprep.subr.bf16.mxu1 %v8334_v5  ;;  %v995_v60 = vcombine.high %v10584_v62, %v10584_v62  ;;  %v8413_v5 = vld [vmem:[%s11403_s1 + $0x1400] ss:$16 sps:$4 sm:$0xff]   ;;  %v8424_v62 = vld [vmem:[%s11403_s1 + $0x142c] ss:$16 sps:$4 sm:$0xff]  }
 0x24b   :  { %5412 = vmatpush1.bf16.msra.mxu0 %v8329_v6  ;;  %5945 = vmatpush1.bf16.msra.mxu1 %v8332_v7  ;;  %v8416_v6 = vld [vmem:[%s11403_s1 + $0x1408] ss:$16 sps:$4 sm:$0xff]   ;;  %v8421_v7 = vld [vmem:[%s11403_s1 + $0x1424] ss:$16 sps:$4 sm:$0xff]  }
 0x24c   :  { %5413 = vmatprep.subr.bf16.mxu0 %v8337_v8  ;;  %5946 = vmatprep.subr.bf16.mxu1 %v8340_v9  ;;  %v10804_v8 = vrot.slane %v966_v4, %v8880_v49  ;;  %v8419_v9 = vld [vmem:[%s11403_s1 + $0x1420] ss:$16 sps:$4 sm:$0xff]   ;;  %v8505_v4 = vld [vmem:[%s11403_s1 + $0x15e4] ss:$16 sps:$4 sm:$0xff]  }
 0x24f   :  { %5414 = vmatpush1.bf16.msra.mxu0 %v8335_v10  ;;  %5947 = vmatpush1.bf16.msra.mxu1 %v8338_v11  ;;  %v8422_v10 = vld [vmem:[%s11403_s1 + $0x1428] ss:$16 sps:$4 sm:$0xff]   ;;  %v8427_v11 = vld [vmem:[%s11403_s1 + $0x1444] ss:$16 sps:$4 sm:$0xff]  }
 0x250   :  { %5415 = vmatprep.subr.bf16.mxu0 %v8343_v12  ;;  %5948 = vmatprep.subr.bf16.mxu1 %v8346_v52  ;;  %v8430_v12 = vld [vmem:[%s11403_s1 + $0x144c] ss:$16 sps:$4 sm:$0xff]   ;;  %v8425_v52 = vld [vmem:[%s11403_s1 + $0x1440] ss:$16 sps:$4 sm:$0xff]  }
 0x253   :  { %5416 = vmatpush1.bf16.msra.mxu0 %v8341_v15  ;;  %5949 = vmatpush1.bf16.msra.mxu1 %v8344_v16  ;;  %v8428_v15 = vld [vmem:[%s11403_s1 + $0x1448] ss:$16 sps:$4 sm:$0xff]   ;;  %v8433_v16 = vld [vmem:[%s11403_s1 + $0x1464] ss:$16 sps:$4 sm:$0xff]  }
 0x254   :  { %5417 = vmatprep.subr.bf16.mxu0 %v8349_v17  ;;  %5950 = vmatprep.subr.bf16.mxu1 %v8352_v18  ;;  %v8436_v17 = vld [vmem:[%s11403_s1 + $0x146c] ss:$16 sps:$4 sm:$0xff]   ;;  %v8431_v18 = vld [vmem:[%s11403_s1 + $0x1460] ss:$16 sps:$4 sm:$0xff]  }
 0x257   :  { %5418 = vmatpush1.bf16.msra.mxu0 %v8347_v19  ;;  %5951 = vmatpush1.bf16.msra.mxu1 %v8350_v20  ;;  %v8434_v19 = vld [vmem:[%s11403_s1 + $0x1468] ss:$16 sps:$4 sm:$0xff]   ;;  %v8439_v20 = vld [vmem:[%s11403_s1 + $0x1484] ss:$16 sps:$4 sm:$0xff]  }
 0x258   :  { %5419 = vmatprep.subr.bf16.mxu0 %v8355_v22  ;;  %5952 = vmatprep.subr.bf16.mxu1 %v8358_v23  ;;  %v8442_v22 = vld [vmem:[%s11403_s1 + $0x148c] ss:$16 sps:$4 sm:$0xff]   ;;  %v8437_v23 = vld [vmem:[%s11403_s1 + $0x1480] ss:$16 sps:$4 sm:$0xff]  }
 0x25b   :  { %5420 = vmatpush1.bf16.msra.mxu0 %v8353_v24  ;;  %5953 = vmatpush1.bf16.msra.mxu1 %v8356_v13  ;;  %v8440_v24 = vld [vmem:[%s11403_s1 + $0x1488] ss:$16 sps:$4 sm:$0xff]   ;;  %v8445_v13 = vld [vmem:[%s11403_s1 + $0x14a4] ss:$16 sps:$4 sm:$0xff]  }
 0x25c   :  { %5421 = vmatprep.subr.bf16.mxu0 %v8361_v27  ;;  %5954 = vmatprep.subr.bf16.mxu1 %v8364_v28  ;;  %v8448_v27 = vld [vmem:[%s11403_s1 + $0x14ac] ss:$16 sps:$4 sm:$0xff]   ;;  %v8443_v28 = vld [vmem:[%s11403_s1 + $0x14a0] ss:$16 sps:$4 sm:$0xff]  }
 0x25f   :  { %5422 = vmatpush1.bf16.msra.mxu0 %v8359_v29  ;;  %5955 = vmatpush1.bf16.msra.mxu1 %v8362_v14  ;;  %v8446_v29 = vld [vmem:[%s11403_s1 + $0x14a8] ss:$16 sps:$4 sm:$0xff]   ;;  %v8451_v14 = vld [vmem:[%s11403_s1 + $0x14c4] ss:$16 sps:$4 sm:$0xff]  }
 0x260   :  { %5423 = vmatprep.subr.bf16.mxu0 %v8367_v30  ;;  %5956 = vmatprep.subr.bf16.mxu1 %v8370_v31  ;;  %v8454_v30 = vld [vmem:[%s11403_s1 + $0x14cc] ss:$16 sps:$4 sm:$0xff]   ;;  %v8449_v31 = vld [vmem:[%s11403_s1 + $0x14c0] ss:$16 sps:$4 sm:$0xff]  }
 0x263   :  { %5424 = vmatpush1.bf16.msra.mxu0 %v8365_v25  ;;  %5957 = vmatpush1.bf16.msra.mxu1 %v8368_v32  ;;  %v8452_v25 = vld [vmem:[%s11403_s1 + $0x14c8] ss:$16 sps:$4 sm:$0xff]   ;;  %v8457_v32 = vld [vmem:[%s11403_s1 + $0x14e4] ss:$16 sps:$4 sm:$0xff]  }
 0x264   :  { %5425 = vmatprep.subr.bf16.mxu0 %v8373_v33  ;;  %5958 = vmatprep.subr.bf16.mxu1 %v8376_v26  ;;  %v8460_v33 = vld [vmem:[%s11403_s1 + $0x14ec] ss:$16 sps:$4 sm:$0xff]   ;;  %v8455_v26 = vld [vmem:[%s11403_s1 + $0x14e0] ss:$16 sps:$4 sm:$0xff]  }
 0x267   :  { %5426 = vmatpush1.bf16.msra.mxu0 %v8371_v36  ;;  %5959 = vmatpush1.bf16.msra.mxu1 %v8374_v37  ;;  %v8458_v36 = vld [vmem:[%s11403_s1 + $0x14e8] ss:$16 sps:$4 sm:$0xff]   ;;  %v8463_v37 = vld [vmem:[%s11403_s1 + $0x1504] ss:$16 sps:$4 sm:$0xff]  }
 0x268   :  { %5427 = vmatprep.subr.bf16.mxu0 %v8379_v21  ;;  %5960 = vmatprep.subr.bf16.mxu1 %v8382_v39  ;;  %v8466_v21 = vld [vmem:[%s11403_s1 + $0x150c] ss:$16 sps:$4 sm:$0xff]   ;;  %v8461_v39 = vld [vmem:[%s11403_s1 + $0x1500] ss:$16 sps:$4 sm:$0xff]  }
 0x26b   :  { %5428 = vmatpush1.bf16.msra.mxu0 %v8377_v40  ;;  %5961 = vmatpush1.bf16.msra.mxu1 %v8380_v41  ;;  %v8464_v40 = vld [vmem:[%s11403_s1 + $0x1508] ss:$16 sps:$4 sm:$0xff]   ;;  %v8469_v41 = vld [vmem:[%s11403_s1 + $0x1524] ss:$16 sps:$4 sm:$0xff]  }
 0x26c   :  { %5429 = vmatprep.subr.bf16.mxu0 %v8385_v34  ;;  %5962 = vmatprep.subr.bf16.mxu1 %v8388_v43  ;;  %v8472_v34 = vld [vmem:[%s11403_s1 + $0x152c] ss:$16 sps:$4 sm:$0xff]   ;;  %v8467_v43 = vld [vmem:[%s11403_s1 + $0x1520] ss:$16 sps:$4 sm:$0xff]  }
 0x26f   :  { %5430 = vmatpush1.bf16.msra.mxu0 %v8383_v45  ;;  %5963 = vmatpush1.bf16.msra.mxu1 %v8386_v46  ;;  %v8470_v45 = vld [vmem:[%s11403_s1 + $0x1528] ss:$16 sps:$4 sm:$0xff]   ;;  %v8475_v46 = vld [vmem:[%s11403_s1 + $0x1544] ss:$16 sps:$4 sm:$0xff]  }
 0x270   :  { %5431 = vmatprep.subr.bf16.mxu0 %v8391_v35  ;;  %5964 = vmatprep.subr.bf16.mxu1 %v8394_v50  ;;  %v8478_v35 = vld [vmem:[%s11403_s1 + $0x154c] ss:$16 sps:$4 sm:$0xff]   ;;  %v8473_v50 = vld [vmem:[%s11403_s1 + $0x1540] ss:$16 sps:$4 sm:$0xff]  }
 0x273   :  { %5432 = vmatpush1.bf16.msra.mxu0 %v8389_v53  ;;  %5965 = vmatpush1.bf16.msra.mxu1 %v8392_v38  ;;  %v8476_v53 = vld [vmem:[%s11403_s1 + $0x1548] ss:$16 sps:$4 sm:$0xff]   ;;  %v8481_v38 = vld [vmem:[%s11403_s1 + $0x1564] ss:$16 sps:$4 sm:$0xff]  }
 0x274   :  { %5433 = vmatprep.subr.bf16.mxu0 %v8397_v54  ;;  %5966 = vmatprep.subr.bf16.mxu1 %v8400_v55  ;;  %v8484_v54 = vld [vmem:[%s11403_s1 + $0x156c] ss:$16 sps:$4 sm:$0xff]   ;;  %v8479_v55 = vld [vmem:[%s11403_s1 + $0x1560] ss:$16 sps:$4 sm:$0xff]  }
 0x277   :  { %5434 = vmatpush1.bf16.msra.mxu0 %v8395_v56  ;;  %5967 = vmatpush1.bf16.msra.mxu1 %v8398_v47  ;;  %v8482_v56 = vld [vmem:[%s11403_s1 + $0x1568] ss:$16 sps:$4 sm:$0xff]   ;;  %v8487_v47 = vld [vmem:[%s11403_s1 + $0x1584] ss:$16 sps:$4 sm:$0xff]  }
 0x278   :  { %5435 = vmatprep.subr.bf16.mxu0 %v8403_v57  ;;  %5968 = vmatprep.subr.bf16.mxu1 %v8406_v58  ;;  %v8490_v57 = vld [vmem:[%s11403_s1 + $0x158c] ss:$16 sps:$4 sm:$0xff]   ;;  %v8485_v58 = vld [vmem:[%s11403_s1 + $0x1580] ss:$16 sps:$4 sm:$0xff]  }
 0x27b   :  { %5436 = vmatpush1.bf16.msra.mxu0 %v8401_v48  ;;  %5969 = vmatpush1.bf16.msra.mxu1 %v8404_v61  ;;  %v8493_v48 = vld [vmem:[%s11403_s1 + $0x15a4] ss:$16 sps:$4 sm:$0xff]   ;;  %v8496_v61 = vld [vmem:[%s11403_s1 + $0x15ac] ss:$16 sps:$4 sm:$0xff]  }
 0x27c   :  { %5437 = vmatprep.subr.bf16.mxu0 %v8409_v63  ;;  %5970 = vmatprep.subr.bf16.mxu1 %v8412_v44  ;;  %v8491_v63 = vld [vmem:[%s11403_s1 + $0x15a0] ss:$16 sps:$4 sm:$0xff]   ;;  %v8494_v44 = vld [vmem:[%s11403_s1 + $0x15a8] ss:$16 sps:$4 sm:$0xff]  }
 0x27f   :  { %5438 = vmatpush1.bf16.msra.mxu0 %v8407_v1  ;;  %5971 = vmatpush1.bf16.msra.mxu1 %v8410_v51  ;;  %v8499_v1 = vld [vmem:[%s11403_s1 + $0x15c4] ss:$16 sps:$4 sm:$0xff]   ;;  %v8502_v51 = vld [vmem:[%s11403_s1 + $0x15cc] ss:$16 sps:$4 sm:$0xff]  }
 0x280   :  { %5448 = vmatprep.subr.bf16.mxu0 %v8415_v2  ;;  %5981 = vmatprep.subr.bf16.mxu1 %v8418_v3  ;;  %v8497_v2 = vld [vmem:[%s11403_s1 + $0x15c0] ss:$16 sps:$4 sm:$0xff]   ;;  %v8500_v3 = vld [vmem:[%s11403_s1 + $0x15c8] ss:$16 sps:$4 sm:$0xff]  }
 0x282   :  { %5440 = vmatmul.mubr.bf16.vlgmr.msra.gmra.mrb[0].mxu0 %v995_v60  ;;  %5973 = vmatmul.mubr.bf16.vlgmr.msra.gmra.mrb[0].mxu1 %v995_v60  ;;  %v8508_v60 = vld [vmem:[%s11403_s1 + $0x15ec] ss:$16 sps:$4 sm:$0xff]  }
 0x283   :  { %5449 = vmatpush1.bf16.msra.mxu0 %v8413_v5  ;;  %5982 = vmatpush1.bf16.msra.mxu1 %v8416_v6  ;;  %v8503_v5 = vld [vmem:[%s11403_s1 + $0x15e0] ss:$16 sps:$4 sm:$0xff]   ;;  %v8506_v6 = vld [vmem:[%s11403_s1 + $0x15e8] ss:$16 sps:$4 sm:$0xff]  }
 0x284   :  { %5450 = vmatprep.subr.bf16.mxu0 %v8421_v7  ;;  %5983 = vmatprep.subr.bf16.mxu1 %v8424_v62  ;;  %v8512_v7 = vld [vmem:[%s11403_s1 + $0x1604] ss:$16 sps:$4 sm:$0xff]   ;;  %v8515_v62 = vld [vmem:[%s11403_s1 + $0x160c] ss:$16 sps:$4 sm:$0xff]  }
 0x285   :  { %5480 = vmatprep.mubr.bf16.mxu0 %v10804_v8  ;;  %6013 = vmatprep.mubr.bf16.mxu1 %v10804_v8 }
 0x287   :  { %5451 = vmatpush1.bf16.msra.mxu0 %v8419_v9  ;;  %5984 = vmatpush1.bf16.msra.mxu1 %v8422_v10  ;;  %v10990_v9 = vrot.slane %v10773_v0, %v8880_v49  ;;  %v8510_v10 = vld [vmem:[%s11403_s1 + $0x1600] ss:$16 sps:$4 sm:$0xff]   ;;  %v8521_v0 = vld [vmem:[%s11403_s1 + $0x162c] ss:$16 sps:$4 sm:$0xff]  }
 0x288   :  { %5452 = vmatprep.subr.bf16.mxu0 %v8427_v11  ;;  %5985 = vmatprep.subr.bf16.mxu1 %v8430_v12  ;;  %v8513_v11 = vld [vmem:[%s11403_s1 + $0x1608] ss:$16 sps:$4 sm:$0xff]   ;;  %v8518_v12 = vld [vmem:[%s11403_s1 + $0x1624] ss:$16 sps:$4 sm:$0xff]  }
 0x28b   :  { %5453 = vmatpush1.bf16.msra.mxu0 %v8425_v52  ;;  %5986 = vmatpush1.bf16.msra.mxu1 %v8428_v15  ;;  %v998_v52 = vcombine.high %v10804_v8, %v10804_v8  ;;  %v8516_v15 = vld [vmem:[%s11403_s1 + $0x1620] ss:$16 sps:$4 sm:$0xff]   ;;  %v8524_v8 = vld [vmem:[%s11403_s1 + $0x1644] ss:$16 sps:$4 sm:$0xff]  }
 0x28c   :  { %5454 = vmatprep.subr.bf16.mxu0 %v8433_v16  ;;  %5987 = vmatprep.subr.bf16.mxu1 %v8436_v17  ;;  %v8519_v16 = vld [vmem:[%s11403_s1 + $0x1628] ss:$16 sps:$4 sm:$0xff]   ;;  %v8527_v17 = vld [vmem:[%s11403_s1 + $0x164c] ss:$16 sps:$4 sm:$0xff]  }
 0x28f   :  { %5455 = vmatpush1.bf16.msra.mxu0 %v8431_v18  ;;  %5988 = vmatpush1.bf16.msra.mxu1 %v8434_v19  ;;  %v8522_v18 = vld [vmem:[%s11403_s1 + $0x1640] ss:$16 sps:$4 sm:$0xff]   ;;  %v8525_v19 = vld [vmem:[%s11403_s1 + $0x1648] ss:$16 sps:$4 sm:$0xff]  }
 0x290   :  { %5456 = vmatprep.subr.bf16.mxu0 %v8439_v20  ;;  %5989 = vmatprep.subr.bf16.mxu1 %v8442_v22  ;;  %v8530_v20 = vld [vmem:[%s11403_s1 + $0x1664] ss:$16 sps:$4 sm:$0xff]   ;;  %v8533_v22 = vld [vmem:[%s11403_s1 + $0x166c] ss:$16 sps:$4 sm:$0xff]  }
 0x293   :  { %5457 = vmatpush1.bf16.msra.mxu0 %v8437_v23  ;;  %5990 = vmatpush1.bf16.msra.mxu1 %v8440_v24  ;;  %v8528_v23 = vld [vmem:[%s11403_s1 + $0x1660] ss:$16 sps:$4 sm:$0xff]   ;;  %v8531_v24 = vld [vmem:[%s11403_s1 + $0x1668] ss:$16 sps:$4 sm:$0xff]  }
 0x294   :  { %5458 = vmatprep.subr.bf16.mxu0 %v8445_v13  ;;  %5991 = vmatprep.subr.bf16.mxu1 %v8448_v27  ;;  %v8536_v13 = vld [vmem:[%s11403_s1 + $0x1684] ss:$16 sps:$4 sm:$0xff]   ;;  %v8539_v27 = vld [vmem:[%s11403_s1 + $0x168c] ss:$16 sps:$4 sm:$0xff]  }
 0x297   :  { %5459 = vmatpush1.bf16.msra.mxu0 %v8443_v28  ;;  %5992 = vmatpush1.bf16.msra.mxu1 %v8446_v29  ;;  %v8534_v28 = vld [vmem:[%s11403_s1 + $0x1680] ss:$16 sps:$4 sm:$0xff]   ;;  %v8537_v29 = vld [vmem:[%s11403_s1 + $0x1688] ss:$16 sps:$4 sm:$0xff]  }
 0x298   :  { %5460 = vmatprep.subr.bf16.mxu0 %v8451_v14  ;;  %5993 = vmatprep.subr.bf16.mxu1 %v8454_v30  ;;  %v8542_v14 = vld [vmem:[%s11403_s1 + $0x16a4] ss:$16 sps:$4 sm:$0xff]   ;;  %v8545_v30 = vld [vmem:[%s11403_s1 + $0x16ac] ss:$16 sps:$4 sm:$0xff]  }
 0x29b   :  { %5461 = vmatpush1.bf16.msra.mxu0 %v8449_v31  ;;  %5994 = vmatpush1.bf16.msra.mxu1 %v8452_v25  ;;  %v8540_v31 = vld [vmem:[%s11403_s1 + $0x16a0] ss:$16 sps:$4 sm:$0xff]   ;;  %v8543_v25 = vld [vmem:[%s11403_s1 + $0x16a8] ss:$16 sps:$4 sm:$0xff]  }
 0x29c   :  { %5462 = vmatprep.subr.bf16.mxu0 %v8457_v32  ;;  %5995 = vmatprep.subr.bf16.mxu1 %v8460_v33  ;;  %v8548_v32 = vld [vmem:[%s11403_s1 + $0x16c4] ss:$16 sps:$4 sm:$0xff]   ;;  %v8551_v33 = vld [vmem:[%s11403_s1 + $0x16cc] ss:$16 sps:$4 sm:$0xff]  }
 0x29f   :  { %5463 = vmatpush1.bf16.msra.mxu0 %v8455_v26  ;;  %5996 = vmatpush1.bf16.msra.mxu1 %v8458_v36  ;;  %v8546_v26 = vld [vmem:[%s11403_s1 + $0x16c0] ss:$16 sps:$4 sm:$0xff]   ;;  %v8549_v36 = vld [vmem:[%s11403_s1 + $0x16c8] ss:$16 sps:$4 sm:$0xff]  }
 0x2a0   :  { %5464 = vmatprep.subr.bf16.mxu0 %v8463_v37  ;;  %5997 = vmatprep.subr.bf16.mxu1 %v8466_v21  ;;  %v8554_v37 = vld [vmem:[%s11403_s1 + $0x16e4] ss:$16 sps:$4 sm:$0xff]   ;;  %v8557_v21 = vld [vmem:[%s11403_s1 + $0x16ec] ss:$16 sps:$4 sm:$0xff]  }
 0x2a3   :  { %5465 = vmatpush1.bf16.msra.mxu0 %v8461_v39  ;;  %5998 = vmatpush1.bf16.msra.mxu1 %v8464_v40  ;;  %v8552_v39 = vld [vmem:[%s11403_s1 + $0x16e0] ss:$16 sps:$4 sm:$0xff]   ;;  %v8555_v40 = vld [vmem:[%s11403_s1 + $0x16e8] ss:$16 sps:$4 sm:$0xff]  }
 0x2a4   :  { %5466 = vmatprep.subr.bf16.mxu0 %v8469_v41  ;;  %5999 = vmatprep.subr.bf16.mxu1 %v8472_v34  ;;  %v8560_v41 = vld [vmem:[%s11403_s1 + $0x1704] ss:$16 sps:$4 sm:$0xff]   ;;  %v8563_v34 = vld [vmem:[%s11403_s1 + $0x170c] ss:$16 sps:$4 sm:$0xff]  }
 0x2a7   :  { %5467 = vmatpush1.bf16.msra.mxu0 %v8467_v43  ;;  %6000 = vmatpush1.bf16.msra.mxu1 %v8470_v45  ;;  %v8558_v43 = vld [vmem:[%s11403_s1 + $0x1700] ss:$16 sps:$4 sm:$0xff]   ;;  %v8561_v45 = vld [vmem:[%s11403_s1 + $0x1708] ss:$16 sps:$4 sm:$0xff]  }
 0x2a8   :  { %5468 = vmatprep.subr.bf16.mxu0 %v8475_v46  ;;  %6001 = vmatprep.subr.bf16.mxu1 %v8478_v35  ;;  %v8566_v46 = vld [vmem:[%s11403_s1 + $0x1724] ss:$16 sps:$4 sm:$0xff]   ;;  %v8569_v35 = vld [vmem:[%s11403_s1 + $0x172c] ss:$16 sps:$4 sm:$0xff]  }
 0x2ab   :  { %5469 = vmatpush1.bf16.msra.mxu0 %v8473_v50  ;;  %6002 = vmatpush1.bf16.msra.mxu1 %v8476_v53  ;;  %v8564_v50 = vld [vmem:[%s11403_s1 + $0x1720] ss:$16 sps:$4 sm:$0xff]   ;;  %v8567_v53 = vld [vmem:[%s11403_s1 + $0x1728] ss:$16 sps:$4 sm:$0xff]  }
 0x2ac   :  { %5470 = vmatprep.subr.bf16.mxu0 %v8481_v38  ;;  %6003 = vmatprep.subr.bf16.mxu1 %v8484_v54  ;;  %v8572_v38 = vld [vmem:[%s11403_s1 + $0x1744] ss:$16 sps:$4 sm:$0xff]   ;;  %v8575_v54 = vld [vmem:[%s11403_s1 + $0x174c] ss:$16 sps:$4 sm:$0xff]  }
 0x2af   :  { %5471 = vmatpush1.bf16.msra.mxu0 %v8479_v55  ;;  %6004 = vmatpush1.bf16.msra.mxu1 %v8482_v56  ;;  %v8570_v55 = vld [vmem:[%s11403_s1 + $0x1740] ss:$16 sps:$4 sm:$0xff]   ;;  %v8573_v56 = vld [vmem:[%s11403_s1 + $0x1748] ss:$16 sps:$4 sm:$0xff]  }
 0x2b0   :  { %5472 = vmatprep.subr.bf16.mxu0 %v8487_v47  ;;  %6005 = vmatprep.subr.bf16.mxu1 %v8490_v57  ;;  %v8578_v47 = vld [vmem:[%s11403_s1 + $0x1764] ss:$16 sps:$4 sm:$0xff]   ;;  %v8581_v57 = vld [vmem:[%s11403_s1 + $0x176c] ss:$16 sps:$4 sm:$0xff]  }
 0x2b3   :  { %5473 = vmatpush1.bf16.msra.mxu0 %v8485_v58  ;;  %6006 = vmatpush1.bf16.msra.mxu1 %v8488_v59  ;;  %v8576_v58 = vld [vmem:[%s11403_s1 + $0x1760] ss:$16 sps:$4 sm:$0xff]   ;;  %v8579_v59 = vld [vmem:[%s11403_s1 + $0x1768] ss:$16 sps:$4 sm:$0xff]  }
 0x2b4   :  { %5474 = vmatprep.subr.bf16.mxu0 %v8493_v48  ;;  %6007 = vmatprep.subr.bf16.mxu1 %v8496_v61  ;;  %v8584_v48 = vld [vmem:[%s11403_s1 + $0x1784] ss:$16 sps:$4 sm:$0xff]   ;;  %v8587_v61 = vld [vmem:[%s11403_s1 + $0x178c] ss:$16 sps:$4 sm:$0xff]  }
 0x2b7   :  { %5475 = vmatpush1.bf16.msra.mxu0 %v8491_v63  ;;  %6008 = vmatpush1.bf16.msra.mxu1 %v8494_v44  ;;  %v8582_v63 = vld [vmem:[%s11403_s1 + $0x1780] ss:$16 sps:$4 sm:$0xff]   ;;  %v8585_v44 = vld [vmem:[%s11403_s1 + $0x1788] ss:$16 sps:$4 sm:$0xff]  }
 0x2b8   :  { %5476 = vmatprep.subr.bf16.mxu0 %v8499_v1  ;;  %6009 = vmatprep.subr.bf16.mxu1 %v8502_v51  ;;  %v8590_v1 = vld [vmem:[%s11403_s1 + $0x17a4] ss:$16 sps:$4 sm:$0xff]   ;;  %v8593_v51 = vld [vmem:[%s11403_s1 + $0x17ac] ss:$16 sps:$4 sm:$0xff]  }
 0x2bb   :  { %5477 = vmatpush1.bf16.msra.mxu0 %v8497_v2  ;;  %6010 = vmatpush1.bf16.msra.mxu1 %v8500_v3  ;;  %v8588_v2 = vld [vmem:[%s11403_s1 + $0x17a0] ss:$16 sps:$4 sm:$0xff]   ;;  %v8591_v3 = vld [vmem:[%s11403_s1 + $0x17a8] ss:$16 sps:$4 sm:$0xff]  }
 0x2bc   :  { %5478 = vmatprep.subr.bf16.mxu0 %v8505_v4  ;;  %6011 = vmatprep.subr.bf16.mxu1 %v8508_v60  ;;  %v8596_v4 = vld [vmem:[%s11403_s1 + $0x17c4] ss:$16 sps:$4 sm:$0xff]   ;;  %v8599_v60 = vld [vmem:[%s11403_s1 + $0x17cc] ss:$16 sps:$4 sm:$0xff]  }
 0x2bf   :  { %5479 = vmatpush1.bf16.msra.mxu0 %v8503_v5  ;;  %6012 = vmatpush1.bf16.msra.mxu1 %v8506_v6  ;;  %v8594_v5 = vld [vmem:[%s11403_s1 + $0x17c0] ss:$16 sps:$4 sm:$0xff]   ;;  %v8597_v6 = vld [vmem:[%s11403_s1 + $0x17c8] ss:$16 sps:$4 sm:$0xff]  }
 0x2c0   :  { %5489 = vmatprep.subr.bf16.mxu0 %v8512_v7  ;;  %6022 = vmatprep.subr.bf16.mxu1 %v8515_v62  ;;  %v8602_v7 = vld [vmem:[%s11403_s1 + $0x17e4] ss:$16 sps:$4 sm:$0xff]   ;;  %v8605_v62 = vld [vmem:[%s11403_s1 + $0x17ec] ss:$16 sps:$4 sm:$0xff]  }
 0x2c2   :  { %5481 = vmatmul.mubr.bf16.vlgmr.msra.gmra.mrb[0].mxu0 %v10990_v9  ;;  %6014 = vmatmul.mubr.bf16.vlgmr.msra.gmra.mrb[0].mxu1 %v10990_v9 }
 0x2c3   :  { %5490 = vmatpush1.bf16.msra.mxu0 %v8510_v10  ;;  %6023 = vmatpush1.bf16.msra.mxu1 %v8513_v11  ;;  %v8600_v10 = vld [vmem:[%s11403_s1 + $0x17e0] ss:$16 sps:$4 sm:$0xff]   ;;  %v8603_v11 = vld [vmem:[%s11403_s1 + $0x17e8] ss:$16 sps:$4 sm:$0xff]  }
 0x2c4   :  { %5491 = vmatprep.subr.bf16.mxu0 %v8518_v12  ;;  %6024 = vmatprep.subr.bf16.mxu1 %v8521_v0  ;;  %v8608_v12 = vld [vmem:[%s11403_s1 + $0x1804] ss:$16 sps:$4 sm:$0xff]   ;;  %v8611_v0 = vld [vmem:[%s11403_s1 + $0x180c] ss:$16 sps:$4 sm:$0xff]  }
 0x2c5   :  { %5521 = vmatprep.mubr.bf16.mxu0 %v998_v52  ;;  %6054 = vmatprep.mubr.bf16.mxu1 %v998_v52  ;;  %v996_v52 = vcombine.high %v10990_v9, %v10990_v9  ;;  %v8617_v9 = vld [vmem:[%s11403_s1 + $0x182c] ss:$16 sps:$4 sm:$0xff]  }
 0x2c7   :  { %5492 = vmatpush1.bf16.msra.mxu0 %v8516_v15  ;;  %6025 = vmatpush1.bf16.msra.mxu1 %v8519_v16  ;;  %v8606_v15 = vld [vmem:[%s11403_s1 + $0x1800] ss:$16 sps:$4 sm:$0xff]   ;;  %v8609_v16 = vld [vmem:[%s11403_s1 + $0x1808] ss:$16 sps:$4 sm:$0xff]  }
 0x2c8   :  { %5493 = vmatprep.subr.bf16.mxu0 %v8524_v8  ;;  %6026 = vmatprep.subr.bf16.mxu1 %v8527_v17  ;;  %v8614_v8 = vld [vmem:[%s11403_s1 + $0x1824] ss:$16 sps:$4 sm:$0xff]   ;;  %v8612_v17 = vld [vmem:[%s11403_s1 + $0x1820] ss:$16 sps:$4 sm:$0xff]  }
 0x2cb   :  { %5494 = vmatpush1.bf16.msra.mxu0 %v8522_v18  ;;  %6027 = vmatpush1.bf16.msra.mxu1 %v8525_v19  ;;  %v8615_v18 = vld [vmem:[%s11403_s1 + $0x1828] ss:$16 sps:$4 sm:$0xff]   ;;  %v8620_v19 = vld [vmem:[%s11403_s1 + $0x1844] ss:$16 sps:$4 sm:$0xff]  }
 0x2cc   :  { %5495 = vmatprep.subr.bf16.mxu0 %v8530_v20  ;;  %6028 = vmatprep.subr.bf16.mxu1 %v8533_v22  ;;  %v8623_v20 = vld [vmem:[%s11403_s1 + $0x184c] ss:$16 sps:$4 sm:$0xff]   ;;  %v8713_v22 = vmov 0  }
 0x2cf   :  { %5496 = vmatpush1.bf16.msra.mxu0 %v8528_v23  ;;  %6029 = vmatpush1.bf16.msra.mxu1 %v8531_v24  ;;  %v8618_v23 = vld [vmem:[%s11403_s1 + $0x1840] ss:$16 sps:$4 sm:$0xff]   ;;  %v8621_v24 = vld [vmem:[%s11403_s1 + $0x1848] ss:$16 sps:$4 sm:$0xff]  }
 0x2d0   :  { %5497 = vmatprep.subr.bf16.mxu0 %v8536_v13  ;;  %6030 = vmatprep.subr.bf16.mxu1 %v8539_v27  ;;  %v8626_v13 = vld [vmem:[%s11403_s1 + $0x1864] ss:$16 sps:$4 sm:$0xff]   ;;  %v8629_v27 = vld [vmem:[%s11403_s1 + $0x186c] ss:$16 sps:$4 sm:$0xff]  }
 0x2d3   :  { %5498 = vmatpush1.bf16.msra.mxu0 %v8534_v28  ;;  %6031 = vmatpush1.bf16.msra.mxu1 %v8537_v29  ;;  %v8624_v28 = vld [vmem:[%s11403_s1 + $0x1860] ss:$16 sps:$4 sm:$0xff]   ;;  %v8627_v29 = vld [vmem:[%s11403_s1 + $0x1868] ss:$16 sps:$4 sm:$0xff]  }
 0x2d4   :  { %5499 = vmatprep.subr.bf16.mxu0 %v8542_v14  ;;  %6032 = vmatprep.subr.bf16.mxu1 %v8545_v30  ;;  %v8632_v14 = vld [vmem:[%s11403_s1 + $0x1884] ss:$16 sps:$4 sm:$0xff]   ;;  %v8635_v30 = vld [vmem:[%s11403_s1 + $0x188c] ss:$16 sps:$4 sm:$0xff]  }
 0x2d7   :  { %5500 = vmatpush1.bf16.msra.mxu0 %v8540_v31  ;;  %6033 = vmatpush1.bf16.msra.mxu1 %v8543_v25  ;;  %v8630_v31 = vld [vmem:[%s11403_s1 + $0x1880] ss:$16 sps:$4 sm:$0xff]   ;;  %v8633_v25 = vld [vmem:[%s11403_s1 + $0x1888] ss:$16 sps:$4 sm:$0xff]  }
 0x2d8   :  { %5501 = vmatprep.subr.bf16.mxu0 %v8548_v32  ;;  %6034 = vmatprep.subr.bf16.mxu1 %v8551_v33  ;;  %v8638_v32 = vld [vmem:[%s11403_s1 + $0x18a4] ss:$16 sps:$4 sm:$0xff]   ;;  %v8641_v33 = vld [vmem:[%s11403_s1 + $0x18ac] ss:$16 sps:$4 sm:$0xff]  }
 0x2db   :  { %5502 = vmatpush1.bf16.msra.mxu0 %v8546_v26  ;;  %6035 = vmatpush1.bf16.msra.mxu1 %v8549_v36  ;;  %v8636_v26 = vld [vmem:[%s11403_s1 + $0x18a0] ss:$16 sps:$4 sm:$0xff]   ;;  %v8639_v36 = vld [vmem:[%s11403_s1 + $0x18a8] ss:$16 sps:$4 sm:$0xff]  }
 0x2dc   :  { %5503 = vmatprep.subr.bf16.mxu0 %v8554_v37  ;;  %6036 = vmatprep.subr.bf16.mxu1 %v8557_v21  ;;  %v8644_v37 = vld [vmem:[%s11403_s1 + $0x18c4] ss:$16 sps:$4 sm:$0xff]   ;;  %v8647_v21 = vld [vmem:[%s11403_s1 + $0x18cc] ss:$16 sps:$4 sm:$0xff]  }
 0x2df   :  { %5504 = vmatpush1.bf16.msra.mxu0 %v8552_v39  ;;  %6037 = vmatpush1.bf16.msra.mxu1 %v8555_v40  ;;  %v8642_v39 = vld [vmem:[%s11403_s1 + $0x18c0] ss:$16 sps:$4 sm:$0xff]   ;;  %v8645_v40 = vld [vmem:[%s11403_s1 + $0x18c8] ss:$16 sps:$4 sm:$0xff]  }
 0x2e0   :  { %5505 = vmatprep.subr.bf16.mxu0 %v8560_v41  ;;  %6038 = vmatprep.subr.bf16.mxu1 %v8563_v34  ;;  %v8650_v41 = vld [vmem:[%s11403_s1 + $0x18e4] ss:$16 sps:$4 sm:$0xff]   ;;  %v8653_v34 = vld [vmem:[%s11403_s1 + $0x18ec] ss:$16 sps:$4 sm:$0xff]  }
 0x2e3   :  { %5506 = vmatpush1.bf16.msra.mxu0 %v8558_v43  ;;  %6039 = vmatpush1.bf16.msra.mxu1 %v8561_v45  ;;  %v8648_v43 = vld [vmem:[%s11403_s1 + $0x18e0] ss:$16 sps:$4 sm:$0xff]   ;;  %v8651_v45 = vld [vmem:[%s11403_s1 + $0x18e8] ss:$16 sps:$4 sm:$0xff]  }
 0x2e4   :  { %5507 = vmatprep.subr.bf16.mxu0 %v8566_v46  ;;  %6040 = vmatprep.subr.bf16.mxu1 %v8569_v35  ;;  %v6470_v46 = vld.sshfl [vmem:[%s11402_s0 + $0x18] sm:$0x1 pattern:$0x75316420]  ;;  %v8654_v35 = vld [vmem:[%s11405_s3 + $0x40] sm:$0xff]  }
 0x2e7   :  { %5508 = vmatpush1.bf16.msra.mxu0 %v8564_v50  ;;  %6041 = vmatpush1.bf16.msra.mxu1 %v8567_v53  ;;  %v8655_v50 = vld [vmem:[%s11405_s3 + $0xc0] sm:$0xff]   ;;  %v1012_v53 = vrot.slane %v6470_v46, %v8880_v49  ;;  %v8659_v49 = vld [vmem:[%s11405_s3 + $0xc8] sm:$0xff]  }
 0x2e8   :  { %5509 = vmatprep.subr.bf16.mxu0 %v8572_v38  ;;  %6042 = vmatprep.subr.bf16.mxu1 %v8575_v54  ;;  %v8656_v38 = vld [vmem:[%s11405_s3] sm:$0xff]  }
 0x2e9   :  { %v8657_v54 = vld [vmem:[%s11405_s3 + $0x80] sm:$0xff]  }
 0x2eb   :  { %5510 = vmatpush1.bf16.msra.mxu0 %v8570_v55  ;;  %6043 = vmatpush1.bf16.msra.mxu1 %v8573_v56  ;;  %v8658_v55 = vld [vmem:[%s11405_s3 + $0x48] sm:$0xff]  }
 0x2ec   :  { %5511 = vmatprep.subr.bf16.mxu0 %v8578_v47  ;;  %6044 = vmatprep.subr.bf16.mxu1 %v8581_v57  ;;  %v8660_v56 = vld [vmem:[%s11405_s3 + $0x8] sm:$0xff]   ;;  %v8662_v57 = vld [vmem:[%s11405_s3 + $0x50] sm:$0xff]  }
 0x2ed   :  { %v8661_v47 = vld [vmem:[%s11405_s3 + $0x88] sm:$0xff]  }
 0x2ef   :  { %5512 = vmatpush1.bf16.msra.mxu0 %v8576_v58  ;;  %6045 = vmatpush1.bf16.msra.mxu1 %v8579_v59  ;;  %v8663_v58 = vld [vmem:[%s11405_s3 + $0xd0] sm:$0xff]  }
 0x2f0   :  { %5513 = vmatprep.subr.bf16.mxu0 %v8584_v48  ;;  %6046 = vmatprep.subr.bf16.mxu1 %v8587_v61  ;;  %v8664_v59 = vld [vmem:[%s11405_s3 + $0x10] sm:$0xff]   ;;  %v8666_v61 = vld [vmem:[%s11405_s3 + $0x58] sm:$0xff]  }
 0x2f1   :  { %v8665_v48 = vld [vmem:[%s11405_s3 + $0x90] sm:$0xff]  }
 0x2f3   :  { %5514 = vmatpush1.bf16.msra.mxu0 %v8582_v63  ;;  %6047 = vmatpush1.bf16.msra.mxu1 %v8585_v44  ;;  %v8667_v63 = vld [vmem:[%s11405_s3 + $0xd8] sm:$0xff]  }
 0x2f4   :  { %5515 = vmatprep.subr.bf16.mxu0 %v8590_v1  ;;  %6048 = vmatprep.subr.bf16.mxu1 %v8593_v51  ;;  %v8668_v44 = vld [vmem:[%s11405_s3 + $0x18] sm:$0xff]   ;;  %v8670_v51 = vld [vmem:[%s11405_s3 + $0x60] sm:$0xff]  }
 0x2f5   :  { %v8669_v1 = vld [vmem:[%s11405_s3 + $0x98] sm:$0xff]  }
 0x2f7   :  { %5516 = vmatpush1.bf16.msra.mxu0 %v8588_v2  ;;  %6049 = vmatpush1.bf16.msra.mxu1 %v8591_v3  ;;  %v8671_v2 = vld [vmem:[%s11405_s3 + $0xe0] sm:$0xff]  }
 0x2f8   :  { %5517 = vmatprep.subr.bf16.mxu0 %v8596_v4  ;;  %6050 = vmatprep.subr.bf16.mxu1 %v8599_v60  ;;  %v8672_v3 = vld [vmem:[%s11405_s3 + $0x20] sm:$0xff]   ;;  %v8674_v60 = vld [vmem:[%s11405_s3 + $0x68] sm:$0xff]  }
 0x2f9   :  { %v8673_v4 = vld [vmem:[%s11405_s3 + $0xa0] sm:$0xff]  }
 0x2fb   :  { %5518 = vmatpush1.bf16.msra.mxu0 %v8594_v5  ;;  %6051 = vmatpush1.bf16.msra.mxu1 %v8597_v6  ;;  %v8675_v5 = vld [vmem:[%s11405_s3 + $0xe8] sm:$0xff]  }
 0x2fc   :  { %5519 = vmatprep.subr.bf16.mxu0 %v8602_v7  ;;  %6052 = vmatprep.subr.bf16.mxu1 %v8605_v62  ;;  %v8676_v6 = vld [vmem:[%s11405_s3 + $0x28] sm:$0xff]   ;;  %v8678_v62 = vld [vmem:[%s11405_s3 + $0x70] sm:$0xff]  }
 0x2fd   :  { %v8677_v7 = vld [vmem:[%s11405_s3 + $0xa8] sm:$0xff]  }
 0x2ff   :  { %5520 = vmatpush1.bf16.msra.mxu0 %v8600_v10  ;;  %6053 = vmatpush1.bf16.msra.mxu1 %v8603_v11  ;;  %v8679_v10 = vld [vmem:[%s11405_s3 + $0xf0] sm:$0xff]  }
 0x300   :  { %5530 = vmatprep.subr.bf16.mxu0 %v8608_v12  ;;  %6063 = vmatprep.subr.bf16.mxu1 %v8611_v0  ;;  %v8680_v11 = vld [vmem:[%s11405_s3 + $0x30] sm:$0xff]   ;;  %v8682_v0 = vld [vmem:[%s11405_s3 + $0x78] sm:$0xff]  }
 0x301   :  { %v8681_v12 = vld [vmem:[%s11405_s3 + $0xb0] sm:$0xff]  }
 0x302   :  { %5522 = vmatmul.mubr.bf16.vlgmr.msra.gmra.mrb[0].mxu0 %v996_v52  ;;  %6055 = vmatmul.mubr.bf16.vlgmr.msra.gmra.mrb[0].mxu1 %v996_v52  ;;  %v8683_v52 = vld [vmem:[%s11405_s3 + $0xf8] sm:$0xff]  }
 0x303   :  { %5531 = vmatpush1.bf16.msra.mxu0 %v8606_v15  ;;  %6064 = vmatpush1.bf16.msra.mxu1 %v8609_v16  ;;  %v8684_v15 = vld [vmem:[%s11405_s3 + $0x38] sm:$0xff]  }
 0x304   :  { %5532 = vmatprep.subr.bf16.mxu0 %v8614_v8  ;;  %6065 = vmatprep.subr.bf16.mxu1 %v8617_v9  ;;  %v8685_v16 = vld [vmem:[%s11405_s3 + $0xb8] sm:$0xff]   ;;  %v830_v8 = vsub.s32 0, %v8862_v42  ;;  %v838_v9 = vsub.s32 2, %v8862_v42 }
 0x305   :  { %5562 = vmatprep.mubr.bf16.mxu0 %v8713_v22  ;;  %6095 = vmatprep.mubr.bf16.mxu1 %v8713_v22 }
 0x307   :  { %5533 = vmatpush1.bf16.msra.mxu0 %v8612_v17  ;;  %6066 = vmatpush1.bf16.msra.mxu1 %v8615_v18  ;;  %v826_v17 = vld [vmem:[%s11404_s2] sm:$0xf]  ;;  %v834_v18 = vsub.s32 1, %v8862_v42 }
 0x308   :  { %5534 = vmatprep.subr.bf16.mxu0 %v8620_v19  ;;  %6067 = vmatprep.subr.bf16.mxu1 %v8623_v20  ;;  %v842_v19 = vsub.s32 3, %v8862_v42  ;;  %v831_v20 = vrot.slane %v826_v17, %v830_v8  ;;  %v839_v22 = vrot.slane %v826_v17, %v838_v9 }
 0x30b   :  { %5535 = vmatpush1.bf16.msra.mxu0 %v8618_v23  ;;  %6068 = vmatpush1.bf16.msra.mxu1 %v8621_v24  ;;  %v835_v23 = vrot.slane %v826_v17, %v834_v18  ;;  %v843_v24 = vrot.slane %v826_v17, %v842_v19 }
 0x30c   :  { %5536 = vmatprep.subr.bf16.mxu0 %v8626_v13  ;;  %6069 = vmatprep.subr.bf16.mxu1 %v8629_v27 }
 0x30f   :  { %5537 = vmatpush1.bf16.msra.mxu0 %v8624_v28  ;;  %6070 = vmatpush1.bf16.msra.mxu1 %v8627_v29 }
 0x310   :  { %5538 = vmatprep.subr.bf16.mxu0 %v8632_v14  ;;  %6071 = vmatprep.subr.bf16.mxu1 %v8635_v30 }
 0x313   :  { %5539 = vmatpush1.bf16.msra.mxu0 %v8630_v31  ;;  %6072 = vmatpush1.bf16.msra.mxu1 %v8633_v25 }
 0x314   :  { %5540 = vmatprep.subr.bf16.mxu0 %v8638_v32  ;;  %6073 = vmatprep.subr.bf16.mxu1 %v8641_v33 }
 0x317   :  { %5541 = vmatpush1.bf16.msra.mxu0 %v8636_v26  ;;  %6074 = vmatpush1.bf16.msra.mxu1 %v8639_v36 }
 0x318   :  { %5542 = vmatprep.subr.bf16.mxu0 %v8644_v37  ;;  %6075 = vmatprep.subr.bf16.mxu1 %v8647_v21 }
 0x31b   :  { %5543 = vmatpush1.bf16.msra.mxu0 %v8642_v39  ;;  %6076 = vmatpush1.bf16.msra.mxu1 %v8645_v40 }
 0x31c   :  { %5544 = vmatprep.subr.bf16.mxu0 %v8650_v41  ;;  %6077 = vmatprep.subr.bf16.mxu1 %v8653_v34 }
 0x31f   :  { %5545 = vmatpush1.bf16.msra.mxu0 %v8648_v43  ;;  %6078 = vmatpush1.bf16.msra.mxu1 %v8651_v45 }
 0x320   :  { %7304 = vmatprep.subr.bf16.mxu0 %v8654_v35  ;;  %7326 = vmatprep.subr.bf16.mxu1 %v8655_v50  ;;  %v7271_v35 = vld [vmem:[%s11406_s4] ss:$0 sm:$0xff] }
 0x322   :  { %5563 = vmatmul.mubr.bf16.vlgmr.msra.gmra.mrb[0].mxu0 %v1012_v53  ;;  %6096 = vmatmul.mubr.bf16.vlgmr.msra.gmra.mrb[0].mxu1 %v1012_v53 }
 0x323   :  { %7305 = vmatpush3.bf16.msra.mxu0 %v8656_v38  ;;  %7327 = vmatpush3.bf16.msra.mxu1 %v8657_v54 }
 0x324   :  { %7306 = vmatprep.subr.bf16.mxu0 %v8658_v55  ;;  %7328 = vmatprep.subr.bf16.mxu1 %v8659_v49 }
 0x327   :  { %7307 = vmatpush3.bf16.msra.mxu0 %v8660_v56  ;;  %7329 = vmatpush3.bf16.msra.mxu1 %v8661_v47 }
 0x328   :  { %7308 = vmatprep.subr.bf16.mxu0 %v8662_v57  ;;  %7330 = vmatprep.subr.bf16.mxu1 %v8663_v58 }
 0x32b   :  { %7309 = vmatpush3.bf16.msra.mxu0 %v8664_v59  ;;  %7331 = vmatpush3.bf16.msra.mxu1 %v8665_v48 }
 0x32c   :  { %7310 = vmatprep.subr.bf16.mxu0 %v8666_v61  ;;  %7332 = vmatprep.subr.bf16.mxu1 %v8667_v63 }
 0x32f   :  { %7311 = vmatpush3.bf16.msra.mxu0 %v8668_v44  ;;  %7333 = vmatpush3.bf16.msra.mxu1 %v8669_v1 }
 0x330   :  { %7312 = vmatprep.subr.bf16.mxu0 %v8670_v51  ;;  %7334 = vmatprep.subr.bf16.mxu1 %v8671_v2 }
 0x333   :  { %7313 = vmatpush3.bf16.msra.mxu0 %v8672_v3  ;;  %7335 = vmatpush3.bf16.msra.mxu1 %v8673_v4 }
 0x334   :  { %7314 = vmatprep.subr.bf16.mxu0 %v8674_v60  ;;  %7336 = vmatprep.subr.bf16.mxu1 %v8675_v5 }
 0x337   :  { %7315 = vmatpush3.bf16.msra.mxu0 %v8676_v6  ;;  %7337 = vmatpush3.bf16.msra.mxu1 %v8677_v7 }
 0x338   :  { %7316 = vmatprep.subr.bf16.mxu0 %v8678_v62  ;;  %7338 = vmatprep.subr.bf16.mxu1 %v8679_v10 }
 0x33b   :  { %7317 = vmatpush3.bf16.msra.mxu0 %v8680_v11  ;;  %7339 = vmatpush3.bf16.msra.mxu1 %v8681_v12 }
 0x33c   :  { %7318 = vmatprep.subr.bf16.mxu0 %v8682_v0  ;;  %7340 = vmatprep.subr.bf16.mxu1 %v8683_v52 }
 0x33f   :  { %7319 = vmatpush3.bf16.msra.mxu0 %v8684_v15  ;;  %7341 = vmatpush3.bf16.msra.mxu1 %v8685_v16 }
 0x3f5   :  { %v5564_v13 = vpop.f32.mrb[0].mxu0  ;;  %v6097_v27 = vpop.f32.mrb[0].mxu1 }
 0x3f6   :  { %v7348_v28 = vadd.f32 %v5564_v13, %v831_v20  ;;  %v7350_v29 = vadd.f32 %v6097_v27, %v839_v22  ;;  %v5566_v14 = vpop.f32.mrb[1].mxu0  ;;  %v6099_v30 = vpop.f32.mrb[1].mxu1 }
 0x3f7   :  { %v7349_v31 = vadd.f32 %v5566_v14, %v835_v23  ;;  %v7351_v25 = vadd.f32 %v6099_v30, %v843_v24  ;;  %v5568_v32 = vpop.f32.mrb[2].mxu0  ;;  %v6101_v33 = vpop.f32.mrb[2].mxu1 }
 0x3f8   :  { %v6104_v26 = vmax.f32 %v7348_v28, 0.0  ;;  %v6106_v36 = vmax.f32 %v7350_v29, 0.0  ;;  %v5569_v37 = vpop.f32.mrb[3].mxu0  ;;  %v6102_v21 = vpop.f32.mrb[3].mxu1 }
 0x3f9   :  { %v6105_v39 = vmax.f32 %v7349_v31, 0.0  ;;  %v6107_v42 = vmax.f32 %v7351_v25, 0.0 }
 0x3fa   :  { %v6108_v34 = vpack.c.bf16 %v6104_v26, %v6104_v26  ;;  %v6110_v43 = vpack.c.bf16 %v6106_v36, %v6106_v36 }
 0x3fb   :  { %v6109_v40 = vpack.c.bf16 %v6105_v39, %v6105_v39  ;;  %v6111_v41 = vpack.c.bf16 %v6107_v42, %v6107_v42 }
 0x3fd   :  { %6407 = vmatprep.mubr.bf16.mxu0 %v6109_v40  ;;  %6447 = vmatprep.mubr.bf16.mxu1 %v6111_v41 }
 0x3fe   :  { %6408 = vmatmul.mubr.bf16.vlgmr.msra.gmra.mrb[4].mxu0 %v6108_v34  ;;  %6448 = vmatmul.mubr.bf16.vlgmr.msra.gmra.mrb[4].mxu1 %v6110_v43 }
 0x4d1   :  { %v7320_v45 = vpop.f32.mrb[4].mxu0  ;;  %v7342_v46 = vpop.f32.mrb[4].mxu1 }
 0x4d2   :  { %v7321_v50 = vpop.f32.mrb[5].mxu0  ;;  %v7343_v53 = vpop.f32.mrb[5].mxu1 }
 0x4d3   :  { %v7322_v38 = vadd.f32 %v7321_v50, %v7320_v45  ;;  %v7344_v54 = vadd.f32 %v7343_v53, %v7342_v46  ;;  %v7323_v55 = vpop.f32.mrb[6].mxu0  ;;  %v7345_v49 = vpop.f32.mrb[6].mxu1 }
 0x4d4   :  { %v7324_v56 = vpop.f32.mrb[7].mxu0  ;;  %v7346_v47 = vpop.f32.mrb[7].mxu1 }
 0x4d5   :  { %v6410_v57 = vadd.f32 %v7322_v38, %v7271_v35 }
 0x4d7   :  { %v6450_v58 = vadd.f32 %v7344_v54, %v6410_v57 }
 0x4d9   :  { %6455 = vst [vmem:[#allocation2] sm:$0x3] %v6450_v58 }
 0x4da   :  { %8699 = shalt.err (!%p8696_p4)
}
 0x4db   :  { %s8700_s17 = scalar_lea.hbm %s11407_s5, 32 }
 0x4dc   :  { %p8701_p5 = scmp.ne.s32.totalorder %s11407_s5, %s8700_s17  ;;  %p8704_p6 = scmp.lt.u32.totalorder %s8700_s17, %s11407_s5 }
 0x4de   :  { %p8706_p7 = pnand %p8704_p6, %p8701_p5 }
 0x4e0   :  { %8709 = shalt.err (!%p8706_p7)
}
 0x4e1   :  { %6465 = dma.vmem_to_hbm [thread:$0]  %s6463_s14, 32, %s11407_s5, [#allocation3]  }
 0x4e2   :  { %8710 = dma.done.wait [#allocation3], 32  }
 0x4e3   :  { %8711 = vsyncadd [#allocation3], 4294967264 }
 0x4e4   :  { %6469 = vsyncpa [#allocation3], 1 }

</bundles_post_ra>
